<compile_context>
chip_gen: v5e
topology: v5e:2x2
jax: 0.10.0
libtpu: 0.0.40
codegen_flags: <defaults>
</compile_context>

<pallas_src>
import functools

import jax
import jax.numpy as jnp
import numpy as np
from jax.experimental import pallas as pl
from jax.experimental.pallas import tpu as pltpu


# ---------------------------------------------------------------------------
# Fused DQN kernel: one grid step processes TB samples.
# Row convention everywhere: row = h * TB + b  (h-major, batch-minor), so all
# per-h / per-tap slices are contiguous, 8-aligned 2-D row slices.
# ---------------------------------------------------------------------------
def _dqn_fused_kernel(xg_ref, xc_ref,
                      a1_ref, b1_ref, a2_ref, b2_ref,
                      wg_ref, bg_ref, wc_ref, bc_ref,
                      wcg_ref, wcc_ref, bcmb_ref,
                      wo_ref, bo_ref,
                      out_ref,
                      *, TB, H, W, Cin, KH):
    f32, bf16 = jnp.float32, jnp.bfloat16
    H1 = H - KH + 1
    H2 = H1 - KH + 1
    WCin = W * Cin
    W1C1 = b1_ref.shape[-1]
    W2C2 = b2_ref.shape[-1]

    # (H, TB, W*Cin) -> (H*TB, W*Cin).  TB % 8 == 0, so this merge is exactly the
    # existing tiled layout (free).
    x = xg_ref[...].reshape(H * TB, WCin)                       # bf16

    # ---- conv1 + ReLU: KH banded matmuls (all kj taps folded into the weight) --
    acc1 = jnp.zeros((H1 * TB, W1C1), f32)
    for ki in range(KH):                                        # 3 taps only
        lhs = x[ki * TB:(ki + H1) * TB, :]                      # aligned row slice
        acc1 = acc1 + jnp.dot(lhs, a1_ref[ki], preferred_element_type=f32)
    y1 = jnp.maximum(acc1 + b1_ref[...], 0.0).astype(bf16)      # (H1*TB, W1*C1)

    # ---- conv2 + ReLU ----------------------------------------------------------
    acc2 = jnp.zeros((H2 * TB, W2C2), f32)
    for ki in range(KH):
        lhs = y1[ki * TB:(ki + H2) * TB, :]
        acc2 = acc2 + jnp.dot(lhs, a2_ref[ki], preferred_element_type=f32)
    y2 = jnp.maximum(acc2 + b2_ref[...], 0.0).astype(bf16)      # (H2*TB, W2*C2)

    # ---- fc_grid + ReLU: sum over h of (TB, W2*C2) @ (W2*C2, 128) --------------
    accg = jnp.zeros((TB, bg_ref.shape[-1]), f32)
    for h in range(H2):
        accg = accg + jnp.dot(y2[h * TB:(h + 1) * TB, :], wg_ref[h],
                              preferred_element_type=f32)
    x_grid = jnp.maximum(accg + bg_ref[...], 0.0).astype(bf16)  # (TB, 128)

    # ---- fc_compact + ReLU -----------------------------------------------------
    x_cmp = jnp.maximum(
        jnp.dot(xc_ref[...], wc_ref[...], preferred_element_type=f32)
        + bc_ref[...], 0.0).astype(bf16)                        # (TB, 64)

    # ---- fc_combined + ReLU (concat-free: weight pre-split into two blocks) ----
    x_c = jnp.maximum(
        jnp.dot(x_grid, wcg_ref[...], preferred_element_type=f32)
        + jnp.dot(x_cmp, wcc_ref[...], preferred_element_type=f32)
        + bcmb_ref[...], 0.0).astype(bf16)                      # (TB, 128)

    # ---- fc_output (lane-padded to 128 for unmasked full-lane stores) ----------
    out_ref[...] = (jnp.dot(x_c, wo_ref[...], preferred_element_type=f32)
                    + bo_ref[...]).astype(out_ref.dtype)


# ---------------------------------------------------------------------------
# Parameter init (torch-equivalent layout)
# ---------------------------------------------------------------------------
def init_dqn_params(key, grid_input_shape, compact_input_size, output_size):
    Cin, H, W = grid_input_shape
    H2, W2 = H - 4, W - 4
    conv_output_size = 64 * H2 * W2
    keys = jax.random.split(key, 12)

    def lin(kw_, kb_, fan_in, shape_w, shape_b):
        bound = 1.0 / jnp.sqrt(fan_in)
        w = jax.random.uniform(kw_, shape_w, jnp.float32, -bound, bound)
        b = jax.random.uniform(kb_, shape_b, jnp.float32, -bound, bound)
        return w, b

    p = {}
    p["conv1_w"], p["conv1_b"] = lin(keys[0], keys[1], Cin * 9, (32, Cin, 3, 3), (32,))
    p["conv2_w"], p["conv2_b"] = lin(keys[2], keys[3], 32 * 9, (64, 32, 3, 3), (64,))
    p["fc_grid_w"], p["fc_grid_b"] = lin(keys[4], keys[5], conv_output_size,
                                         (conv_output_size, 128), (128,))
    p["fc_compact_w"], p["fc_compact_b"] = lin(keys[6], keys[7], compact_input_size,
                                               (compact_input_size, 64), (64,))
    p["fc_combined_w"], p["fc_combined_b"] = lin(keys[8], keys[9], 128 + 64,
                                                 (128 + 64, 128), (128,))
    p["fc_output_w"], p["fc_output_b"] = lin(keys[10], keys[11], 128,
                                             (128, output_size), (output_size,))
    return p


# ---------------------------------------------------------------------------
# One-time repack: banded conv weights, fc_grid row reorder, fc_combined split,
# lane-padded fc_output, bf16 casts.  Zero per-step cost.
# ---------------------------------------------------------------------------
def prepare_dqn_params(params, grid_input_shape):
    Cin, H, W = grid_input_shape
    KH = KW = 3
    H1, W1 = H - 2, W - 2
    H2, W2 = H1 - 2, W1 - 2
    C1 = params["conv1_w"].shape[0]
    C2 = params["conv2_w"].shape[0]
    f32, bf16 = jnp.float32, jnp.bfloat16

    def banded(w_oihw, w_in):
        # (KH, w_in*cin, w_out*cout): A[ki, (jj,c), (j,c')] = W[c',c,ki,jj-j]
        w = np.asarray(w_oihw, np.float32)
        cout, cin, kh, kw = w.shape
        w_out = w_in - kw + 1
        A = np.zeros((kh, w_in * cin, w_out * cout), np.float32)
        for ki in range(kh):
            for j in range(w_out):
                for kj in range(kw):
                    jj = j + kj
                    A[ki, jj * cin:(jj + 1) * cin, j * cout:(j + 1) * cout] = \
                        w[:, :, ki, kj].T
        return jnp.asarray(A, bf16)

    p = {}
    p["a1"] = banded(params["conv1_w"], W)                      # (3, W*Cin, W1*C1)
    p["b1"] = jnp.tile(params["conv1_b"], W1).reshape(1, W1 * C1).astype(f32)
    p["a2"] = banded(params["conv2_w"], W1)                     # (3, W1*C1, W2*C2)
    p["b2"] = jnp.tile(params["conv2_b"], W2).reshape(1, W2 * C2).astype(f32)

    # fc_grid rows: torch NCHW-flatten (c*H2*W2 + h*W2 + w) -> per-h, lane = w*C2+c
    wg = np.asarray(params["fc_grid_w"], np.float32)            # (C2*H2*W2, 128)
    nh = wg.shape[1]
    wg = wg.reshape(C2, H2, W2, nh).transpose(1, 2, 0, 3).reshape(H2, W2 * C2, nh)
    p["wg"] = jnp.asarray(wg, bf16)
    p["bg"] = params["fc_grid_b"].reshape(1, -1).astype(f32)

    p["wc"] = params["fc_compact_w"].astype(bf16)
    p["bc"] = params["fc_compact_b"].reshape(1, -1).astype(f32)

    wcomb = params["fc_combined_w"]                             # (128+64, 128)
    p["wcg"] = wcomb[:nh].astype(bf16)                          # x_grid block
    p["wcc"] = wcomb[nh:].astype(bf16)                          # x_compact block
    p["bcmb"] = params["fc_combined_b"].reshape(1, -1).astype(f32)

    # fc_output padded to 128 lanes (zero columns) for lane-dense output stores.
    wo = np.asarray(params["fc_output_w"], np.float32)          # (128, out_size)
    nout = wo.shape[1]
    out_pad = ((nout + 127) // 128) * 128
    wo_p = np.zeros((wo.shape[0], out_pad), np.float32); wo_p[:, :nout] = wo
    bo_p = np.zeros((1, out_pad), np.float32)
    bo_p[0, :nout] = np.asarray(params["fc_output_b"], np.float32)
    p["wo"] = jnp.asarray(wo_p, bf16)
    p["bo"] = jnp.asarray(bo_p, f32)
    return p


def _pick_tb(B):
    # TB multiple of 8 (sublane tile); cap at 128 so FC M-tiles are 128 and conv
    # M-tiles are 768/1024 while peak VMEM stays ~8 MiB (fits v7x's 64 MiB easily);
    # aim for >= 2 grid steps so v7x's two TensorCores both get work.
    if B >= 256:
        return 128
    tb = max(8, (B + 1) // 2)
    return ((tb + 7) // 8) * 8


# ---------------------------------------------------------------------------
# Forward: single fused, batched pallas_call
# ---------------------------------------------------------------------------
@functools.partial(jax.jit, static_argnames=("out_size",))
def dqn_forward(prepped, grid_nchw, compact, *, out_size):
    B, Cin, H, W = grid_nchw.shape
    KH = 3
    Kc = compact.shape[1]
    out_pad = prepped["bo"].shape[1]

    TB = _pick_tb(B)
    Bp = pl.cdiv(B, TB) * TB
    n_steps = Bp // TB

    # Wrapper-side layout plumbing only: NCHW -> (H, B, W*Cin), bf16, batch-pad.
    xg = jnp.transpose(grid_nchw, (2, 0, 3, 1)).reshape(H, B, W * Cin)
    xg = xg.astype(jnp.bfloat16)
    xc = compact.astype(jnp.bfloat16)
    if Bp != B:
        xg = jnp.pad(xg, ((0, 0), (0, Bp - B), (0, 0)))
        xc = jnp.pad(xc, ((0, Bp - B), (0, 0)))

    kernel = functools.partial(_dqn_fused_kernel, TB=TB, H=H, W=W, Cin=Cin, KH=KH)
    # Whole-array VMEM residents: DMA'd into VMEM once for the whole call, never
    # re-fetched per grid step (they are not block-indexed).
    vmem = pl.BlockSpec(memory_space=pltpu.MemorySpace.VMEM)

    out = pl.pallas_call(
        kernel,
        out_shape=jax.ShapeDtypeStruct((Bp, out_pad), jnp.float32),
        grid=(n_steps,),
        in_specs=[
            pl.BlockSpec((H, TB, W * Cin), lambda b: (0, b, 0)),  # per-step grid tile
            pl.BlockSpec((TB, Kc), lambda b: (b, 0)),             # per-step compact
            vmem, vmem, vmem, vmem,       # a1, b1, a2, b2
            vmem, vmem, vmem, vmem,       # wg, bg, wc, bc
            vmem, vmem, vmem,             # wcg, wcc, bcmb
            vmem, vmem,                   # wo, bo
        ],
        out_specs=pl.BlockSpec((TB, out_pad), lambda b: (b, 0)),
        compiler_params=pltpu.CompilerParams(
            dimension_semantics=("parallel",),        # batch blocks across TCs (v7x)
            vmem_limit_bytes=32 * 1024 * 1024),       # explicit, with headroom
    )(xg, xc,
      prepped["a1"], prepped["b1"], prepped["a2"], prepped["b2"],
      prepped["wg"], prepped["bg"], prepped["wc"], prepped["bc"],
      prepped["wcg"], prepped["wcc"], prepped["bcmb"],
      prepped["wo"], prepped["bo"])
    return out[:B, :out_size]


# ---------------------------------------------------------------------------
# Pure-JAX reference (same bf16 weight/activation rounding as the kernel)
# ---------------------------------------------------------------------------
def dqn_reference(params, grid_nchw, compact):
    f32 = jnp.float32
    rd = lambda a: a.astype(jnp.bfloat16).astype(f32)
    dn = ("NCHW", "OIHW", "NCHW")
    x = rd(grid_nchw)
    x = jax.lax.conv_general_dilated(x, rd(params["conv1_w"]), (1, 1), "VALID",
                                     dimension_numbers=dn)
    x = rd(jnp.maximum(x + params["conv1_b"][None, :, None, None], 0.0))
    x = jax.lax.conv_general_dilated(x, rd(params["conv2_w"]), (1, 1), "VALID",
                                     dimension_numbers=dn)
    x = rd(jnp.maximum(x + params["conv2_b"][None, :, None, None], 0.0))
    B = grid_nchw.shape[0]
    xf = x.reshape(B, -1)
    xgr = rd(jnp.maximum(xf @ rd(params["fc_grid_w"]) + params["fc_grid_b"], 0.0))
    xcp = rd(jnp.maximum(rd(compact) @ rd(params["fc_compact_w"])
                         + params["fc_compact_b"], 0.0))
    xcat = jnp.concatenate([xgr, xcp], axis=1)
    xcm = rd(jnp.maximum(xcat @ rd(params["fc_combined_w"])
                         + params["fc_combined_b"], 0.0))
    return xcm @ rd(params["fc_output_w"]) + params["fc_output_b"]


if __name__ == "__main__":
    key = jax.random.PRNGKey(0)
    grid_input_shape = (4, 10, 10)      # (C, H, W)
    compact_input_size = 8
    output_size = 4
    batch = 50                          # exercises TB=32, 2 grid steps, batch pad

    k_params, k_grid, k_compact = jax.random.split(key, 3)
    params = init_dqn_params(k_params, grid_input_shape,
                             compact_input_size, output_size)
    prepped = prepare_dqn_params(params, grid_input_shape)

    grid = jax.random.normal(k_grid, (batch,) + grid_input_shape, jnp.float32)
    compact = jax.random.normal(k_compact, (batch, compact_input_size),
                                jnp.float32)

    out = jax.block_until_ready(
        dqn_forward(prepped, grid, compact, out_size=output_size))
    assert out.shape == (batch, output_size), out.shape

    ref = jax.block_until_ready(dqn_reference(params, grid, compact))
    np.testing.assert_allclose(np.asarray(out), np.asarray(ref),
                               rtol=2e-2, atol=2e-2)
    print("KERNEL_OK")
</pallas_src>

<mosaic_0001>
module attributes {stable_mosaic.version = 11 : i64} {
  func.func @_dqn_fused_kernel(%arg0: i32, %arg1: memref<10x32x40xbf16, #tpu.memory_space<vmem>>, %arg2: memref<32x8xbf16, #tpu.memory_space<vmem>>, %arg3: memref<3x40x256xbf16, #tpu.memory_space<vmem>>, %arg4: memref<1x256xf32, #tpu.memory_space<vmem>>, %arg5: memref<3x256x384xbf16, #tpu.memory_space<vmem>>, %arg6: memref<1x384xf32, #tpu.memory_space<vmem>>, %arg7: memref<6x384x128xbf16, #tpu.memory_space<vmem>>, %arg8: memref<1x128xf32, #tpu.memory_space<vmem>>, %arg9: memref<8x64xbf16, #tpu.memory_space<vmem>>, %arg10: memref<1x64xf32, #tpu.memory_space<vmem>>, %arg11: memref<128x128xbf16, #tpu.memory_space<vmem>>, %arg12: memref<64x128xbf16, #tpu.memory_space<vmem>>, %arg13: memref<1x128xf32, #tpu.memory_space<vmem>>, %arg14: memref<128x128xbf16, #tpu.memory_space<vmem>>, %arg15: memref<1x128xf32, #tpu.memory_space<vmem>>, %arg16: memref<32x128xf32, #tpu.memory_space<vmem>>) attributes {dimension_semantics = [#tpu.dimension_semantics<parallel>], iteration_bounds = array<i64: 2>, scalar_prefetch = 0 : i64, scratch_operands = 0 : i64, tpu.core_type = #tpu.core_type<tc>, window_params = [{transform_indices = @transform_0, window_bounds = array<i64: 10, 32, 40>}, {transform_indices = @transform_1, window_bounds = array<i64: 32, 8>}, {pipeline_mode = #tpu.pipeline_mode<synchronous>, transform_indices = @transform_2, window_bounds = array<i64: 3, 40, 256>}, {pipeline_mode = #tpu.pipeline_mode<synchronous>, transform_indices = @transform_3, window_bounds = array<i64: 1, 256>}, {pipeline_mode = #tpu.pipeline_mode<synchronous>, transform_indices = @transform_4, window_bounds = array<i64: 3, 256, 384>}, {pipeline_mode = #tpu.pipeline_mode<synchronous>, transform_indices = @transform_5, window_bounds = array<i64: 1, 384>}, {pipeline_mode = #tpu.pipeline_mode<synchronous>, transform_indices = @transform_6, window_bounds = array<i64: 6, 384, 128>}, {pipeline_mode = #tpu.pipeline_mode<synchronous>, transform_indices = @transform_7, window_bounds = array<i64: 1, 128>}, {pipeline_mode = #tpu.pipeline_mode<synchronous>, transform_indices = @transform_8, window_bounds = array<i64: 8, 64>}, {pipeline_mode = #tpu.pipeline_mode<synchronous>, transform_indices = @transform_9, window_bounds = array<i64: 1, 64>}, {pipeline_mode = #tpu.pipeline_mode<synchronous>, transform_indices = @transform_10, window_bounds = array<i64: 128, 128>}, {pipeline_mode = #tpu.pipeline_mode<synchronous>, transform_indices = @transform_11, window_bounds = array<i64: 64, 128>}, {pipeline_mode = #tpu.pipeline_mode<synchronous>, transform_indices = @transform_12, window_bounds = array<i64: 1, 128>}, {pipeline_mode = #tpu.pipeline_mode<synchronous>, transform_indices = @transform_13, window_bounds = array<i64: 128, 128>}, {pipeline_mode = #tpu.pipeline_mode<synchronous>, transform_indices = @transform_14, window_bounds = array<i64: 1, 128>}, {transform_indices = @transform_15, window_bounds = array<i64: 32, 128>}]} {
    %c0 = arith.constant 0 : index
    %c0_0 = arith.constant 0 : index
    %c0_1 = arith.constant 0 : index
    %0 = vector.load %arg1[%c0, %c0_0, %c0_1] : memref<10x32x40xbf16, #tpu.memory_space<vmem>>, vector<10x32x40xbf16>
    %1 = vector.shape_cast %0 : vector<10x32x40xbf16> to vector<320x40xbf16>
    %cst = arith.constant 0.000000e+00 : f32
    %2 = vector.broadcast %cst : f32 to vector<256x256xf32>
    %3 = vector.extract_strided_slice %1 {offsets = [0, 0], sizes = [256, 40], strides = [1, 1]} : vector<320x40xbf16> to vector<256x40xbf16>
    %c0_2 = arith.constant 0 : index
    %c0_3 = arith.constant 0 : index
    %c0_4 = arith.constant 0 : index
    %4 = vector.load %arg3[%c0_2, %c0_3, %c0_4] : memref<3x40x256xbf16, #tpu.memory_space<vmem>>, vector<1x40x256xbf16>
    %5 = vector.shape_cast %4 : vector<1x40x256xbf16> to vector<40x256xbf16>
    %cst_5 = arith.constant dense<0.000000e+00> : vector<256x256xf32>
    %6 = tpu.matmul %3, %5, %cst_5 {dimension_numbers = #tpu.dot_dimension_numbers<[1], [0], [0], [1], [0, 0, 1, 1], [], []>} : vector<256x40xbf16>, vector<40x256xbf16>, vector<256x256xf32> -> vector<256x256xf32>
    %7 = arith.addf %2, %6 : vector<256x256xf32>
    %8 = vector.extract_strided_slice %1 {offsets = [32, 0], sizes = [256, 40], strides = [1, 1]} : vector<320x40xbf16> to vector<256x40xbf16>
    %c1 = arith.constant 1 : index
    %c0_6 = arith.constant 0 : index
    %c0_7 = arith.constant 0 : index
    %9 = vector.load %arg3[%c1, %c0_6, %c0_7] : memref<3x40x256xbf16, #tpu.memory_space<vmem>>, vector<1x40x256xbf16>
    %10 = vector.shape_cast %9 : vector<1x40x256xbf16> to vector<40x256xbf16>
    %cst_8 = arith.constant dense<0.000000e+00> : vector<256x256xf32>
    %11 = tpu.matmul %8, %10, %cst_8 {dimension_numbers = #tpu.dot_dimension_numbers<[1], [0], [0], [1], [0, 0, 1, 1], [], []>} : vector<256x40xbf16>, vector<40x256xbf16>, vector<256x256xf32> -> vector<256x256xf32>
    %12 = arith.addf %7, %11 : vector<256x256xf32>
    %13 = vector.extract_strided_slice %1 {offsets = [64, 0], sizes = [256, 40], strides = [1, 1]} : vector<320x40xbf16> to vector<256x40xbf16>
    %c2 = arith.constant 2 : index
    %c0_9 = arith.constant 0 : index
    %c0_10 = arith.constant 0 : index
    %14 = vector.load %arg3[%c2, %c0_9, %c0_10] : memref<3x40x256xbf16, #tpu.memory_space<vmem>>, vector<1x40x256xbf16>
    %15 = vector.shape_cast %14 : vector<1x40x256xbf16> to vector<40x256xbf16>
    %cst_11 = arith.constant dense<0.000000e+00> : vector<256x256xf32>
    %16 = tpu.matmul %13, %15, %cst_11 {dimension_numbers = #tpu.dot_dimension_numbers<[1], [0], [0], [1], [0, 0, 1, 1], [], []>} : vector<256x40xbf16>, vector<40x256xbf16>, vector<256x256xf32> -> vector<256x256xf32>
    %17 = arith.addf %12, %16 : vector<256x256xf32>
    %c0_12 = arith.constant 0 : index
    %c0_13 = arith.constant 0 : index
    %18 = vector.load %arg4[%c0_12, %c0_13] : memref<1x256xf32, #tpu.memory_space<vmem>>, vector<1x256xf32>
    %19 = vector.broadcast %18 : vector<1x256xf32> to vector<256x256xf32>
    %20 = arith.addf %17, %19 : vector<256x256xf32>
    %cst_14 = arith.constant 0.000000e+00 : f32
    %21 = vector.broadcast %cst_14 : f32 to vector<256x256xf32>
    %22 = arith.maximumf %20, %21 : vector<256x256xf32>
    %23 = arith.truncf %22 : vector<256x256xf32> to vector<256x256xbf16>
    %cst_15 = arith.constant 0.000000e+00 : f32
    %24 = vector.broadcast %cst_15 : f32 to vector<192x384xf32>
    %25 = vector.extract_strided_slice %23 {offsets = [0, 0], sizes = [192, 256], strides = [1, 1]} : vector<256x256xbf16> to vector<192x256xbf16>
    %c0_16 = arith.constant 0 : index
    %c0_17 = arith.constant 0 : index
    %c0_18 = arith.constant 0 : index
    %26 = vector.load %arg5[%c0_16, %c0_17, %c0_18] : memref<3x256x384xbf16, #tpu.memory_space<vmem>>, vector<1x256x384xbf16>
    %27 = vector.shape_cast %26 : vector<1x256x384xbf16> to vector<256x384xbf16>
    %cst_19 = arith.constant dense<0.000000e+00> : vector<192x384xf32>
    %28 = tpu.matmul %25, %27, %cst_19 {dimension_numbers = #tpu.dot_dimension_numbers<[1], [0], [0], [1], [0, 0, 1, 1], [], []>} : vector<192x256xbf16>, vector<256x384xbf16>, vector<192x384xf32> -> vector<192x384xf32>
    %29 = arith.addf %24, %28 : vector<192x384xf32>
    %30 = vector.extract_strided_slice %23 {offsets = [32, 0], sizes = [192, 256], strides = [1, 1]} : vector<256x256xbf16> to vector<192x256xbf16>
    %c1_20 = arith.constant 1 : index
    %c0_21 = arith.constant 0 : index
    %c0_22 = arith.constant 0 : index
    %31 = vector.load %arg5[%c1_20, %c0_21, %c0_22] : memref<3x256x384xbf16, #tpu.memory_space<vmem>>, vector<1x256x384xbf16>
    %32 = vector.shape_cast %31 : vector<1x256x384xbf16> to vector<256x384xbf16>
    %cst_23 = arith.constant dense<0.000000e+00> : vector<192x384xf32>
    %33 = tpu.matmul %30, %32, %cst_23 {dimension_numbers = #tpu.dot_dimension_numbers<[1], [0], [0], [1], [0, 0, 1, 1], [], []>} : vector<192x256xbf16>, vector<256x384xbf16>, vector<192x384xf32> -> vector<192x384xf32>
    %34 = arith.addf %29, %33 : vector<192x384xf32>
    %35 = vector.extract_strided_slice %23 {offsets = [64, 0], sizes = [192, 256], strides = [1, 1]} : vector<256x256xbf16> to vector<192x256xbf16>
    %c2_24 = arith.constant 2 : index
    %c0_25 = arith.constant 0 : index
    %c0_26 = arith.constant 0 : index
    %36 = vector.load %arg5[%c2_24, %c0_25, %c0_26] : memref<3x256x384xbf16, #tpu.memory_space<vmem>>, vector<1x256x384xbf16>
    %37 = vector.shape_cast %36 : vector<1x256x384xbf16> to vector<256x384xbf16>
    %cst_27 = arith.constant dense<0.000000e+00> : vector<192x384xf32>
    %38 = tpu.matmul %35, %37, %cst_27 {dimension_numbers = #tpu.dot_dimension_numbers<[1], [0], [0], [1], [0, 0, 1, 1], [], []>} : vector<192x256xbf16>, vector<256x384xbf16>, vector<192x384xf32> -> vector<192x384xf32>
    %39 = arith.addf %34, %38 : vector<192x384xf32>
    %c0_28 = arith.constant 0 : index
    %c0_29 = arith.constant 0 : index
    %40 = vector.load %arg6[%c0_28, %c0_29] : memref<1x384xf32, #tpu.memory_space<vmem>>, vector<1x384xf32>
    %41 = vector.broadcast %40 : vector<1x384xf32> to vector<192x384xf32>
    %42 = arith.addf %39, %41 : vector<192x384xf32>
    %cst_30 = arith.constant 0.000000e+00 : f32
    %43 = vector.broadcast %cst_30 : f32 to vector<192x384xf32>
    %44 = arith.maximumf %42, %43 : vector<192x384xf32>
    %45 = arith.truncf %44 : vector<192x384xf32> to vector<192x384xbf16>
    %cst_31 = arith.constant 0.000000e+00 : f32
    %46 = vector.broadcast %cst_31 : f32 to vector<32x128xf32>
    %47 = vector.extract_strided_slice %45 {offsets = [0, 0], sizes = [32, 384], strides = [1, 1]} : vector<192x384xbf16> to vector<32x384xbf16>
    %c0_32 = arith.constant 0 : index
    %c0_33 = arith.constant 0 : index
    %c0_34 = arith.constant 0 : index
    %48 = vector.load %arg7[%c0_32, %c0_33, %c0_34] : memref<6x384x128xbf16, #tpu.memory_space<vmem>>, vector<1x384x128xbf16>
    %49 = vector.shape_cast %48 : vector<1x384x128xbf16> to vector<384x128xbf16>
    %cst_35 = arith.constant dense<0.000000e+00> : vector<32x128xf32>
    %50 = tpu.matmul %47, %49, %cst_35 {dimension_numbers = #tpu.dot_dimension_numbers<[1], [0], [0], [1], [0, 0, 1, 1], [], []>} : vector<32x384xbf16>, vector<384x128xbf16>, vector<32x128xf32> -> vector<32x128xf32>
    %51 = arith.addf %46, %50 : vector<32x128xf32>
    %52 = vector.extract_strided_slice %45 {offsets = [32, 0], sizes = [32, 384], strides = [1, 1]} : vector<192x384xbf16> to vector<32x384xbf16>
    %c1_36 = arith.constant 1 : index
    %c0_37 = arith.constant 0 : index
    %c0_38 = arith.constant 0 : index
    %53 = vector.load %arg7[%c1_36, %c0_37, %c0_38] : memref<6x384x128xbf16, #tpu.memory_space<vmem>>, vector<1x384x128xbf16>
    %54 = vector.shape_cast %53 : vector<1x384x128xbf16> to vector<384x128xbf16>
    %cst_39 = arith.constant dense<0.000000e+00> : vector<32x128xf32>
    %55 = tpu.matmul %52, %54, %cst_39 {dimension_numbers = #tpu.dot_dimension_numbers<[1], [0], [0], [1], [0, 0, 1, 1], [], []>} : vector<32x384xbf16>, vector<384x128xbf16>, vector<32x128xf32> -> vector<32x128xf32>
    %56 = arith.addf %51, %55 : vector<32x128xf32>
    %57 = vector.extract_strided_slice %45 {offsets = [64, 0], sizes = [32, 384], strides = [1, 1]} : vector<192x384xbf16> to vector<32x384xbf16>
    %c2_40 = arith.constant 2 : index
    %c0_41 = arith.constant 0 : index
    %c0_42 = arith.constant 0 : index
    %58 = vector.load %arg7[%c2_40, %c0_41, %c0_42] : memref<6x384x128xbf16, #tpu.memory_space<vmem>>, vector<1x384x128xbf16>
    %59 = vector.shape_cast %58 : vector<1x384x128xbf16> to vector<384x128xbf16>
    %cst_43 = arith.constant dense<0.000000e+00> : vector<32x128xf32>
    %60 = tpu.matmul %57, %59, %cst_43 {dimension_numbers = #tpu.dot_dimension_numbers<[1], [0], [0], [1], [0, 0, 1, 1], [], []>} : vector<32x384xbf16>, vector<384x128xbf16>, vector<32x128xf32> -> vector<32x128xf32>
    %61 = arith.addf %56, %60 : vector<32x128xf32>
    %62 = vector.extract_strided_slice %45 {offsets = [96, 0], sizes = [32, 384], strides = [1, 1]} : vector<192x384xbf16> to vector<32x384xbf16>
    %c3 = arith.constant 3 : index
    %c0_44 = arith.constant 0 : index
    %c0_45 = arith.constant 0 : index
    %63 = vector.load %arg7[%c3, %c0_44, %c0_45] : memref<6x384x128xbf16, #tpu.memory_space<vmem>>, vector<1x384x128xbf16>
    %64 = vector.shape_cast %63 : vector<1x384x128xbf16> to vector<384x128xbf16>
    %cst_46 = arith.constant dense<0.000000e+00> : vector<32x128xf32>
    %65 = tpu.matmul %62, %64, %cst_46 {dimension_numbers = #tpu.dot_dimension_numbers<[1], [0], [0], [1], [0, 0, 1, 1], [], []>} : vector<32x384xbf16>, vector<384x128xbf16>, vector<32x128xf32> -> vector<32x128xf32>
    %66 = arith.addf %61, %65 : vector<32x128xf32>
    %67 = vector.extract_strided_slice %45 {offsets = [128, 0], sizes = [32, 384], strides = [1, 1]} : vector<192x384xbf16> to vector<32x384xbf16>
    %c4 = arith.constant 4 : index
    %c0_47 = arith.constant 0 : index
    %c0_48 = arith.constant 0 : index
    %68 = vector.load %arg7[%c4, %c0_47, %c0_48] : memref<6x384x128xbf16, #tpu.memory_space<vmem>>, vector<1x384x128xbf16>
    %69 = vector.shape_cast %68 : vector<1x384x128xbf16> to vector<384x128xbf16>
    %cst_49 = arith.constant dense<0.000000e+00> : vector<32x128xf32>
    %70 = tpu.matmul %67, %69, %cst_49 {dimension_numbers = #tpu.dot_dimension_numbers<[1], [0], [0], [1], [0, 0, 1, 1], [], []>} : vector<32x384xbf16>, vector<384x128xbf16>, vector<32x128xf32> -> vector<32x128xf32>
    %71 = arith.addf %66, %70 : vector<32x128xf32>
    %72 = vector.extract_strided_slice %45 {offsets = [160, 0], sizes = [32, 384], strides = [1, 1]} : vector<192x384xbf16> to vector<32x384xbf16>
    %c5 = arith.constant 5 : index
    %c0_50 = arith.constant 0 : index
    %c0_51 = arith.constant 0 : index
    %73 = vector.load %arg7[%c5, %c0_50, %c0_51] : memref<6x384x128xbf16, #tpu.memory_space<vmem>>, vector<1x384x128xbf16>
    %74 = vector.shape_cast %73 : vector<1x384x128xbf16> to vector<384x128xbf16>
    %cst_52 = arith.constant dense<0.000000e+00> : vector<32x128xf32>
    %75 = tpu.matmul %72, %74, %cst_52 {dimension_numbers = #tpu.dot_dimension_numbers<[1], [0], [0], [1], [0, 0, 1, 1], [], []>} : vector<32x384xbf16>, vector<384x128xbf16>, vector<32x128xf32> -> vector<32x128xf32>
    %76 = arith.addf %71, %75 : vector<32x128xf32>
    %c0_53 = arith.constant 0 : index
    %c0_54 = arith.constant 0 : index
    %77 = vector.load %arg8[%c0_53, %c0_54] : memref<1x128xf32, #tpu.memory_space<vmem>>, vector<1x128xf32>
    %78 = vector.broadcast %77 : vector<1x128xf32> to vector<32x128xf32>
    %79 = arith.addf %76, %78 : vector<32x128xf32>
    %cst_55 = arith.constant 0.000000e+00 : f32
    %80 = vector.broadcast %cst_55 : f32 to vector<32x128xf32>
    %81 = arith.maximumf %79, %80 : vector<32x128xf32>
    %82 = arith.truncf %81 : vector<32x128xf32> to vector<32x128xbf16>
    %c0_56 = arith.constant 0 : index
    %c0_57 = arith.constant 0 : index
    %83 = vector.load %arg2[%c0_56, %c0_57] : memref<32x8xbf16, #tpu.memory_space<vmem>>, vector<32x8xbf16>
    %c0_58 = arith.constant 0 : index
    %c0_59 = arith.constant 0 : index
    %84 = vector.load %arg9[%c0_58, %c0_59] : memref<8x64xbf16, #tpu.memory_space<vmem>>, vector<8x64xbf16>
    %cst_60 = arith.constant dense<0.000000e+00> : vector<32x64xf32>
    %85 = tpu.matmul %83, %84, %cst_60 {dimension_numbers = #tpu.dot_dimension_numbers<[1], [0], [0], [1], [0, 0, 1, 1], [], []>} : vector<32x8xbf16>, vector<8x64xbf16>, vector<32x64xf32> -> vector<32x64xf32>
    %c0_61 = arith.constant 0 : index
    %c0_62 = arith.constant 0 : index
    %86 = vector.load %arg10[%c0_61, %c0_62] : memref<1x64xf32, #tpu.memory_space<vmem>>, vector<1x64xf32>
    %87 = vector.broadcast %86 : vector<1x64xf32> to vector<32x64xf32>
    %88 = arith.addf %85, %87 : vector<32x64xf32>
    %cst_63 = arith.constant 0.000000e+00 : f32
    %89 = vector.broadcast %cst_63 : f32 to vector<32x64xf32>
    %90 = arith.maximumf %88, %89 : vector<32x64xf32>
    %91 = arith.truncf %90 : vector<32x64xf32> to vector<32x64xbf16>
    %c0_64 = arith.constant 0 : index
    %c0_65 = arith.constant 0 : index
    %92 = vector.load %arg11[%c0_64, %c0_65] : memref<128x128xbf16, #tpu.memory_space<vmem>>, vector<128x128xbf16>
    %cst_66 = arith.constant dense<0.000000e+00> : vector<32x128xf32>
    %93 = tpu.matmul %82, %92, %cst_66 {dimension_numbers = #tpu.dot_dimension_numbers<[1], [0], [0], [1], [0, 0, 1, 1], [], []>} : vector<32x128xbf16>, vector<128x128xbf16>, vector<32x128xf32> -> vector<32x128xf32>
    %c0_67 = arith.constant 0 : index
    %c0_68 = arith.constant 0 : index
    %94 = vector.load %arg12[%c0_67, %c0_68] : memref<64x128xbf16, #tpu.memory_space<vmem>>, vector<64x128xbf16>
    %cst_69 = arith.constant dense<0.000000e+00> : vector<32x128xf32>
    %95 = tpu.matmul %91, %94, %cst_69 {dimension_numbers = #tpu.dot_dimension_numbers<[1], [0], [0], [1], [0, 0, 1, 1], [], []>} : vector<32x64xbf16>, vector<64x128xbf16>, vector<32x128xf32> -> vector<32x128xf32>
    %96 = arith.addf %93, %95 : vector<32x128xf32>
    %c0_70 = arith.constant 0 : index
    %c0_71 = arith.constant 0 : index
    %97 = vector.load %arg13[%c0_70, %c0_71] : memref<1x128xf32, #tpu.memory_space<vmem>>, vector<1x128xf32>
    %98 = vector.broadcast %97 : vector<1x128xf32> to vector<32x128xf32>
    %99 = arith.addf %96, %98 : vector<32x128xf32>
    %cst_72 = arith.constant 0.000000e+00 : f32
    %100 = vector.broadcast %cst_72 : f32 to vector<32x128xf32>
    %101 = arith.maximumf %99, %100 : vector<32x128xf32>
    %102 = arith.truncf %101 : vector<32x128xf32> to vector<32x128xbf16>
    %c0_73 = arith.constant 0 : index
    %c0_74 = arith.constant 0 : index
    %103 = vector.load %arg14[%c0_73, %c0_74] : memref<128x128xbf16, #tpu.memory_space<vmem>>, vector<128x128xbf16>
    %cst_75 = arith.constant dense<0.000000e+00> : vector<32x128xf32>
    %104 = tpu.matmul %102, %103, %cst_75 {dimension_numbers = #tpu.dot_dimension_numbers<[1], [0], [0], [1], [0, 0, 1, 1], [], []>} : vector<32x128xbf16>, vector<128x128xbf16>, vector<32x128xf32> -> vector<32x128xf32>
    %c0_76 = arith.constant 0 : index
    %c0_77 = arith.constant 0 : index
    %105 = vector.load %arg15[%c0_76, %c0_77] : memref<1x128xf32, #tpu.memory_space<vmem>>, vector<1x128xf32>
    %106 = vector.broadcast %105 : vector<1x128xf32> to vector<32x128xf32>
    %107 = arith.addf %104, %106 : vector<32x128xf32>
    %c0_78 = arith.constant 0 : index
    %c0_79 = arith.constant 0 : index
    %108 = vector.load %arg16[%c0_78, %c0_79] : memref<32x128xf32, #tpu.memory_space<vmem>>, vector<32x128xf32>
    tpu.vector_store %arg16[%c0_78, %c0_79], %107 {strides = array<i32>} : memref<32x128xf32, #tpu.memory_space<vmem>>, vector<32x128xf32>,
    return
  }
  func.func @transform_0(%arg0: i32) -> (i32, i32, i32) {
    %c0_i32 = arith.constant 0 : i32
    %c0_i32_0 = arith.constant 0 : i32
    %c0_i32_1 = arith.constant 0 : i32
    return %c0_i32, %arg0, %c0_i32_0 : i32, i32, i32
  }
  func.func @transform_1(%arg0: i32) -> (i32, i32) {
    %c0_i32 = arith.constant 0 : i32
    %c0_i32_0 = arith.constant 0 : i32
    return %arg0, %c0_i32 : i32, i32
  }
  func.func @transform_2(%arg0: i32) -> (i32, i32, i32) {
    %c0_i32 = arith.constant 0 : i32
    %c0_i32_0 = arith.constant 0 : i32
    %c0_i32_1 = arith.constant 0 : i32
    %c0_i32_2 = arith.constant 0 : i32
    return %c0_i32, %c0_i32_0, %c0_i32_1 : i32, i32, i32
  }
  func.func @transform_3(%arg0: i32) -> (i32, i32) {
    %c0_i32 = arith.constant 0 : i32
    %c0_i32_0 = arith.constant 0 : i32
    %c0_i32_1 = arith.constant 0 : i32
    return %c0_i32, %c0_i32_0 : i32, i32
  }
  func.func @transform_4(%arg0: i32) -> (i32, i32, i32) {
    %c0_i32 = arith.constant 0 : i32
    %c0_i32_0 = arith.constant 0 : i32
    %c0_i32_1 = arith.constant 0 : i32
    %c0_i32_2 = arith.constant 0 : i32
    return %c0_i32, %c0_i32_0, %c0_i32_1 : i32, i32, i32
  }
  func.func @transform_5(%arg0: i32) -> (i32, i32) {
    %c0_i32 = arith.constant 0 : i32
    %c0_i32_0 = arith.constant 0 : i32
    %c0_i32_1 = arith.constant 0 : i32
    return %c0_i32, %c0_i32_0 : i32, i32
  }
  func.func @transform_6(%arg0: i32) -> (i32, i32, i32) {
    %c0_i32 = arith.constant 0 : i32
    %c0_i32_0 = arith.constant 0 : i32
    %c0_i32_1 = arith.constant 0 : i32
    %c0_i32_2 = arith.constant 0 : i32
    return %c0_i32, %c0_i32_0, %c0_i32_1 : i32, i32, i32
  }
  func.func @transform_7(%arg0: i32) -> (i32, i32) {
    %c0_i32 = arith.constant 0 : i32
    %c0_i32_0 = arith.constant 0 : i32
    %c0_i32_1 = arith.constant 0 : i32
    return %c0_i32, %c0_i32_0 : i32, i32
  }
  func.func @transform_8(%arg0: i32) -> (i32, i32) {
    %c0_i32 = arith.constant 0 : i32
    %c0_i32_0 = arith.constant 0 : i32
    %c0_i32_1 = arith.constant 0 : i32
    return %c0_i32, %c0_i32_0 : i32, i32
  }
  func.func @transform_9(%arg0: i32) -> (i32, i32) {
    %c0_i32 = arith.constant 0 : i32
    %c0_i32_0 = arith.constant 0 : i32
    %c0_i32_1 = arith.constant 0 : i32
    return %c0_i32, %c0_i32_0 : i32, i32
  }
  func.func @transform_10(%arg0: i32) -> (i32, i32) {
    %c0_i32 = arith.constant 0 : i32
    %c0_i32_0 = arith.constant 0 : i32
    %c0_i32_1 = arith.constant 0 : i32
    return %c0_i32, %c0_i32_0 : i32, i32
  }
  func.func @transform_11(%arg0: i32) -> (i32, i32) {
    %c0_i32 = arith.constant 0 : i32
    %c0_i32_0 = arith.constant 0 : i32
    %c0_i32_1 = arith.constant 0 : i32
    return %c0_i32, %c0_i32_0 : i32, i32
  }
  func.func @transform_12(%arg0: i32) -> (i32, i32) {
    %c0_i32 = arith.constant 0 : i32
    %c0_i32_0 = arith.constant 0 : i32
    %c0_i32_1 = arith.constant 0 : i32
    return %c0_i32, %c0_i32_0 : i32, i32
  }
  func.func @transform_13(%arg0: i32) -> (i32, i32) {
    %c0_i32 = arith.constant 0 : i32
    %c0_i32_0 = arith.constant 0 : i32
    %c0_i32_1 = arith.constant 0 : i32
    return %c0_i32, %c0_i32_0 : i32, i32
  }
  func.func @transform_14(%arg0: i32) -> (i32, i32) {
    %c0_i32 = arith.constant 0 : i32
    %c0_i32_0 = arith.constant 0 : i32
    %c0_i32_1 = arith.constant 0 : i32
    return %c0_i32, %c0_i32_0 : i32, i32
  }
  func.func @transform_15(%arg0: i32) -> (i32, i32) {
    %c0_i32 = arith.constant 0 : i32
    %c0_i32_0 = arith.constant 0 : i32
    return %arg0, %c0_i32 : i32, i32
  }
}

</mosaic_0001>

<bundles_post_ra>
// kernel: dqn_forward.1
= control target key start
LH: loop header
LB: loop body
LE: loop exit
PB: predicated region body
PF: predicated region fallthrough
CT: control target
= control target key end

     0   :  { %s11335_s0 = inlined_call_operand.vmem [shape: bf16[10,64,40], index: 0, kind: input, shape index: {}]   ;;  %s11336_s1 = inlined_call_operand.vmem [shape: bf16[64,8], index: 1, kind: input, shape index: {}]   ;;  %s11337_s2 = inlined_call_operand.vmem [shape: bf16[3,40,256], index: 2, kind: input, shape index: {}]   ;;  %s11338_s3 = inlined_call_operand.vmem [shape: f32[1,256], index: 3, kind: input, shape index: {}]   ;;  %s11339_s4 = inlined_call_operand.vmem [shape: bf16[3,256,384], index: 4, kind: input, shape index: {}]   ;;  %s11340_s5 = inlined_call_operand.vmem [shape: f32[1,384], index: 5, kind: input, shape index: {}]   ;;  %s11341_s6 = inlined_call_operand.hbm [shape: bf16[6,384,128], index: 6, kind: input, shape index: {}]   ;;  %s11342_s7 = inlined_call_operand.vmem [shape: f32[1,128], index: 7, kind: input, shape index: {}]   ;;  %s11343_s8 = inlined_call_operand.vmem [shape: bf16[8,64], index: 8, kind: input, shape index: {}]   ;;  %s11344_s9 = inlined_call_operand.vmem [shape: f32[1,64], index: 9, kind: input, shape index: {}]   ;;  %s11345_s10 = inlined_call_operand.vmem [shape: bf16[128,128], index: 10, kind: input, shape index: {}]   ;;  %s11346_s11 = inlined_call_operand.vmem [shape: bf16[64,128], index: 11, kind: input, shape index: {}]   ;;  %s11347_s12 = inlined_call_operand.vmem [shape: f32[1,128], index: 12, kind: input, shape index: {}]   ;;  %s11348_s13 = inlined_call_operand.vmem [shape: bf16[128,128], index: 13, kind: input, shape index: {}]   ;;  %s11349_s14 = inlined_call_operand.vmem [shape: f32[1,128], index: 14, kind: input, shape index: {}]   ;;  %s11350_s15 = inlined_call_operand.vmem [shape: f32[64,128], index: 15, kind: output, shape index: {}]  }
   0x1   :  { %11359 = sst [smem:[#allocation72_spill]] %s11341_s6 }
   0x2   :  { %20 = vsyncpa [#allocation4], 0  ;;  %s8711_s18 = smov 0   ;;  %s8713_s19 = smov 0  }
   0x3   :  { %s8715_s20 = smov 0  }
   0x4 LB: > { %s11351_s21 = sadd.s32 4294967295, %s8626_s20   ;;  %s8728_s22 = sadd.s32 1, %s8626_s20   ;;  %s8626_s20 = sphi %s8715_s20, %s11561_s20   ;;  %s8622_s19 = sphi %s8713_s19, %s11564_s19   ;;  %s8618_s18 = sphi %s8711_s18, %s11563_s18  }
   0x5   : > { %11360 = sst [smem:[#allocation6_spill]] %s8728_s22  ;;  %s30_s23 = ssub.s32 %s8626_s20, %s8728_s22 }
   0x6   : > { %s33_s24 = sadd.s32 1, %s8622_s19  ;;  %p31_p0 = scmp.eq.s32.totalorder %s30_s23, 0 }
   0x7   : > { %p40_p1 = scmp.ne.s32.totalorder %s8622_s19, %s8618_s18  ;;  %p41_p2 = scmp.eq.s32.totalorder %s8626_s20, 0 }
   0x8   : > { %p6558_p3 = scmp.ge.s32.totalorder %s8626_s20, 1  ;;  %p382_p5 = scmp.lt.s32.totalorder %s8626_s20, 3 }
   0x9   : > { %s8738_s25 = scalar_select %p31_p0, %s8622_s19, %s33_s24  }
   0xa   : > { %p8740_p4 = por %p41_p2, %p40_p1  ;;  %p8747_p6 = scmp.eq.s32.totalorder %s11351_s21, 0 }
   0xb   : > { %11361 = sst [smem:[#allocation7_spill]] %s8738_s25  ;;  %p8751_p7 = pnand %p6558_p3, %p382_p5 }
   0xc   : > { %s11365_s6 = sld [smem:[#allocation72_spill]]  ;;  %s8628_s17 = smov [#allocation3]  }
   0xd   : > { %p8532_p8 = pneg %p8751_p7  ;;  %s407_s23 = sshll.u32 %s8628_s17, 4  ;;  %s408_s23 = int_to_ptr.vmem [resolvable:$true] %s407_s23 }
   0xe   : > { %s8629_s24 = smov 64   ;;  %s8630_s21 = smov 4  }
   0xf   : > { %p8533_p9 = pnand %p8747_p6, %p8532_p8  ;;  %p6560_p10 = scmp.ge.s32.totalorder %s8626_s20, 2 }
  0x11   : > { %441 = sbr.rel (%p6560_p10) target bundleno = 46 (0x2e), region = 68 }
  0x12   : > { %s405_s16 = sshll.u32 %s11365_s6, 4  ;;  %s406_s16 = int_to_ptr.hbm [resolvable:$true] %s405_s16 }
  0x13   : > { %8535 = dma.hbm_to_vmem [thread:$0]  (!%p8533_p9), %s406_s16, 18432, %s408_s23, [#allocation4], %s8629_s24, %s8629_s24, %s8630_s21  }
  0x16   : > { %444 = sbr.rel (!%p8740_p4) target bundleno = 46 (0x2e), region = 72  ;;  %s446_s29 = sand.u32 (%p8740_p4), 1, %s8622_s19  }
  0x17   : > { %s8177_s30 = sshll.u32 (%p8740_p4), %s8626_s20, 4  ;;  %s8526_s6 = smul.u32 (%p8740_p4), 160, %s446_s29 }
  0x18   : > { %s8770_s17 = scalar_lea.vmem (%p8740_p4), %s11335_s0, %s8177_s30 }
  0x19   : > { %v468_v0 = vld [vmem:[%s8770_s17] sm:$0xff] (%p8740_p4)   ;;  %v472_v1 = vld [vmem:[%s8770_s17 + $0x8] sm:$0xff] (%p8740_p4)   ;;  %s8775_s21 = scalar_lea.vmem (%p8740_p4), [#allocation2], %s8526_s6 }
  0x1a   : > { %v476_v2 = vld [vmem:[%s8770_s17 + $0x20] sm:$0xff] (%p8740_p4)   ;;  %469 = vst [vmem:[%s8775_s21] sm:$0xff] (%p8740_p4), %v468_v0   ;;  %v480_v3 = vld [vmem:[%s8770_s17 + $0x28] sm:$0xff] (%p8740_p4)  }
  0x1b   : > { %473 = vst [vmem:[%s8775_s21 + $0x8] sm:$0xff] %v472_v1   ;;  %v484_v4 = vld [vmem:[%s8770_s17 + $0x40] sm:$0xff]   ;;  %v488_v5 = vld [vmem:[%s8770_s17 + $0x48] sm:$0xff]  }
  0x1c   : > { %477 = vst [vmem:[%s8775_s21 + $0x10] sm:$0xff] %v476_v2   ;;  %v492_v6 = vld [vmem:[%s8770_s17 + $0x60] sm:$0xff]   ;;  %v496_v7 = vld [vmem:[%s8770_s17 + $0x68] sm:$0xff]  }
  0x1d   : > { %481 = vst [vmem:[%s8775_s21 + $0x18] sm:$0xff] %v480_v3   ;;  %v500_v8 = vld [vmem:[%s8770_s17 + $0x80] sm:$0xff]   ;;  %v504_v9 = vld [vmem:[%s8770_s17 + $0x88] sm:$0xff]  }
  0x1e   : > { %485 = vst [vmem:[%s8775_s21 + $0x20] sm:$0xff] %v484_v4   ;;  %v508_v10 = vld [vmem:[%s8770_s17 + $0xa0] sm:$0xff]   ;;  %v512_v11 = vld [vmem:[%s8770_s17 + $0xa8] sm:$0xff]  }
  0x1f   : > { %489 = vst [vmem:[%s8775_s21 + $0x28] sm:$0xff] %v488_v5   ;;  %v516_v12 = vld [vmem:[%s8770_s17 + $0xc0] sm:$0xff]   ;;  %v520_v13 = vld [vmem:[%s8770_s17 + $0xc8] sm:$0xff]  }
  0x20   : > { %493 = vst [vmem:[%s8775_s21 + $0x30] sm:$0xff] %v492_v6   ;;  %v524_v14 = vld [vmem:[%s8770_s17 + $0xe0] sm:$0xff]   ;;  %v528_v15 = vld [vmem:[%s8770_s17 + $0xe8] sm:$0xff]  }
  0x21   : > { %497 = vst [vmem:[%s8775_s21 + $0x38] sm:$0xff] %v496_v7   ;;  %v532_v16 = vld [vmem:[%s8770_s17 + $0x100] sm:$0xff]   ;;  %v536_v17 = vld [vmem:[%s8770_s17 + $0x108] sm:$0xff]  }
  0x22   : > { %501 = vst [vmem:[%s8775_s21 + $0x40] sm:$0xff] %v500_v8   ;;  %v540_v18 = vld [vmem:[%s8770_s17 + $0x120] sm:$0xff]   ;;  %v544_v19 = vld [vmem:[%s8770_s17 + $0x128] sm:$0xff]  }
  0x23   : > { %505 = vst [vmem:[%s8775_s21 + $0x48] sm:$0xff] %v504_v9  }
  0x24   : > { %509 = vst [vmem:[%s8775_s21 + $0x50] sm:$0xff] %v508_v10  }
  0x25   : > { %513 = vst [vmem:[%s8775_s21 + $0x58] sm:$0xff] %v512_v11  }
  0x26   : > { %517 = vst [vmem:[%s8775_s21 + $0x60] sm:$0xff] %v516_v12  }
  0x27   : > { %521 = vst [vmem:[%s8775_s21 + $0x68] sm:$0xff] %v520_v13  }
  0x28   : > { %525 = vst [vmem:[%s8775_s21 + $0x70] sm:$0xff] %v524_v14  }
  0x29   : > { %529 = vst [vmem:[%s8775_s21 + $0x78] sm:$0xff] %v528_v15  }
  0x2a   : > { %533 = vst [vmem:[%s8775_s21 + $0x80] sm:$0xff] %v532_v16  }
  0x2b   : > { %537 = vst [vmem:[%s8775_s21 + $0x88] sm:$0xff] %v536_v17  }
  0x2c   : > { %541 = vst [vmem:[%s8775_s21 + $0x90] sm:$0xff] %v540_v18  }
  0x2d   : > { %545 = vst [vmem:[%s8775_s21 + $0x98] sm:$0xff] %v544_v19  }
  0x2e PF: > { %663 = sbr.rel (%p8751_p7) target bundleno = 2059 (0x80b), region = 117 }
  0x33   : > { %s666_s6 = sand.u32 1, %s8618_s18  }
  0x34   : > { %s8527_s22 = smul.u32 160, %s666_s6 }
  0x36   : > { %s8817_s25 = scalar_lea.vmem [#allocation2], %s8527_s22 }
  0x37   : > { %8613 = dma.done.wait (%p8747_p6), [#allocation4], 18432  }
  0x38   : > { %8615 = vsyncadd (%p8747_p6), [#allocation4], 4294948864  ;;  %v6573_v20 = vld [vmem:[%s11337_s2 + $0x48] sm:$0xff]  ;;  %vm942_vm0 = vcmask 1043456   ;;  %v6648_v25 = vld [vmem:[%s11337_s2 + $0x38] sm:$0xf] }
  0x39   : > { %v881_v21 = vunpack.c.l.b16 %v6573_v20  ;;  %v882_v22 = vunpack.c.h.b16 %v6573_v20  ;;  %v8205_v26 = vld [vmem:[%s11337_s2 + $0x3c] sm:$0xf0]  ;;  %v6746_v27 = vld [vmem:[%s11337_s2 + $0x70] sm:$0xff]  ;;  %v8204_v28 = vld [vmem:[%s11337_s2 + $0x3c] sm:$0xf]  ;;  %vm893_vm1 = vcmask 326656  }
  0x3a   : > { %v6650_v29 = vld [vmem:[%s11337_s2 + $0x40] sm:$0xf0]  ;;  %v1381_v32 = vunpack.c.l.b16 %v6746_v27  ;;  %v1382_v33 = vunpack.c.h.b16 %v6746_v27  ;;  %v6649_v35 = vor.u32 %v8205_v26, %v6648_v25  ;;  %v6640_v37 = vld [vmem:[%s11337_s2 + $0x28] sm:$0xf]  ;;  %v8203_v38 = vld [vmem:[%s11337_s2 + $0x2c] sm:$0xf0] }
  0x3b   : > { %v887_v23 = vpack.c.b16 %v881_v21, %v881_v21  ;;  %v888_v24 = vpack.c.b16 %v882_v22, %v882_v22  ;;  %v781_v34 = vld [vmem:[%s11337_s2 + $0x20] sm:$0xff]  ;;  %v6653_v36 = vor.u32 %v8204_v28, %v6650_v29  ;;  %v8202_v39 = vld [vmem:[%s11337_s2 + $0x2c] sm:$0xf]  ;;  %v6642_v40 = vld [vmem:[%s11337_s2 + $0x30] sm:$0xf0]  ;;  %v6641_v45 = vor.u32 %v8203_v38, %v6640_v37 }
  0x3c   : > { %v1150_v41 = vunpack.c.l.b16 %v781_v34  ;;  %v1151_v42 = vunpack.c.h.b16 %v781_v34  ;;  %v1387_v43 = vpack.c.b16 %v1381_v32, %v1381_v32  ;;  %v1388_v44 = vpack.c.b16 %v1382_v33, %v1382_v33  ;;  %v8180_v49 = vld [vmem:[%s8817_s25 + $0x10] sm:$0xff]  ;;  %v8195_v50 = vld [vmem:[%s8817_s25 + $0x88] sm:$0xff]  ;;  %v8201_v54 = vld [vmem:[%s11337_s2 + $0x14] sm:$0xf0] }
  0x3d   : > { %v944_v30 = vsel %vm942_vm0, %v887_v23, 0  ;;  %v947_v31 = vsel %vm942_vm0, %v888_v24, 0  ;;  %v6645_v46 = vor.u32 %v8202_v39, %v6642_v40  ;;  %v6704_v53 = vld [vmem:[%s11337_s2 + $0x10] sm:$0xf]  ;;  %v8200_v57 = vld [vmem:[%s11337_s2 + $0x14] sm:$0xf] }
  0x3e   : > { %954 = vmatpush.bf16.msra.mxu0 %v944_v30  ;;  %8520 = vmatpush.bf16.msra.mxu2 %v944_v30  ;;  %v1156_v47 = vpack.c.b16 %v1150_v41, %v1150_v41  ;;  %v1157_v48 = vpack.c.b16 %v1151_v42, %v1151_v42  ;;  %v1400_v51 = vsel %vm942_vm0, %v1387_v43, 0  ;;  %v1403_v52 = vsel %vm942_vm0, %v1388_v44, 0  ;;  %v6706_v58 = vld [vmem:[%s11337_s2 + $0x18] sm:$0xf0]  ;;  %v6696_v61 = vld [vmem:[%s11337_s2] sm:$0xf] }
  0x3f   : > { %1043 = vmatpush.bf16.msra.mxu1 %v947_v31  ;;  %8523 = vmatpush.bf16.msra.mxu3 %v947_v31  ;;  %v6705_v59 = vor.u32 %v8201_v54, %v6704_v53  ;;  %v6709_v60 = vor.u32 %v8200_v57, %v6706_v58  ;;  %v8199_v62 = vld [vmem:[%s11337_s2 + $0x4] sm:$0xf0]  ;;  %v8198_v63 = vld [vmem:[%s11337_s2 + $0x4] sm:$0xf]  ;;  %v6698_v0 = vld [vmem:[%s11337_s2 + $0x8] sm:$0xf0] }
  0x40   : > { %v1169_v55 = vsel %vm942_vm0, %v1156_v47, 0  ;;  %v1172_v56 = vsel %vm942_vm0, %v1157_v48, 0  ;;  %v6697_v1 = vor.u32 %v8199_v62, %v6696_v61  ;;  %v6701_v2 = vor.u32 %v8198_v63, %v6698_v0  ;;  %v8181_v3 = vld [vmem:[%s8817_s25 + $0x18] sm:$0xff]  ;;  %v8178_v4 = vld [vmem:[%s8817_s25] sm:$0xff]  ;;  %v8179_v6 = vld [vmem:[%s8817_s25 + $0x8] sm:$0xff] }
  0x41   : > { %v8899_v5 = vld [vmem:[%s8817_s25 + $0x20] sm:$0xff]  ;;  %v8909_v7 = vld [vmem:[%s8817_s25 + $0x28] sm:$0xff]  ;;  %v8930_v14 = vld [vmem:[%s8817_s25 + $0x30] sm:$0xff]  ;;  %vm6189_vm2 = vcmask 64512   ;;  %vm6272_vm3 = vcmask 523264  }
  0x42   : > { %955 = vmatpush.bf16.msra.mxu0 %v6649_v35  ;;  %8521 = vmatpush.bf16.msra.mxu2 %v6649_v35  ;;  %v6765_v8 = vld [vmem:[%s11337_s2 + $0x60] sm:$0xf]  ;;  %v8209_v9 = vld [vmem:[%s11337_s2 + $0x64] sm:$0xf0]  ;;  %v8208_v10 = vld [vmem:[%s11337_s2 + $0x64] sm:$0xf] }
  0x43   : > { %1044 = vmatpush.bf16.msra.mxu1 %v6653_v36  ;;  %8524 = vmatpush.bf16.msra.mxu3 %v6653_v36  ;;  %v6766_v11 = vor.u32 %v8209_v9, %v6765_v8  ;;  %v6767_v12 = vld [vmem:[%s11337_s2 + $0x68] sm:$0xf0]  ;;  %v8939_v15 = vld [vmem:[%s8817_s25 + $0x38] sm:$0xff]  ;;  %v8950_v16 = vld [vmem:[%s8817_s25 + $0x40] sm:$0xff] }
  0x44   : > { %v6770_v13 = vor.u32 %v8208_v10, %v6767_v12  ;;  %v8961_v17 = vld [vmem:[%s8817_s25 + $0x48] sm:$0xff]  ;;  %v8972_v18 = vld [vmem:[%s8817_s25 + $0x50] sm:$0xff]  ;;  %v8207_v22 = vld [vmem:[%s11337_s2 + $0x54] sm:$0xf0] }
  0x45   : > { %v6757_v21 = vld [vmem:[%s11337_s2 + $0x50] sm:$0xf]  ;;  %v8206_v23 = vld [vmem:[%s11337_s2 + $0x54] sm:$0xf]  ;;  %v6759_v25 = vld [vmem:[%s11337_s2 + $0x58] sm:$0xf0] }
  0x46   : > { %956 = vmatpush.bf16.msra.mxu0 %v6641_v45  ;;  %8522 = vmatpush.bf16.msra.mxu2 %v6641_v45  ;;  %v6758_v24 = vor.u32 %v8207_v22, %v6757_v21  ;;  %v6953_v26 = vld [vmem:[%s11339_s4 + $0x228] sm:$0xf]  ;;  %v8280_v27 = vld [vmem:[%s11339_s4 + $0x230] sm:$0xf0]  ;;  %v6762_v29 = vor.u32 %v8206_v23, %v6759_v25  ;;  %v9015_v39 = vld [vmem:[%s8817_s25 + $0x58] sm:$0xff] }
  0x47   : > { %1045 = vmatpush.bf16.msra.mxu1 %v6645_v46  ;;  %8525 = vmatpush.bf16.msra.mxu3 %v6645_v46  ;;  %v6954_v30 = vor.u32 %v8280_v27, %v6953_v26  ;;  %v7049_v34 = vld [vmem:[%s11339_s4 + $0x2e8] sm:$0xf]  ;;  %v8304_v35 = vld [vmem:[%s11339_s4 + $0x2f0] sm:$0xf0]  ;;  %v7037_v0 = vld [vmem:[%s11339_s4 + $0x2d0] sm:$0xf] }
  0x48   : > { %v7050_v36 = vor.u32 %v8304_v35, %v7049_v34  ;;  %v9063_v8 = vld [vmem:[%s8817_s25 + $0x68] sm:$0xff]  ;;  %v9082_v26 = vld [vmem:[%s8817_s25 + $0x70] sm:$0xff] }
  0x49   : > { %6654 = vmatmul.msk.bf16.vlgmr.msra.gmra.mxu0 %vm893_vm1, %v8180_v49  ;;  %6669 = vmatmul.msk.bf16.vlgmr.msra.gmra.mxu2 %vm893_vm1, %v8195_v50 }
  0x4a   : > { %1410 = vmatpush.bf16.msrb.mxu0 %v1400_v51  ;;  %6670 = vmatmul.msk.bf16.vlgmr.msra.gmra.mxu1 %vm893_vm1, %v8180_v49  ;;  %v9032_v51 = vld [vmem:[%s8817_s25 + $0x60] sm:$0xff] }
  0x4b   : > { %1499 = vmatpush.bf16.msrb.mxu1 %v1403_v52  ;;  %6685 = vmatmul.msk.bf16.vlgmr.msra.gmra.mxu3 %vm893_vm1, %v8195_v50 }
  0x4c   : > { %1179 = vmatpush.bf16.msrb.mxu2 %v1169_v55  ;;  %1268 = vmatpush.bf16.msrb.mxu3 %v1172_v56  ;;  %v6941_v55 = vld [vmem:[%s11339_s4 + $0x210] sm:$0xf]  ;;  %v8277_v56 = vld [vmem:[%s11339_s4 + $0x218] sm:$0xf0] }
  0x4d   : > { %v6942_v57 = vor.u32 %v8277_v56, %v6941_v55  ;;  %v9113_v55 = vld [vmem:[%s8817_s25 + $0x78] sm:$0xff] }
  0x4e   : > { %1411 = vmatpush.bf16.msrb.mxu0 %v6766_v11 }
  0x4f   : > { %1500 = vmatpush.bf16.msrb.mxu1 %v6770_v13 }
  0x50   : > { %1180 = vmatpush.bf16.msrb.mxu2 %v6705_v59  ;;  %1269 = vmatpush.bf16.msrb.mxu3 %v6709_v60 }
  0x52   : > { %1412 = vmatpush.bf16.msrb.mxu0 %v6758_v24 }
  0x53   : > { %1501 = vmatpush.bf16.msrb.mxu1 %v6762_v29 }
  0x54   : > { %1181 = vmatpush.bf16.msrb.mxu2 %v6697_v1  ;;  %1270 = vmatpush.bf16.msrb.mxu3 %v6701_v2  ;;  %v8301_v1 = vld [vmem:[%s11339_s4 + $0x2d8] sm:$0xf0] }
  0x55   : > { %v7038_v2 = vor.u32 %v8301_v1, %v7037_v0 }
  0x58   : > { %2318 = vmatpush.bf16.msra.mxu2 %v6954_v30  ;;  %2387 = vmatpush.bf16.msra.mxu3 %v7050_v36 }
  0x59   : > { %6655 = vmatmul.msk.bf16.gmra.mxu0 %vm893_vm1, %v8181_v3  ;;  %6710 = vmatmul.msk.bf16.vlgmr.msrb.gmra.mxu2 %vm893_vm1, %v8178_v4 }
  0x5a   : > { %6671 = vmatmul.msk.bf16.gmra.mxu1 %vm893_vm1, %v8181_v3 }
  0x5b   : > { %6726 = vmatmul.msk.bf16.vlgmr.msrb.gmra.mxu3 %vm893_vm1, %v8178_v4 }
  0x5c   : > { %2319 = vmatpush.bf16.msra.mxu2 %v6942_v57  ;;  %2388 = vmatpush.bf16.msra.mxu3 %v7038_v2 }
  0x69   : > { %6656 = vmatmul.msk.bf16.gmra.mxu0 %vm893_vm1, %v8899_v5  ;;  %6711 = vmatmul.msk.bf16.gmra.mxu2 %vm893_vm1, %v8179_v6 }
  0x6a   : > { %6672 = vmatmul.msk.bf16.gmra.mxu1 %vm893_vm1, %v8899_v5 }
  0x6b   : > { %6727 = vmatmul.msk.bf16.gmra.mxu3 %vm893_vm1, %v8179_v6 }
  0x79   : > { %6657 = vmatmul.msk.bf16.gmra.mxu0 %vm893_vm1, %v8909_v7  ;;  %6712 = vmatmul.msk.bf16.gmra.mxu2 %vm893_vm1, %v8180_v49 }
  0x7a   : > { %6673 = vmatmul.msk.bf16.gmra.mxu1 %vm893_vm1, %v8909_v7 }
  0x7b   : > { %6728 = vmatmul.msk.bf16.gmra.mxu3 %vm893_vm1, %v8180_v49 }
  0x89   : > { %6658 = vmatmul.msk.bf16.gmra.mxu0 %vm893_vm1, %v8930_v14  ;;  %6713 = vmatmul.msk.bf16.gmra.mxu2 %vm893_vm1, %v8181_v3 }
  0x8a   : > { %6674 = vmatmul.msk.bf16.gmra.mxu1 %vm893_vm1, %v8930_v14 }
  0x8b   : > { %6729 = vmatmul.msk.bf16.gmra.mxu3 %vm893_vm1, %v8181_v3 }
  0x99   : > { %6659 = vmatmul.msk.bf16.gmra.mxu0 %vm893_vm1, %v8939_v15  ;;  %6714 = vmatmul.msk.bf16.gmra.mxu2 %vm893_vm1, %v8899_v5 }
  0x9a   : > { %6675 = vmatmul.msk.bf16.gmra.mxu1 %vm893_vm1, %v8939_v15 }
  0x9b   : > { %6730 = vmatmul.msk.bf16.gmra.mxu3 %vm893_vm1, %v8899_v5 }
  0xa9   : > { %6660 = vmatmul.msk.bf16.gmra.mxu0 %vm893_vm1, %v8950_v16  ;;  %6715 = vmatmul.msk.bf16.gmra.mxu2 %vm893_vm1, %v8909_v7 }
  0xaa   : > { %6676 = vmatmul.msk.bf16.gmra.mxu1 %vm893_vm1, %v8950_v16 }
  0xab   : > { %6731 = vmatmul.msk.bf16.gmra.mxu3 %vm893_vm1, %v8909_v7 }
  0xb9   : > { %6661 = vmatmul.msk.bf16.gmra.mxu0 %vm893_vm1, %v8961_v17  ;;  %6716 = vmatmul.msk.bf16.gmra.mxu2 %vm893_vm1, %v8930_v14 }
  0xba   : > { %6677 = vmatmul.msk.bf16.gmra.mxu1 %vm893_vm1, %v8961_v17 }
  0xbb   : > { %6732 = vmatmul.msk.bf16.gmra.mxu3 %vm893_vm1, %v8930_v14 }
  0xc6   : > { %v958_v19 = vpop.f32.mrf.mxu0 }
  0xc7   : > { %v1047_v20 = vpop.f32.mrf.mxu1 }
  0xc9   : > { %6662 = vmatmul.msk.bf16.gmra.mxu0 %vm893_vm1, %v8972_v18  ;;  %6717 = vmatmul.msk.bf16.gmra.mxu2 %vm893_vm1, %v8939_v15 }
  0xca   : > { %6678 = vmatmul.msk.bf16.gmra.mxu1 %vm893_vm1, %v8972_v18 }
  0xcb   : > { %6733 = vmatmul.msk.bf16.gmra.mxu3 %vm893_vm1, %v8939_v15 }
  0xcc   : > { %v9000_v28 = vpop.f32.mrf.mxu2 }
  0xcd   : > { %11366 = vst [vmem:[#allocation8_spill] sm:$0xff] %v9000_v28 }
  0xce   : > { %v9002_v31 = vpop.f32.mrf.mxu3  ;;  %v960_v32 = vpop.f32.mrf.mxu0 }
  0xcf   : > { %11367 = vst [vmem:[#allocation9_spill] sm:$0xff] %v9002_v31  ;;  %v1049_v33 = vpop.f32.mrf.mxu1 }
  0xd4   : > { %v9010_v37 = vpop.f32.mrf.mxu2 }
  0xd5   : > { %11368 = vst [vmem:[#allocation10_spill] sm:$0xff] %v9010_v37  ;;  %v8289_v37 = vld [vmem:[%s11339_s4 + $0x278] sm:$0xf0] }
  0xd6   : > { %v9012_v38 = vpop.f32.mrf.mxu3  ;;  %v963_v40 = vpop.f32.mrf.mxu0 }
  0xd7   : > { %11369 = vst [vmem:[#allocation11_spill] sm:$0xff] %v9012_v38  ;;  %v1052_v41 = vpop.f32.mrf.mxu1 }
  0xd9   : > { %6663 = vmatmul.msk.bf16.gmra.mxu0 %vm893_vm1, %v9015_v39  ;;  %6718 = vmatmul.msk.bf16.gmra.mxu2 %vm893_vm1, %v8950_v16 }
  0xda   : > { %6679 = vmatmul.msk.bf16.gmra.mxu1 %vm893_vm1, %v9015_v39 }
  0xdb   : > { %6734 = vmatmul.msk.bf16.gmra.mxu3 %vm893_vm1, %v8950_v16 }
  0xdc   : > { %v1183_v42 = vpop.f32.mrf.mxu2 }
  0xdd   : > { %v9025_v43 = vadd.f32 %v1183_v42, %v958_v19 }
  0xde   : > { %v1272_v44 = vpop.f32.mrf.mxu3  ;;  %v965_v46 = vpop.f32.mrf.mxu0 }
  0xdf   : > { %v9027_v45 = vadd.f32 %v1272_v44, %v1047_v20  ;;  %v1054_v47 = vpop.f32.mrf.mxu1 }
  0xe4   : > { %v1185_v48 = vpop.f32.mrf.mxu2 }
  0xe5   : > { %v9029_v49 = vadd.f32 %v1185_v48, %v960_v32  ;;  %v6929_v32 = vld [vmem:[%s11339_s4 + $0x1f8] sm:$0xf] }
  0xe6   : > { %v1274_v50 = vpop.f32.mrf.mxu3  ;;  %v968_v53 = vpop.f32.mrf.mxu0 }
  0xe7   : > { %v9034_v52 = vadd.f32 %v1274_v50, %v1049_v33  ;;  %v1057_v54 = vpop.f32.mrf.mxu1  ;;  %v8274_v33 = vld [vmem:[%s11339_s4 + $0x200] sm:$0xf0] }
  0xe8   : > { %v6930_v34 = vor.u32 %v8274_v33, %v6929_v32 }
  0xe9   : > { %6664 = vmatmul.msk.bf16.gmra.mxu0 %vm893_vm1, %v9032_v51  ;;  %6719 = vmatmul.msk.bf16.gmra.mxu2 %vm893_vm1, %v8961_v17 }
  0xea   : > { %6680 = vmatmul.msk.bf16.gmra.mxu1 %vm893_vm1, %v9032_v51  ;;  %2320 = vmatpush.bf16.msra.mxu2 %v6930_v34 }
  0xeb   : > { %6735 = vmatmul.msk.bf16.gmra.mxu3 %vm893_vm1, %v8961_v17 }
  0xec   : > { %v1188_v58 = vpop.f32.mrf.mxu2 }
  0xed   : > { %v9050_v59 = vadd.f32 %v1188_v58, %v963_v40 }
  0xee   : > { %v1277_v60 = vpop.f32.mrf.mxu3  ;;  %v970_v62 = vpop.f32.mrf.mxu0 }
  0xef   : > { %v9052_v61 = vadd.f32 %v1277_v60, %v1052_v41  ;;  %v1059_v63 = vpop.f32.mrf.mxu1 }
  0xf4   : > { %v1190_v3 = vpop.f32.mrf.mxu2 }
  0xf5   : > { %v9060_v4 = vadd.f32 %v1190_v3, %v965_v46  ;;  %v7025_v46 = vld [vmem:[%s11339_s4 + $0x2b8] sm:$0xf] }
  0xf6   : > { %v1279_v6 = vpop.f32.mrf.mxu3  ;;  %v973_v10 = vpop.f32.mrf.mxu0 }
  0xf7   : > { %v9065_v9 = vadd.f32 %v1279_v6, %v1054_v47  ;;  %v1062_v11 = vpop.f32.mrf.mxu1  ;;  %v8298_v47 = vld [vmem:[%s11339_s4 + $0x2c0] sm:$0xf0] }
  0xf8   : > { %v7026_v48 = vor.u32 %v8298_v47, %v7025_v46 }
  0xf9   : > { %6665 = vmatmul.msk.bf16.gmra.mxu0 %vm893_vm1, %v9063_v8  ;;  %6720 = vmatmul.msk.bf16.gmra.mxu2 %vm893_vm1, %v8972_v18 }
  0xfa   : > { %6681 = vmatmul.msk.bf16.gmra.mxu1 %vm893_vm1, %v9063_v8  ;;  %2389 = vmatpush.bf16.msra.mxu3 %v7026_v48 }
  0xfb   : > { %6736 = vmatmul.msk.bf16.gmra.mxu3 %vm893_vm1, %v8972_v18 }
  0xfc   : > { %v1193_v12 = vpop.f32.mrf.mxu2 }
  0xfd   : > { %v9075_v13 = vadd.f32 %v1193_v12, %v968_v53 }
  0xfe   : > { %v1282_v19 = vpop.f32.mrf.mxu3  ;;  %v975_v21 = vpop.f32.mrf.mxu0 }
  0xff   : > { %v9077_v20 = vadd.f32 %v1282_v19, %v1057_v54  ;;  %v1064_v22 = vpop.f32.mrf.mxu1 }
 0x104   : > { %v1195_v23 = vpop.f32.mrf.mxu2 }
 0x105   : > { %v9079_v24 = vadd.f32 %v1195_v23, %v970_v62  ;;  %v8271_v23 = vld [vmem:[%s11339_s4 + $0x1e8] sm:$0xf0] }
 0x106   : > { %v1284_v25 = vpop.f32.mrf.mxu3  ;;  %v978_v29 = vpop.f32.mrf.mxu0 }
 0x107   : > { %v9084_v27 = vadd.f32 %v1284_v25, %v1059_v63  ;;  %v1067_v30 = vpop.f32.mrf.mxu1 }
 0x109   : > { %6666 = vmatmul.msk.bf16.gmra.mxu0 %vm893_vm1, %v9082_v26  ;;  %6721 = vmatmul.msk.bf16.gmra.mxu2 %vm893_vm1, %v9015_v39 }
 0x10a   : > { %6682 = vmatmul.msk.bf16.gmra.mxu1 %vm893_vm1, %v9082_v26 }
 0x10b   : > { %6737 = vmatmul.msk.bf16.gmra.mxu3 %vm893_vm1, %v9015_v39 }
 0x10c   : > { %v1198_v35 = vpop.f32.mrf.mxu2 }
 0x10d   : > { %v9100_v36 = vadd.f32 %v1198_v35, %v973_v10 }
 0x10e   : > { %v1287_v40 = vpop.f32.mrf.mxu3  ;;  %v980_v42 = vpop.f32.mrf.mxu0 }
 0x10f   : > { %v9102_v41 = vadd.f32 %v1287_v40, %v1062_v11  ;;  %v1069_v44 = vpop.f32.mrf.mxu1  ;;  %v9132_v11 = vld [vmem:[%s8817_s25 + $0x80] sm:$0xff] }
 0x110   : > { %v7013_v40 = vld [vmem:[%s11339_s4 + $0x2a0] sm:$0xf] }
 0x114   : > { %v1200_v50 = vpop.f32.mrf.mxu2 }
 0x115   : > { %v9110_v53 = vadd.f32 %v1200_v50, %v975_v21 }
 0x116   : > { %v1289_v54 = vpop.f32.mrf.mxu3  ;;  %v983_v57 = vpop.f32.mrf.mxu0 }
 0x117   : > { %v9115_v56 = vadd.f32 %v1289_v54, %v1064_v22  ;;  %v1072_v58 = vpop.f32.mrf.mxu1  ;;  %v6917_v22 = vld [vmem:[%s11339_s4 + $0x1e0] sm:$0xf] }
 0x118   : > { %v6918_v25 = vor.u32 %v8271_v23, %v6917_v22 }
 0x119   : > { %6667 = vmatmul.msk.bf16.gmra.mxu0 %vm893_vm1, %v9113_v55  ;;  %6722 = vmatmul.msk.bf16.gmra.mxu2 %vm893_vm1, %v9032_v51 }
 0x11a   : > { %6683 = vmatmul.msk.bf16.gmra.mxu1 %vm893_vm1, %v9113_v55  ;;  %2321 = vmatpush.bf16.msra.mxu2 %v6918_v25 }
 0x11b   : > { %6738 = vmatmul.msk.bf16.gmra.mxu3 %vm893_vm1, %v9032_v51 }
 0x11c   : > { %v1203_v60 = vpop.f32.mrf.mxu2 }
 0x11d   : > { %v9125_v62 = vadd.f32 %v1203_v60, %v978_v29 }
 0x11e   : > { %v1292_v63 = vpop.f32.mrf.mxu3  ;;  %v985_v1 = vpop.f32.mrf.mxu0 }
 0x11f   : > { %v9127_v0 = vadd.f32 %v1292_v63, %v1067_v30  ;;  %v1074_v2 = vpop.f32.mrf.mxu1 }
 0x124   : > { %v1205_v3 = vpop.f32.mrf.mxu2 }
 0x125   : > { %v9129_v6 = vadd.f32 %v1205_v3, %v980_v42  ;;  %v8295_v42 = vld [vmem:[%s11339_s4 + $0x2a8] sm:$0xf0] }
 0x126   : > { %v1294_v10 = vpop.f32.mrf.mxu3  ;;  %v988_v19 = vpop.f32.mrf.mxu0 }
 0x127   : > { %v9134_v12 = vadd.f32 %v1294_v10, %v1069_v44  ;;  %v1077_v21 = vpop.f32.mrf.mxu1  ;;  %v7014_v44 = vor.u32 %v8295_v42, %v7013_v40 }
 0x129   : > { %6668 = vmatmul.msk.bf16.gmra.mxu0 %vm893_vm1, %v9132_v11  ;;  %6723 = vmatmul.msk.bf16.gmra.mxu2 %vm893_vm1, %v9063_v8 }
 0x12a   : > { %6684 = vmatmul.msk.bf16.gmra.mxu1 %vm893_vm1, %v9132_v11  ;;  %2390 = vmatpush.bf16.msra.mxu3 %v7014_v44 }
 0x12b   : > { %6739 = vmatmul.msk.bf16.gmra.mxu3 %vm893_vm1, %v9063_v8 }
 0x12c   : > { %v1208_v29 = vpop.f32.mrf.mxu2 }
 0x12d   : > { %v9150_v30 = vadd.f32 %v1208_v29, %v983_v57 }
 0x12e   : > { %v1297_v32 = vpop.f32.mrf.mxu3  ;;  %v990_v34 = vpop.f32.mrf.mxu0 }
 0x12f   : > { %v9152_v33 = vadd.f32 %v1297_v32, %v1072_v58  ;;  %v1079_v35 = vpop.f32.mrf.mxu1 }
 0x134   : > { %v1210_v46 = vpop.f32.mrf.mxu2 }
 0x135   : > { %v9160_v47 = vadd.f32 %v1210_v46, %v985_v1 }
 0x136   : > { %v1299_v48 = vpop.f32.mrf.mxu3  ;;  %v993_v54 = vpop.f32.mrf.mxu0 }
 0x137   : > { %v9162_v50 = vadd.f32 %v1299_v48, %v1074_v2  ;;  %v1082_v57 = vpop.f32.mrf.mxu1  ;;  %v8292_v48 = vld [vmem:[%s11339_s4 + $0x290] sm:$0xf0] }
 0x139   : > { %6724 = vmatmul.msk.bf16.gmra.mxu2 %vm893_vm1, %v9082_v26  ;;  %6771 = vmatmul.msk.bf16.vlgmr.msrb.gmra.mxu0 %vm893_vm1, %v8899_v5 }
 0x13a   : > { %6787 = vmatmul.msk.bf16.vlgmr.msrb.gmra.mxu1 %vm893_vm1, %v8899_v5  ;;  %v6905_v5 = vld [vmem:[%s11339_s4 + $0x1c8] sm:$0xf] }
 0x13b   : > { %6740 = vmatmul.msk.bf16.gmra.mxu3 %vm893_vm1, %v9082_v26 }
 0x13c   : > { %v1213_v58 = vpop.f32.mrf.mxu2 }
 0x13d   : > { %v9172_v60 = vadd.f32 %v1213_v58, %v988_v19  ;;  %v8268_v19 = vld [vmem:[%s11339_s4 + $0x1d0] sm:$0xf0] }
 0x13e   : > { %v1302_v63 = vpop.f32.mrf.mxu3  ;;  %v995_v2 = vpop.f32.mrf.mxu0 }
 0x13f   : > { %v9174_v1 = vadd.f32 %v1302_v63, %v1077_v21  ;;  %v1084_v3 = vpop.f32.mrf.mxu1  ;;  %v6906_v21 = vor.u32 %v8268_v19, %v6905_v5 }
 0x141   : > { %2322 = vmatpush.bf16.msra.mxu2 %v6906_v21 }
 0x144   : > { %v1215_v10 = vpop.f32.mrf.mxu2 }
 0x145   : > { %v9176_v22 = vadd.f32 %v1215_v10, %v990_v34 }
 0x146   : > { %v1304_v23 = vpop.f32.mrf.mxu3  ;;  %v998_v29 = vpop.f32.mrf.mxu0 }
 0x147   : > { %v9178_v25 = vadd.f32 %v1304_v23, %v1079_v35  ;;  %v1087_v32 = vpop.f32.mrf.mxu1 }
 0x149   : > { %6725 = vmatmul.msk.bf16.gmra.mxu2 %vm893_vm1, %v9113_v55  ;;  %6772 = vmatmul.msk.bf16.gmra.mxu0 %vm893_vm1, %v8909_v7 }
 0x14a   : > { %6788 = vmatmul.msk.bf16.gmra.mxu1 %vm893_vm1, %v8909_v7  ;;  %v7001_v7 = vld [vmem:[%s11339_s4 + $0x288] sm:$0xf] }
 0x14b   : > { %6741 = vmatmul.msk.bf16.gmra.mxu3 %vm893_vm1, %v9113_v55  ;;  %v7002_v58 = vor.u32 %v8292_v48, %v7001_v7 }
 0x14c   : > { %v1218_v34 = vpop.f32.mrf.mxu2 }
 0x14d   : > { %v9194_v35 = vadd.f32 %v1218_v34, %v993_v54  ;;  %2391 = vmatpush.bf16.msra.mxu3 %v7002_v58 }
 0x14e   : > { %v1307_v40 = vpop.f32.mrf.mxu3  ;;  %v1000_v44 = vpop.f32.mrf.mxu0 }
 0x14f   : > { %v9196_v42 = vadd.f32 %v1307_v40, %v1082_v57  ;;  %v1089_v46 = vpop.f32.mrf.mxu1 }
 0x154   : > { %v1220_v63 = vpop.f32.mrf.mxu2 }
 0x155   : > { %v9204_v10 = vadd.f32 %v1220_v63, %v995_v2 }
 0x156   : > { %v1309_v54 = vpop.f32.mrf.mxu3  ;;  %v1003_v57 = vpop.f32.mrf.mxu0 }
 0x157   : > { %v9206_v23 = vadd.f32 %v1309_v54, %v1084_v3  ;;  %v1092_v5 = vpop.f32.mrf.mxu1 }
 0x159   : > { %6773 = vmatmul.msk.bf16.gmra.mxu0 %vm893_vm1, %v8930_v14 }
 0x15a   : > { %6789 = vmatmul.msk.bf16.gmra.mxu1 %vm893_vm1, %v8930_v14  ;;  %v6893_v14 = vld [vmem:[%s11339_s4 + $0x1b0] sm:$0xf] }
 0x15c   : > { %v1223_v19 = vpop.f32.mrf.mxu2 }
 0x15d   : > { %v9212_v21 = vadd.f32 %v1223_v19, %v998_v29  ;;  %v8265_v29 = vld [vmem:[%s11339_s4 + $0x1b8] sm:$0xf0] }
 0x15e   : > { %v1312_v34 = vpop.f32.mrf.mxu3  ;;  %v1005_v7 = vpop.f32.mrf.mxu0 }
 0x15f   : > { %v9214_v40 = vadd.f32 %v1312_v34, %v1087_v32  ;;  %v1094_v2 = vpop.f32.mrf.mxu1  ;;  %v6894_v32 = vor.u32 %v8265_v29, %v6893_v14 }
 0x161   : > { %2323 = vmatpush.bf16.msra.mxu2 %v6894_v32 }
 0x164   : > { %v1225_v48 = vpop.f32.mrf.mxu2 }
 0x165   : > { %v9216_v58 = vadd.f32 %v1225_v48, %v1000_v44 }
 0x166   : > { %v1314_v3 = vpop.f32.mrf.mxu3  ;;  %v1008_v54 = vpop.f32.mrf.mxu0 }
 0x167   : > { %v9218_v63 = vadd.f32 %v1314_v3, %v1089_v46  ;;  %v1097_v38 = vpop.f32.mrf.mxu1 }
 0x169   : > { %6774 = vmatmul.msk.bf16.gmra.mxu0 %vm893_vm1, %v8939_v15 }
 0x16a   : > { %6790 = vmatmul.msk.bf16.gmra.mxu1 %vm893_vm1, %v8939_v15  ;;  %v6989_v15 = vld [vmem:[%s11339_s4 + $0x270] sm:$0xf] }
 0x16b   : > { %v6990_v31 = vor.u32 %v8289_v37, %v6989_v15 }
 0x16c   : > { %v1228_v44 = vpop.f32.mrf.mxu2 }
 0x16d   : > { %v9230_v46 = vadd.f32 %v1228_v44, %v1003_v57  ;;  %2392 = vmatpush.bf16.msra.mxu3 %v6990_v31 }
 0x16e   : > { %v1317_v19 = vpop.f32.mrf.mxu3  ;;  %v1010_v48 = vpop.f32.mrf.mxu0 }
 0x16f   : > { %v9232_v34 = vadd.f32 %v1317_v19, %v1092_v5  ;;  %v1099_v3 = vpop.f32.mrf.mxu1 }
 0x171   : > { %11370 = vst [vmem:[#allocation12_spill] sm:$0xff] %v9232_v34 }
 0x174   : > { %v1230_v14 = vpop.f32.mrf.mxu2 }
 0x175   : > { %v9240_v29 = vadd.f32 %v1230_v14, %v1005_v7 }
 0x176   : > { %v1319_v57 = vpop.f32.mrf.mxu3  ;;  %v1013_v5 = vpop.f32.mrf.mxu0 }
 0x177   : > { %11371 = vst [vmem:[#allocation13_spill] sm:$0xff] %v9240_v29  ;;  %v9242_v44 = vadd.f32 %v1319_v57, %v1094_v2  ;;  %v1102_v32 = vpop.f32.mrf.mxu1 }
 0x179   : > { %11372 = vst [vmem:[#allocation14_spill] sm:$0xff] %v9242_v44  ;;  %6775 = vmatmul.msk.bf16.gmra.mxu0 %vm893_vm1, %v8950_v16 }
 0x17a   : > { %6791 = vmatmul.msk.bf16.gmra.mxu1 %vm893_vm1, %v8950_v16  ;;  %v6881_v16 = vld [vmem:[%s11339_s4 + $0x198] sm:$0xf] }
 0x17c   : > { %v1233_v19 = vpop.f32.mrf.mxu2 }
 0x17d   : > { %v9248_v28 = vadd.f32 %v1233_v19, %v1008_v54 }
 0x17e   : > { %v1322_v34 = vpop.f32.mrf.mxu3  ;;  %v1015_v31 = vpop.f32.mrf.mxu0 }
 0x17f   : > { %v9250_v37 = vadd.f32 %v1322_v34, %v1097_v38  ;;  %v1104_v7 = vpop.f32.mrf.mxu1  ;;  %v8262_v38 = vld [vmem:[%s11339_s4 + $0x1a0] sm:$0xf0] }
 0x180   : > { %v6882_v54 = vor.u32 %v8262_v38, %v6881_v16 }
 0x182   : > { %2324 = vmatpush.bf16.msra.mxu2 %v6882_v54 }
 0x184   : > { %v1235_v15 = vpop.f32.mrf.mxu2 }
 0x185   : > { %v9252_v14 = vadd.f32 %v1235_v15, %v1010_v48 }
 0x186   : > { %v1324_v2 = vpop.f32.mrf.mxu3  ;;  %v1018_v44 = vpop.f32.mrf.mxu0 }
 0x187   : > { %11373 = vst [vmem:[#allocation15_spill] sm:$0xff] %v9252_v14  ;;  %v9254_v57 = vadd.f32 %v1324_v2, %v1099_v3  ;;  %v1107_v29 = vpop.f32.mrf.mxu1 }
 0x189   : > { %11374 = vst [vmem:[#allocation16_spill] sm:$0xff] %v9254_v57  ;;  %6776 = vmatmul.msk.bf16.gmra.mxu0 %vm893_vm1, %v8961_v17  ;;  %v8286_v57 = vld [vmem:[%s11339_s4 + $0x260] sm:$0xf0] }
 0x18a   : > { %6792 = vmatmul.msk.bf16.gmra.mxu1 %vm893_vm1, %v8961_v17  ;;  %v6977_v17 = vld [vmem:[%s11339_s4 + $0x258] sm:$0xf] }
 0x18b   : > { %v6978_v14 = vor.u32 %v8286_v57, %v6977_v17 }
 0x18c   : > { %v1238_v34 = vpop.f32.mrf.mxu2 }
 0x18d   : > { %v9266_v48 = vadd.f32 %v1238_v34, %v1013_v5  ;;  %2393 = vmatpush.bf16.msra.mxu3 %v6978_v14 }
 0x18e   : > { %v1327_v3 = vpop.f32.mrf.mxu3  ;;  %v1020_v15 = vpop.f32.mrf.mxu0 }
 0x18f   : > { %11375 = vst [vmem:[#allocation17_spill] sm:$0xff] %v9266_v48  ;;  %v9268_v19 = vadd.f32 %v1327_v3, %v1102_v32  ;;  %v1109_v2 = vpop.f32.mrf.mxu1 }
 0x191   : > { %11376 = vst [vmem:[#allocation18_spill] sm:$0xff] %v9268_v19 }
 0x194   : > { %v1240_v16 = vpop.f32.mrf.mxu2 }
 0x195   : > { %v9276_v38 = vadd.f32 %v1240_v16, %v1015_v31 }
 0x196   : > { %v1329_v5 = vpop.f32.mrf.mxu3  ;;  %v1023_v32 = vpop.f32.mrf.mxu0 }
 0x197   : > { %11377 = vst [vmem:[#allocation19_spill] sm:$0xff] %v9276_v38  ;;  %v9278_v34 = vadd.f32 %v1329_v5, %v1104_v7  ;;  %v1112_v54 = vpop.f32.mrf.mxu1 }
 0x199   : > { %11378 = vst [vmem:[#allocation20_spill] sm:$0xff] %v9278_v34  ;;  %6777 = vmatmul.msk.bf16.gmra.mxu0 %vm893_vm1, %v8972_v18 }
 0x19a   : > { %6793 = vmatmul.msk.bf16.gmra.mxu1 %vm893_vm1, %v8972_v18 }
 0x19c   : > { %v1243_v3 = vpop.f32.mrf.mxu2 }
 0x19d   : > { %v9284_v19 = vadd.f32 %v1243_v3, %v1018_v44 }
 0x19e   : > { %v1332_v48 = vpop.f32.mrf.mxu3  ;;  %v1025_v14 = vpop.f32.mrf.mxu0 }
 0x19f   : > { %v9286_v57 = vadd.f32 %v1332_v48, %v1107_v29  ;;  %v1114_v31 = vpop.f32.mrf.mxu1 }
 0x1a4   : > { %v1245_v17 = vpop.f32.mrf.mxu2 }
 0x1a5   : > { %v9288_v16 = vadd.f32 %v1245_v17, %v1020_v15  ;;  %v6869_v15 = vld [vmem:[%s11339_s4 + $0x180] sm:$0xf] }
 0x1a6   : > { %v1334_v7 = vpop.f32.mrf.mxu3  ;;  %v1028_v34 = vpop.f32.mrf.mxu0 }
 0x1a7   : > { %v9290_v5 = vadd.f32 %v1334_v7, %v1109_v2  ;;  %v1117_v38 = vpop.f32.mrf.mxu1  ;;  %v8259_v2 = vld [vmem:[%s11339_s4 + $0x188] sm:$0xf0] }
 0x1a8   : > { %v6870_v7 = vor.u32 %v8259_v2, %v6869_v15  ;;  %v6965_v15 = vld [vmem:[%s11339_s4 + $0x240] sm:$0xf]  ;;  %v8283_v2 = vld [vmem:[%s11339_s4 + $0x248] sm:$0xf0] }
 0x1a9   : > { %11379 = vst [vmem:[#allocation21_spill] sm:$0xff] %v9290_v5  ;;  %6778 = vmatmul.msk.bf16.gmra.mxu0 %vm893_vm1, %v9015_v39 }
 0x1aa   : > { %6794 = vmatmul.msk.bf16.gmra.mxu1 %vm893_vm1, %v9015_v39  ;;  %2325 = vmatpush.bf16.msra.mxu2 %v6870_v7  ;;  %v1647_v39 = vld [vmem:[%s11338_s3] sm:$0x3] }
 0x1ac   : > { %v1248_v18 = vpop.f32.mrf.mxu2 }
 0x1ad   : > { %v9296_v44 = vadd.f32 %v1248_v18, %v1023_v32 }
 0x1ae   : > { %v1337_v29 = vpop.f32.mrf.mxu3  ;;  %v9300_v3 = vpop.f32.mrf.mxu0 }
 0x1af   : > { %11380 = vst [vmem:[#allocation22_spill] sm:$0xff] %v9296_v44  ;;  %v9298_v48 = vadd.f32 %v1337_v29, %v1112_v54  ;;  %v9308_v17 = vpop.f32.mrf.mxu1  ;;  %v9315_v29 = vperm.slane %v1647_v39, 0  ;;  %v9319_v44 = vperm.slane %v1647_v39, 1 }
 0x1b0   : > { %11382 = vst [vmem:[#allocation24_spill] sm:$0xff] %v9300_v3 }
 0x1b1   : > { %11381 = vst [vmem:[#allocation23_spill] sm:$0xff] %v9298_v48 }
 0x1b2   : > { %11383 = vst [vmem:[#allocation25_spill] sm:$0xff] %v9308_v17 }
 0x1b4   : > { %v1250_v32 = vpop.f32.mrf.mxu2 }
 0x1b5   : > { %v9313_v54 = vadd.f32 %v1250_v32, %v1025_v14  ;;  %v6966_v32 = vor.u32 %v8283_v2, %v6965_v15 }
 0x1b6   : > { %v1339_v18 = vpop.f32.mrf.mxu3  ;;  %v1414_v48 = vpop.f32.mrf.mxu0 }
 0x1b7   : > { %11384 = vst [vmem:[#allocation26_spill] sm:$0xff] %v9313_v54  ;;  %v9317_v3 = vadd.f32 %v1339_v18, %v1114_v31  ;;  %v1583_v7 = vadd.f32 %v1414_v48, %v9025_v43  ;;  %v1503_v14 = vpop.f32.mrf.mxu1  ;;  %2394 = vmatpush.bf16.msra.mxu3 %v6966_v32 }
 0x1b8   : > { %v1584_v17 = vadd.f32 %v1503_v14, %v9027_v45 }
 0x1b9   : > { %11385 = vst [vmem:[#allocation27_spill] sm:$0xff] %v9317_v3  ;;  %v1653_v31 = vadd.f32 %v9315_v29, %v1583_v7  ;;  %6779 = vmatmul.msk.bf16.gmra.mxu0 %vm893_vm1, %v9032_v51 }
 0x1ba   : > { %v1654_v39 = vadd.f32 %v9319_v44, %v1584_v17  ;;  %6795 = vmatmul.msk.bf16.gmra.mxu1 %vm893_vm1, %v9032_v51  ;;  %v6961_v17 = vld [vmem:[%s11339_s4 + $0x230] sm:$0xf]  ;;  %v8281_v51 = vld [vmem:[%s11339_s4 + $0x238] sm:$0xf0] }
 0x1bb   : > { %v1717_v18 = vmax.f32 %v1653_v31, 0.0 }
 0x1bc   : > { %v1718_v3 = vmax.f32 %v1654_v39, 0.0  ;;  %v1253_v54 = vpop.f32.mrf.mxu2 }
 0x1bd   : > { %v9335_v5 = vadd.f32 %v1253_v54, %v1028_v34  ;;  %v7057_v34 = vld [vmem:[%s11339_s4 + $0x2f0] sm:$0xf] }
 0x1be   : > { %v1342_v43 = vpop.f32.mrf.mxu3  ;;  %v1781_v48 = vpack.c.bf16 %v1718_v3, %v1717_v18  ;;  %v1416_v45 = vpop.f32.mrf.mxu0  ;;  %v6962_v3 = vor.u32 %v8281_v51, %v6961_v17 }
 0x1bf   : > { %11386 = vst [vmem:[#allocation28_spill] sm:$0xff] %v9335_v5  ;;  %v9337_v15 = vadd.f32 %v1342_v43, %v1117_v38  ;;  %v1585_v2 = vadd.f32 %v1416_v45, %v9029_v49  ;;  %v1505_v7 = vpop.f32.mrf.mxu1  ;;  %v8305_v49 = vld [vmem:[%s11339_s4 + $0x2f8] sm:$0xf0] }
 0x1c0   : > { %v1586_v14 = vadd.f32 %v1505_v7, %v9034_v52  ;;  %v7058_v54 = vor.u32 %v8305_v49, %v7057_v34  ;;  %2594 = vmatpush.bf16.msra.mxu0 %v6962_v3  ;;  %v2736_v43 = vunpack.c.l.b16 %v1781_v48 }
 0x1c1   : > { %11387 = vst [vmem:[#allocation29_spill] sm:$0xff] %v9337_v15  ;;  %v1655_v38 = vadd.f32 %v9315_v29, %v1585_v2  ;;  %v2737_v15 = vunpack.c.h.b16 %v1781_v48 }
 0x1c2   : > { %v1656_v52 = vadd.f32 %v9319_v44, %v1586_v14  ;;  %2663 = vmatpush.bf16.msra.mxu1 %v7058_v54 }
 0x1c3   : > { %v1719_v32 = vmax.f32 %v1655_v38, 0.0 }
 0x1c4   : > { %v1720_v31 = vmax.f32 %v1656_v52, 0.0 }
 0x1c6   : > { %v1782_v39 = vpack.c.bf16 %v1720_v31, %v1719_v32  ;;  %v1419_v18 = vpop.f32.mrf.mxu0  ;;  %v8279_v32 = vld [vmem:[%s11339_s4 + $0x22c] sm:$0xf] }
 0x1c7   : > { %v1587_v45 = vadd.f32 %v1419_v18, %v9050_v59  ;;  %v1508_v7 = vpop.f32.mrf.mxu1 }
 0x1c8   : > { %v2738_v2 = vunpack.c.l.b16 %v1782_v39  ;;  %v2739_v17 = vunpack.c.h.b16 %v1782_v39  ;;  %v1588_v51 = vadd.f32 %v1508_v7, %v9052_v61 }
 0x1c9   : > { %v1657_v5 = vadd.f32 %v9315_v29, %v1587_v45  ;;  %6780 = vmatmul.msk.bf16.gmra.mxu0 %vm893_vm1, %v9063_v8 }
 0x1ca   : > { %v9360_v14 = vpack.c.b16 %v2738_v2, %v2736_v43  ;;  %v9362_v34 = vpack.c.b16 %v2739_v17, %v2737_v15  ;;  %v1658_v38 = vadd.f32 %v9319_v44, %v1588_v51  ;;  %6796 = vmatmul.msk.bf16.gmra.mxu1 %vm893_vm1, %v9063_v8  ;;  %v6955_v15 = vld [vmem:[%s11339_s4 + $0x234] sm:$0xf0] }
 0x1cb   : > { %v1721_v59 = vmax.f32 %v1657_v5, 0.0  ;;  %v6958_v8 = vor.u32 %v8279_v32, %v6955_v15 }
 0x1cc   : > { %v1722_v48 = vmax.f32 %v1658_v38, 0.0 }
 0x1cd   : > { %2456 = vmatpush.bf16.msrb.mxu2 %v6958_v8 }
 0x1ce   : > { %v1783_v3 = vpack.c.bf16 %v1722_v48, %v1721_v59  ;;  %v1421_v49 = vpop.f32.mrf.mxu0 }
 0x1cf   : > { %v1589_v61 = vadd.f32 %v1421_v49, %v9060_v4  ;;  %v1510_v52 = vpop.f32.mrf.mxu1 }
 0x1d0   : > { %v1590_v54 = vadd.f32 %v1510_v52, %v9065_v9  ;;  %v2740_v7 = vunpack.c.l.b16 %v1783_v3  ;;  %v2741_v51 = vunpack.c.h.b16 %v1783_v3 }
 0x1d1   : > { %v1659_v31 = vadd.f32 %v9315_v29, %v1589_v61 }
 0x1d2   : > { %v1660_v5 = vadd.f32 %v9319_v44, %v1590_v54 }
 0x1d3   : > { %v1723_v39 = vmax.f32 %v1659_v31, 0.0 }
 0x1d4   : > { %v1724_v18 = vmax.f32 %v1660_v5, 0.0  ;;  %v6949_v5 = vld [vmem:[%s11339_s4 + $0x218] sm:$0xf] }
 0x1d6   : > { %v1784_v4 = vpack.c.bf16 %v1724_v18, %v1723_v39  ;;  %v1424_v43 = vpop.f32.mrf.mxu0  ;;  %v8278_v39 = vld [vmem:[%s11339_s4 + $0x220] sm:$0xf0]  ;;  %v7045_v18 = vld [vmem:[%s11339_s4 + $0x2d8] sm:$0xf] }
 0x1d7   : > { %v1591_v9 = vadd.f32 %v1424_v43, %v9075_v13  ;;  %v1513_v45 = vpop.f32.mrf.mxu1  ;;  %v8303_v13 = vld [vmem:[%s11339_s4 + $0x2ec] sm:$0xf]  ;;  %v6950_v43 = vor.u32 %v8278_v39, %v6949_v5 }
 0x1d8   : > { %v1592_v2 = vadd.f32 %v1513_v45, %v9077_v20  ;;  %v2742_v17 = vunpack.c.l.b16 %v1784_v4  ;;  %v2743_v38 = vunpack.c.h.b16 %v1784_v4  ;;  %v7051_v20 = vld [vmem:[%s11339_s4 + $0x2f4] sm:$0xf0] }
 0x1d9   : > { %v1661_v59 = vadd.f32 %v9315_v29, %v1591_v9  ;;  %6781 = vmatmul.msk.bf16.gmra.mxu0 %vm893_vm1, %v9082_v26  ;;  %v7054_v52 = vor.u32 %v8303_v13, %v7051_v20 }
 0x1da   : > { %v1662_v48 = vadd.f32 %v9319_v44, %v1592_v2  ;;  %6797 = vmatmul.msk.bf16.gmra.mxu1 %vm893_vm1, %v9082_v26  ;;  %v9391_v3 = vpack.c.b16 %v2742_v17, %v2740_v7  ;;  %v9393_v49 = vpack.c.b16 %v2743_v38, %v2741_v51  ;;  %2595 = vmatpush.bf16.msra.mxu0 %v6950_v43  ;;  %v8300_v43 = vld [vmem:[%s11339_s4 + $0x2d4] sm:$0xf] }
 0x1db   : > { %v1725_v61 = vmax.f32 %v1661_v59, 0.0  ;;  %2525 = vmatpush.bf16.msrb.mxu3 %v7054_v52 }
 0x1dc   : > { %v1726_v54 = vmax.f32 %v1662_v48, 0.0 }
 0x1de   : > { %v1785_v32 = vpack.c.bf16 %v1726_v54, %v1725_v61  ;;  %v1426_v15 = vpop.f32.mrf.mxu0 }
 0x1df   : > { %v1593_v26 = vadd.f32 %v1426_v15, %v9079_v24  ;;  %v1515_v31 = vpop.f32.mrf.mxu1  ;;  %v8302_v24 = vld [vmem:[%s11339_s4 + $0x2e0] sm:$0xf0] }
 0x1e0   : > { %v1594_v8 = vadd.f32 %v1515_v31, %v9084_v27  ;;  %v7046_v9 = vor.u32 %v8302_v24, %v7045_v18  ;;  %v1966_v51 = vunpack.c.l.b16 %v1785_v32  ;;  %v1967_v48 = vunpack.c.h.b16 %v1785_v32  ;;  %v7039_v24 = vld [vmem:[%s11339_s4 + $0x2dc] sm:$0xf0] }
 0x1e1   : > { %v1663_v4 = vadd.f32 %v9315_v29, %v1593_v26 }
 0x1e2   : > { %v1664_v27 = vadd.f32 %v9319_v44, %v1594_v8  ;;  %2664 = vmatpush.bf16.msra.mxu1 %v7046_v9  ;;  %v7042_v9 = vor.u32 %v8300_v43, %v7039_v24  ;;  %v6931_v43 = vld [vmem:[%s11339_s4 + $0x204] sm:$0xf0] }
 0x1e3   : > { %v1727_v45 = vmax.f32 %v1663_v4, 0.0 }
 0x1e4   : > { %v1728_v7 = vmax.f32 %v1664_v27, 0.0  ;;  %2526 = vmatpush.bf16.msrb.mxu3 %v7042_v9 }
 0x1e6   : > { %v1786_v2 = vpack.c.bf16 %v1728_v7, %v1727_v45  ;;  %v1429_v17 = vpop.f32.mrf.mxu0 }
 0x1e7   : > { %v1595_v38 = vadd.f32 %v1429_v17, %v9100_v36  ;;  %v1518_v59 = vpop.f32.mrf.mxu1  ;;  %v8276_v36 = vld [vmem:[%s11339_s4 + $0x214] sm:$0xf] }
 0x1e8   : > { %v1968_v13 = vunpack.c.l.b16 %v1786_v2  ;;  %v1969_v20 = vunpack.c.h.b16 %v1786_v2  ;;  %v1596_v61 = vadd.f32 %v1518_v59, %v9102_v41  ;;  %v6943_v41 = vld [vmem:[%s11339_s4 + $0x21c] sm:$0xf0] }
 0x1e9   : > { %v1665_v52 = vadd.f32 %v9315_v29, %v1595_v38  ;;  %6782 = vmatmul.msk.bf16.gmra.mxu0 %vm893_vm1, %v9113_v55  ;;  %v6946_v31 = vor.u32 %v8276_v36, %v6943_v41 }
 0x1ea   : > { %v9416_v54 = vpack.c.b16 %v1968_v13, %v1966_v51  ;;  %v9418_v15 = vpack.c.b16 %v1969_v20, %v1967_v48  ;;  %v1666_v26 = vadd.f32 %v9319_v44, %v1596_v61  ;;  %6798 = vmatmul.msk.bf16.gmra.mxu1 %vm893_vm1, %v9113_v55 }
 0x1eb   : > { %v1729_v32 = vmax.f32 %v1665_v52, 0.0  ;;  %2457 = vmatpush.bf16.msrb.mxu2 %v6946_v31 }
 0x1ec   : > { %v1730_v8 = vmax.f32 %v1666_v26, 0.0  ;;  %2326 = vmatmul.bf16.vlgmr.msra.gmra.mxu2 %v9416_v54  ;;  %2395 = vmatmul.bf16.vlgmr.msra.gmra.mxu3 %v9418_v15 }
 0x1ee   : > { %v1787_v5 = vpack.c.bf16 %v1730_v8, %v1729_v32  ;;  %v1431_v39 = vpop.f32.mrf.mxu0 }
 0x1ef   : > { %v1597_v55 = vadd.f32 %v1431_v39, %v9110_v53  ;;  %v1520_v18 = vpop.f32.mrf.mxu1  ;;  %v6937_v39 = vld [vmem:[%s11339_s4 + $0x200] sm:$0xf] }
 0x1f0   : > { %v1598_v4 = vadd.f32 %v1520_v18, %v9115_v56  ;;  %v1970_v51 = vunpack.c.l.b16 %v1787_v5  ;;  %v1971_v59 = vunpack.c.h.b16 %v1787_v5 }
 0x1f1   : > { %v1667_v27 = vadd.f32 %v9315_v29, %v1597_v55  ;;  %v7033_v55 = vld [vmem:[%s11339_s4 + $0x2c0] sm:$0xf] }
 0x1f2   : > { %v1668_v45 = vadd.f32 %v9319_v44, %v1598_v4 }
 0x1f3   : > { %v1731_v7 = vmax.f32 %v1667_v27, 0.0 }
 0x1f4   : > { %v1732_v2 = vmax.f32 %v1668_v45, 0.0 }
 0x1f6   : > { %v1788_v53 = vpack.c.bf16 %v1732_v2, %v1731_v7  ;;  %v1434_v17 = vpop.f32.mrf.mxu0  ;;  %v6925_v2 = vld [vmem:[%s11339_s4 + $0x1e8] sm:$0xf] }
 0x1f7   : > { %v1599_v56 = vadd.f32 %v1434_v17, %v9125_v62  ;;  %v1523_v38 = vpop.f32.mrf.mxu1 }
 0x1f8   : > { %v1972_v48 = vunpack.c.l.b16 %v1788_v53  ;;  %v1973_v13 = vunpack.c.h.b16 %v1788_v53  ;;  %v1600_v20 = vadd.f32 %v1523_v38, %v9127_v0  ;;  %v8272_v53 = vld [vmem:[%s11339_s4 + $0x1f0] sm:$0xf0] }
 0x1f9   : > { %v1669_v61 = vadd.f32 %v9315_v29, %v1599_v56  ;;  %6783 = vmatmul.msk.bf16.gmra.mxu0 %vm893_vm1, %v9132_v11  ;;  %v6926_v17 = vor.u32 %v8272_v53, %v6925_v2  ;;  %v8296_v56 = vld [vmem:[%s11339_s4 + $0x2b0] sm:$0xf0]  ;;  %v6997_v2 = vld [vmem:[%s11339_s4 + $0x278] sm:$0xf]  ;;  %v8290_v53 = vld [vmem:[%s11339_s4 + $0x280] sm:$0xf0] }
 0x1fa   : > { %v9446_v52 = vpack.c.b16 %v1972_v48, %v1970_v51  ;;  %v9448_v26 = vpack.c.b16 %v1973_v13, %v1971_v59  ;;  %v1670_v36 = vadd.f32 %v9319_v44, %v1600_v20  ;;  %6799 = vmatmul.msk.bf16.gmra.mxu1 %vm893_vm1, %v9132_v11  ;;  %v8275_v11 = vld [vmem:[%s11339_s4 + $0x208] sm:$0xf0]  ;;  %v7021_v51 = vld [vmem:[%s11339_s4 + $0x2a8] sm:$0xf] }
 0x1fb   : > { %v1733_v62 = vmax.f32 %v1669_v61, 0.0  ;;  %v6938_v4 = vor.u32 %v8275_v11, %v6937_v39  ;;  %v7022_v48 = vor.u32 %v8296_v56, %v7021_v51  ;;  %v8569_v39 = vld [vmem:[%s8817_s25 + $0x88] sm:$0xff]  ;;  %v6998_v56 = vor.u32 %v8290_v53, %v6997_v2 }
 0x1fc   : > { %11388 = vst [vmem:[#allocation30_spill] sm:$0xff] %v9448_v26  ;;  %v1734_v41 = vmax.f32 %v1670_v36, 0.0  ;;  %2331 = vmatmul.bf16.gmra.mxu2 %v9446_v52  ;;  %2400 = vmatmul.bf16.gmra.mxu3 %v9448_v26 }
 0x1fd   : > { %2596 = vmatpush.bf16.msra.mxu0 %v6938_v4  ;;  %v8297_v4 = vld [vmem:[%s11339_s4 + $0x2bc] sm:$0xf] }
 0x1fe   : > { %v1789_v0 = vpack.c.bf16 %v1734_v41, %v1733_v62  ;;  %v1436_v32 = vpop.f32.mrf.mxu0 }
 0x1ff   : > { %v1601_v31 = vadd.f32 %v1436_v32, %v9129_v6  ;;  %v1525_v8 = vpop.f32.mrf.mxu1  ;;  %v8299_v6 = vld [vmem:[%s11339_s4 + $0x2c8] sm:$0xf0] }
 0x200   : > { %v1602_v5 = vadd.f32 %v1525_v8, %v9134_v12  ;;  %v8273_v12 = vld [vmem:[%s11339_s4 + $0x1fc] sm:$0xf]  ;;  %v7034_v27 = vor.u32 %v8299_v6, %v7033_v55  ;;  %v1974_v13 = vunpack.c.l.b16 %v1789_v0  ;;  %v1975_v36 = vunpack.c.h.b16 %v1789_v0  ;;  %v7009_v0 = vld [vmem:[%s11339_s4 + $0x290] sm:$0xf]  ;;  %v7027_v6 = vld [vmem:[%s11339_s4 + $0x2c4] sm:$0xf0] }
 0x201   : > { %v1671_v18 = vadd.f32 %v9315_v29, %v1601_v31  ;;  %v6934_v9 = vor.u32 %v8273_v12, %v6931_v43  ;;  %2597 = vmatpush.bf16.msra.mxu0 %v6926_v17  ;;  %v6913_v31 = vld [vmem:[%s11339_s4 + $0x1d0] sm:$0xf]  ;;  %v8269_v8 = vld [vmem:[%s11339_s4 + $0x1d8] sm:$0xf0] }
 0x202   : > { %v1672_v24 = vadd.f32 %v9319_v44, %v1602_v5  ;;  %2665 = vmatpush.bf16.msra.mxu1 %v7034_v27 }
 0x203   : > { %v1735_v45 = vmax.f32 %v1671_v18, 0.0  ;;  %2458 = vmatpush.bf16.msrb.mxu2 %v6934_v9  ;;  %v6901_v9 = vld [vmem:[%s11339_s4 + $0x1b8] sm:$0xf] }
 0x204   : > { %v1736_v7 = vmax.f32 %v1672_v24, 0.0  ;;  %v7030_v24 = vor.u32 %v8297_v4, %v7027_v6 }
 0x206   : > { %v1790_v38 = vpack.c.bf16 %v1736_v7, %v1735_v45  ;;  %v1439_v59 = vpop.f32.mrf.mxu0  ;;  %2666 = vmatpush.bf16.msra.mxu1 %v7022_v48  ;;  %v8266_v45 = vld [vmem:[%s11339_s4 + $0x1c0] sm:$0xf0]  ;;  %2527 = vmatpush.bf16.msrb.mxu3 %v7030_v24 }
 0x207   : > { %v1603_v20 = vadd.f32 %v1439_v59, %v9150_v30  ;;  %v1528_v61 = vpop.f32.mrf.mxu1  ;;  %v6914_v30 = vor.u32 %v8269_v8, %v6913_v31  ;;  %v6902_v7 = vor.u32 %v8266_v45, %v6901_v9  ;;  %v6877_v8 = vld [vmem:[%s11339_s4 + $0x188] sm:$0xf] }
 0x208   : > { %v1976_v62 = vunpack.c.l.b16 %v1790_v38  ;;  %v1977_v41 = vunpack.c.h.b16 %v1790_v38  ;;  %v1604_v32 = vadd.f32 %v1528_v61, %v9152_v33  ;;  %v8293_v33 = vld [vmem:[%s11339_s4 + $0x298] sm:$0xf0]  ;;  %v6985_v61 = vld [vmem:[%s11339_s4 + $0x260] sm:$0xf] }
 0x209   : > { %v1673_v5 = vadd.f32 %v9315_v29, %v1603_v20  ;;  %6784 = vmatmul.msk.bf16.gmra.mxu0 %vm893_vm1, %v8569_v39  ;;  %v7010_v12 = vor.u32 %v8293_v33, %v7009_v0  ;;  %v8263_v20 = vld [vmem:[%s11339_s4 + $0x1a8] sm:$0xf0]  ;;  %v6973_v0 = vld [vmem:[%s11339_s4 + $0x248] sm:$0xf]  ;;  %v8284_v33 = vld [vmem:[%s11339_s4 + $0x250] sm:$0xf0] }
 0x20a   : > { %v9506_v11 = vpack.c.b16 %v1976_v62, %v1974_v13  ;;  %v9508_v55 = vpack.c.b16 %v1977_v41, %v1975_v36  ;;  %v1674_v18 = vadd.f32 %v9319_v44, %v1604_v32  ;;  %6800 = vmatmul.msk.bf16.gmra.mxu1 %vm893_vm1, %v8569_v39  ;;  %2598 = vmatpush.bf16.msra.mxu0 %v6914_v30  ;;  %v6889_v13 = vld [vmem:[%s11339_s4 + $0x1a0] sm:$0xf]  ;;  %v8196_v39 = vld [vmem:[%s8817_s25 + $0x90] sm:$0xff] }
 0x20b   : > { %v1737_v43 = vmax.f32 %v1673_v5, 0.0  ;;  %2667 = vmatpush.bf16.msra.mxu1 %v7010_v12  ;;  %v8260_v5 = vld [vmem:[%s11339_s4 + $0x190] sm:$0xf0]  ;;  %v6974_v6 = vor.u32 %v8284_v33, %v6973_v0 }
 0x20c   : > { %v1738_v27 = vmax.f32 %v1674_v18, 0.0  ;;  %2336 = vmatmul.bf16.gmra.mxu2 %v9506_v11  ;;  %2405 = vmatmul.bf16.gmra.mxu3 %v9508_v55  ;;  %v6878_v30 = vor.u32 %v8260_v5, %v6877_v8 }
 0x20e   : > { %v1791_v17 = vpack.c.bf16 %v1738_v27, %v1737_v43  ;;  %v1441_v51 = vpop.f32.mrf.mxu0  ;;  %2599 = vmatpush.bf16.msra.mxu0 %v6902_v7 }
 0x20f   : > { %v1605_v38 = vadd.f32 %v1441_v51, %v9160_v47  ;;  %v1530_v59 = vpop.f32.mrf.mxu1  ;;  %2668 = vmatpush.bf16.msra.mxu1 %v6998_v56  ;;  %v6890_v47 = vor.u32 %v8263_v20, %v6889_v13 }
 0x210   : > { %v1606_v48 = vadd.f32 %v1530_v59, %v9162_v50  ;;  %v8287_v50 = vld [vmem:[%s11339_s4 + $0x268] sm:$0xf0]  ;;  %v1978_v12 = vunpack.c.l.b16 %v1791_v17  ;;  %v1979_v27 = vunpack.c.h.b16 %v1791_v17 }
 0x211   : > { %v1675_v36 = vadd.f32 %v9315_v29, %v1605_v38  ;;  %v6986_v41 = vor.u32 %v8287_v50, %v6985_v61  ;;  %v7015_v50 = vld [vmem:[%s11339_s4 + $0x2ac] sm:$0xf0] }
 0x212   : > { %v1676_v62 = vadd.f32 %v9319_v44, %v1606_v48  ;;  %2600 = vmatpush.bf16.msra.mxu0 %v6890_v47  ;;  %v8294_v47 = vld [vmem:[%s11339_s4 + $0x2a4] sm:$0xf] }
 0x213   : > { %v1739_v32 = vmax.f32 %v1675_v36, 0.0  ;;  %2669 = vmatpush.bf16.msra.mxu1 %v6986_v41  ;;  %v7018_v41 = vor.u32 %v8294_v47, %v7015_v50 }
 0x214   : > { %v1740_v31 = vmax.f32 %v1676_v62, 0.0 }
 0x215   : > { %2528 = vmatpush.bf16.msrb.mxu3 %v7018_v41 }
 0x216   : > { %v1792_v18 = vpack.c.bf16 %v1740_v31, %v1739_v32  ;;  %v1444_v4 = vpop.f32.mrf.mxu0  ;;  %2601 = vmatpush.bf16.msra.mxu0 %v6878_v30 }
 0x217   : > { %v1607_v43 = vadd.f32 %v1444_v4, %v9172_v60  ;;  %v1533_v24 = vpop.f32.mrf.mxu1  ;;  %2670 = vmatpush.bf16.msra.mxu1 %v6974_v6  ;;  %v8270_v60 = vld [vmem:[%s11339_s4 + $0x1e4] sm:$0xf] }
 0x218   : > { %v1980_v9 = vunpack.c.l.b16 %v1792_v18  ;;  %v1981_v45 = vunpack.c.h.b16 %v1792_v18  ;;  %v1608_v7 = vadd.f32 %v1533_v24, %v9174_v1  ;;  %v6919_v1 = vld [vmem:[%s11339_s4 + $0x1ec] sm:$0xf0] }
 0x219   : > { %v1677_v2 = vadd.f32 %v9315_v29, %v1607_v43  ;;  %6785 = vmatmul.msk.bf16.gmra.mxu0 %vm893_vm1, %v8196_v39  ;;  %v6922_v38 = vor.u32 %v8270_v60, %v6919_v1  ;;  %v8267_v60 = vld [vmem:[%s11339_s4 + $0x1cc] sm:$0xf]  ;;  %v6907_v1 = vld [vmem:[%s11339_s4 + $0x1d4] sm:$0xf0] }
 0x21a   : > { %v9565_v53 = vpack.c.b16 %v1980_v9, %v1978_v12  ;;  %v9567_v51 = vpack.c.b16 %v1981_v45, %v1979_v27  ;;  %v1678_v56 = vadd.f32 %v9319_v44, %v1608_v7  ;;  %6801 = vmatmul.msk.bf16.gmra.mxu1 %vm893_vm1, %v8196_v39 }
 0x21b   : > { %v1741_v17 = vmax.f32 %v1677_v2, 0.0  ;;  %2459 = vmatpush.bf16.msrb.mxu2 %v6922_v38  ;;  %v6910_v38 = vor.u32 %v8267_v60, %v6907_v1 }
 0x21c   : > { %v1742_v59 = vmax.f32 %v1678_v56, 0.0  ;;  %2341 = vmatmul.bf16.gmra.mxu2 %v9565_v53  ;;  %2410 = vmatmul.bf16.gmra.mxu3 %v9567_v51 }
 0x21e   : > { %v1793_v48 = vpack.c.bf16 %v1742_v59, %v1741_v17  ;;  %v1446_v13 = vpop.f32.mrf.mxu0 }
 0x21f   : > { %v1609_v20 = vadd.f32 %v1446_v13, %v9176_v22  ;;  %v1535_v61 = vpop.f32.mrf.mxu1  ;;  %v8197_v22 = vld [vmem:[%s8817_s25 + $0x98] sm:$0xff]  ;;  %2460 = vmatpush.bf16.msrb.mxu2 %v6910_v38  ;;  %s11560_s25 = sadd.s32 4294967295, %s8626_s20  }
 0x220   : > { %v1610_v36 = vadd.f32 %v1535_v61, %v9178_v25  ;;  %v1982_v25 = vunpack.c.l.b16 %v1793_v48  ;;  %v1983_v33 = vunpack.c.h.b16 %v1793_v48  ;;  %s6565_s30 = sshll.u32 %s11560_s25, 2 }
 0x221   : > { %v1679_v62 = vadd.f32 %v9315_v29, %v1609_v20  ;;  %p725_p11 = scmp.lt.s32.totalorder %s6565_s30, 7 }
 0x222   : > { %v1680_v32 = vadd.f32 %v9319_v44, %v1610_v36 }
 0x223   : > { %v1743_v31 = vmax.f32 %v1679_v62, 0.0  ;;  %s11566_s30 = smov (!%p725_p11, %s6565_s30), 7 }
 0x224   : > { %v1744_v8 = vmax.f32 %v1680_v32, 0.0  ;;  %s6566_s17 = sshll.u32 %s11566_s30, 2  ;;  %s6568_s23 = sshll.u32 %s11566_s30, 3 }
 0x225   : > { %s728_s20 = scalar_lea.vmem %s11336_s1, %s6566_s17  ;;  %s734_s25 = scalar_lea.vmem %s11350_s15, %s6568_s23 }
 0x226   : > { %v1794_v5 = vpack.c.bf16 %v1744_v8, %v1743_v31  ;;  %v1449_v39 = vpop.f32.mrf.mxu0 }
 0x227   : > { %v1611_v30 = vadd.f32 %v1449_v39, %v9194_v35  ;;  %v1538_v0 = vpop.f32.mrf.mxu1 }
 0x228   : > { %v1984_v18 = vunpack.c.l.b16 %v1794_v5  ;;  %v1985_v4 = vunpack.c.h.b16 %v1794_v5  ;;  %v1612_v6 = vadd.f32 %v1538_v0, %v9196_v42 }
 0x229   : > { %v1681_v12 = vadd.f32 %v9315_v29, %v1611_v30  ;;  %6786 = vmatmul.msk.bf16.gmra.mxu0 %vm893_vm1, %v8197_v22 }
 0x22a   : > { %v9594_v43 = vpack.c.b16 %v1984_v18, %v1982_v25  ;;  %v9596_v24 = vpack.c.b16 %v1985_v4, %v1983_v33  ;;  %v1682_v27 = vadd.f32 %v9319_v44, %v1612_v6  ;;  %6802 = vmatmul.msk.bf16.gmra.mxu1 %vm893_vm1, %v8197_v22 }
 0x22b   : > { %v1745_v9 = vmax.f32 %v1681_v12, 0.0 }
 0x22c   : > { %v1746_v35 = vmax.f32 %v1682_v27, 0.0  ;;  %2346 = vmatmul.bf16.gmra.mxu2 %v9594_v43  ;;  %2415 = vmatmul.bf16.gmra.mxu3 %v9596_v24 }
 0x22e   : > { %v1795_v45 = vpack.c.bf16 %v1746_v35, %v1745_v9  ;;  %v1451_v42 = vpop.f32.mrf.mxu0 }
 0x22f   : > { %v1613_v7 = vadd.f32 %v1451_v42, %v9204_v10  ;;  %v1540_v2 = vpop.f32.mrf.mxu1 }
 0x230   : > { %v1614_v56 = vadd.f32 %v1540_v2, %v9206_v23  ;;  %v1986_v61 = vunpack.c.l.b16 %v1795_v45  ;;  %v1987_v47 = vunpack.c.h.b16 %v1795_v45 }
 0x231   : > { %v1683_v17 = vadd.f32 %v9315_v29, %v1613_v7 }
 0x232   : > { %v1684_v59 = vadd.f32 %v9319_v44, %v1614_v56 }
 0x233   : > { %v1747_v48 = vmax.f32 %v1683_v17, 0.0  ;;  %v11389_v17 = vld [vmem:[#allocation12_spill] sm:$0xff] }
 0x234   : > { %v1748_v13 = vmax.f32 %v1684_v59, 0.0 }
 0x236   : > { %v1796_v10 = vpack.c.bf16 %v1748_v13, %v1747_v48  ;;  %v1454_v20 = vpop.f32.mrf.mxu0  ;;  %v6895_v13 = vld [vmem:[%s11339_s4 + $0x1bc] sm:$0xf0] }
 0x237   : > { %v1615_v23 = vadd.f32 %v1454_v20, %v9212_v21  ;;  %v1543_v36 = vpop.f32.mrf.mxu1  ;;  %v8291_v21 = vld [vmem:[%s11339_s4 + $0x28c] sm:$0xf] }
 0x238   : > { %v1988_v50 = vunpack.c.l.b16 %v1796_v10  ;;  %v1989_v62 = vunpack.c.h.b16 %v1796_v10  ;;  %v1616_v41 = vadd.f32 %v1543_v36, %v9214_v40  ;;  %v7003_v40 = vld [vmem:[%s11339_s4 + $0x294] sm:$0xf0] }
 0x239   : > { %v1685_v32 = vadd.f32 %v9315_v29, %v1615_v23  ;;  %2602 = vmatmul.bf16.vlgmr.msra.gmra.mxu0 %v9416_v54  ;;  %v7006_v39 = vor.u32 %v8291_v21, %v7003_v40  ;;  %v6991_v21 = vld [vmem:[%s11339_s4 + $0x27c] sm:$0xf0] }
 0x23a   : > { %v9616_v31 = vpack.c.b16 %v1988_v50, %v1986_v61  ;;  %v9618_v8 = vpack.c.b16 %v1989_v62, %v1987_v47  ;;  %v1686_v22 = vadd.f32 %v9319_v44, %v1616_v41  ;;  %2671 = vmatmul.bf16.vlgmr.msra.gmra.mxu1 %v9418_v15  ;;  %v11390_v47 = vld [vmem:[#allocation13_spill] sm:$0xff]  ;;  %v11391_v41 = vld [vmem:[#allocation14_spill] sm:$0xff] }
 0x23b   : > { %v1749_v5 = vmax.f32 %v1685_v32, 0.0  ;;  %2529 = vmatpush.bf16.msrb.mxu3 %v7006_v39 }
 0x23c   : > { %v1750_v25 = vmax.f32 %v1686_v22, 0.0  ;;  %2351 = vmatmul.bf16.gmra.mxu2 %v9616_v31  ;;  %2420 = vmatmul.bf16.gmra.mxu3 %v9618_v8  ;;  %v8288_v22 = vld [vmem:[%s11339_s4 + $0x274] sm:$0xf] }
 0x23e   : > { %v1797_v30 = vpack.c.bf16 %v1750_v25, %v1749_v5  ;;  %v1456_v0 = vpop.f32.mrf.mxu0  ;;  %v6994_v5 = vor.u32 %v8288_v22, %v6991_v21  ;;  %v9662_v25 = vpop.f32.mrf.mxu2 }
 0x23f   : > { %v1617_v33 = vadd.f32 %v1456_v0, %v9216_v58  ;;  %v1545_v18 = vpop.f32.mrf.mxu1  ;;  %v9664_v0 = vpop.f32.mrf.mxu3 }
 0x240   : > { %v1618_v4 = vadd.f32 %v1545_v18, %v9218_v63  ;;  %v1990_v42 = vunpack.c.l.b16 %v1797_v30  ;;  %v1991_v56 = vunpack.c.h.b16 %v1797_v30  ;;  %2530 = vmatpush.bf16.msrb.mxu3 %v6994_v5  ;;  %v11394_v5 = vld [vmem:[#allocation17_spill] sm:$0xff] }
 0x241   : > { %v1687_v6 = vadd.f32 %v9315_v29, %v1617_v33 }
 0x242   : > { %v1688_v12 = vadd.f32 %v9319_v44, %v1618_v4 }
 0x243   : > { %v1751_v27 = vmax.f32 %v1687_v6, 0.0 }
 0x244   : > { %v1752_v9 = vmax.f32 %v1688_v12, 0.0 }
 0x246   : > { %v1798_v35 = vpack.c.bf16 %v1752_v9, %v1751_v27  ;;  %v1459_v45 = vpop.f32.mrf.mxu0 }
 0x247   : > { %v1619_v7 = vadd.f32 %v1459_v45, %v9230_v46  ;;  %v1548_v2 = vpop.f32.mrf.mxu1  ;;  %v8264_v46 = vld [vmem:[%s11339_s4 + $0x1b4] sm:$0xf] }
 0x248   : > { %v1992_v60 = vunpack.c.l.b16 %v1798_v35  ;;  %v1993_v1 = vunpack.c.h.b16 %v1798_v35  ;;  %v1620_v58 = vadd.f32 %v1548_v2, %v11389_v17  ;;  %v6898_v20 = vor.u32 %v8264_v46, %v6895_v13  ;;  %v9678_v17 = vpop.f32.mrf.mxu2 }
 0x249   : > { %v1689_v38 = vadd.f32 %v9315_v29, %v1619_v7  ;;  %2607 = vmatmul.bf16.gmra.mxu0 %v9446_v52 }
 0x24a   : > { %v9638_v63 = vpack.c.b16 %v1992_v60, %v1990_v42  ;;  %v9640_v59 = vpack.c.b16 %v1993_v1, %v1991_v56  ;;  %v1690_v48 = vadd.f32 %v9319_v44, %v1620_v58  ;;  %2676 = vmatmul.bf16.gmra.mxu1 %v9448_v26  ;;  %2461 = vmatpush.bf16.msrb.mxu2 %v6898_v20 }
 0x24b   : > { %v1753_v10 = vmax.f32 %v1689_v38, 0.0 }
 0x24c   : > { %v1754_v61 = vmax.f32 %v1690_v48, 0.0  ;;  %2356 = vmatmul.bf16.gmra.mxu2 %v9638_v63  ;;  %2425 = vmatmul.bf16.gmra.mxu3 %v9640_v59  ;;  %v11392_v48 = vld [vmem:[#allocation15_spill] sm:$0xff] }
 0x24e   : > { %v1799_v23 = vpack.c.bf16 %v1754_v61, %v1753_v10  ;;  %v1461_v36 = vpop.f32.mrf.mxu0  ;;  %v11393_v10 = vld [vmem:[#allocation16_spill] sm:$0xff]  ;;  %v8261_v61 = vld [vmem:[%s11339_s4 + $0x19c] sm:$0xf] }
 0x24f   : > { %v1621_v50 = vadd.f32 %v1461_v36, %v11390_v47  ;;  %v1550_v62 = vpop.f32.mrf.mxu1 }
 0x250   : > { %v1622_v32 = vadd.f32 %v1550_v62, %v11391_v41  ;;  %v1994_v6 = vunpack.c.l.b16 %v1799_v23  ;;  %v1995_v9 = vunpack.c.h.b16 %v1799_v23  ;;  %v6883_v23 = vld [vmem:[%s11339_s4 + $0x1a4] sm:$0xf0]  ;;  %v9692_v21 = vpop.f32.mrf.mxu2 }
 0x251   : > { %v1691_v40 = vadd.f32 %v9315_v29, %v1621_v50  ;;  %v6886_v47 = vor.u32 %v8261_v61, %v6883_v23  ;;  %v11397_v61 = vld [vmem:[#allocation20_spill] sm:$0xff] }
 0x252   : > { %v1692_v39 = vadd.f32 %v9319_v44, %v1622_v32 }
 0x253   : > { %v1755_v30 = vmax.f32 %v1691_v40, 0.0  ;;  %2462 = vmatpush.bf16.msrb.mxu2 %v6886_v47 }
 0x254   : > { %v1756_v33 = vmax.f32 %v1692_v39, 0.0 }
 0x256   : > { %v1800_v18 = vpack.c.bf16 %v1756_v33, %v1755_v30  ;;  %v1464_v4 = vpop.f32.mrf.mxu0 }
 0x257   : > { %v1623_v12 = vadd.f32 %v1464_v4, %v9248_v28  ;;  %v1553_v27 = vpop.f32.mrf.mxu1 }
 0x258   : > { %v1996_v35 = vunpack.c.l.b16 %v1800_v18  ;;  %v1997_v45 = vunpack.c.h.b16 %v1800_v18  ;;  %v1624_v42 = vadd.f32 %v1553_v27, %v9250_v37  ;;  %v9680_v37 = vpop.f32.mrf.mxu3 }
 0x259   : > { %v1693_v7 = vadd.f32 %v9315_v29, %v1623_v12  ;;  %2612 = vmatmul.bf16.gmra.mxu0 %v9506_v11  ;;  %v11395_v12 = vld [vmem:[#allocation18_spill] sm:$0xff] }
 0x25a   : > { %v9670_v2 = vpack.c.b16 %v1996_v35, %v1994_v6  ;;  %v9672_v56 = vpack.c.b16 %v1997_v45, %v1995_v9  ;;  %v1694_v60 = vadd.f32 %v9319_v44, %v1624_v42  ;;  %2681 = vmatmul.bf16.gmra.mxu1 %v9508_v55 }
 0x25b   : > { %v1757_v1 = vmax.f32 %v1693_v7, 0.0  ;;  %v8285_v7 = vld [vmem:[%s11339_s4 + $0x25c] sm:$0xf] }
 0x25c   : > { %v1758_v28 = vmax.f32 %v1694_v60, 0.0  ;;  %2361 = vmatmul.bf16.gmra.mxu2 %v9670_v2  ;;  %2430 = vmatmul.bf16.gmra.mxu3 %v9672_v56  ;;  %v6979_v60 = vld [vmem:[%s11339_s4 + $0x264] sm:$0xf0] }
 0x25e   : > { %v1801_v58 = vpack.c.bf16 %v1758_v28, %v1757_v1  ;;  %v1466_v38 = vpop.f32.mrf.mxu0  ;;  %v6982_v28 = vor.u32 %v8285_v7, %v6979_v60 }
 0x25f   : > { %v1625_v46 = vadd.f32 %v1466_v38, %v11392_v48  ;;  %v1555_v13 = vpop.f32.mrf.mxu1 }
 0x260   : > { %v1626_v20 = vadd.f32 %v1555_v13, %v11393_v10  ;;  %v1998_v40 = vunpack.c.l.b16 %v1801_v58  ;;  %v9695_v33 = vpop.f32.mrf.mxu3  ;;  %v1999_v18 = vunpack.c.h.b16 %v1801_v58  ;;  %2531 = vmatpush.bf16.msrb.mxu3 %v6982_v28  ;;  %v8258_v28 = vld [vmem:[%s11339_s4 + $0x184] sm:$0xf] }
 0x261   : > { %v1695_v36 = vadd.f32 %v9315_v29, %v1625_v46  ;;  %v11396_v46 = vld [vmem:[#allocation19_spill] sm:$0xff] }
 0x262   : > { %v1696_v50 = vadd.f32 %v9319_v44, %v1626_v20 }
 0x263   : > { %v1759_v62 = vmax.f32 %v1695_v36, 0.0 }
 0x264   : > { %v1760_v41 = vmax.f32 %v1696_v50, 0.0 }
 0x266   : > { %v1802_v32 = vpack.c.bf16 %v1760_v41, %v1759_v62  ;;  %v1469_v22 = vpop.f32.mrf.mxu0 }
 0x267   : > { %v1627_v39 = vadd.f32 %v1469_v22, %v11394_v5  ;;  %v1558_v30 = vpop.f32.mrf.mxu1 }
 0x268   : > { %v2000_v4 = vunpack.c.l.b16 %v1802_v32  ;;  %v2001_v6 = vunpack.c.h.b16 %v1802_v32  ;;  %v1628_v27 = vadd.f32 %v1558_v30, %v11395_v12 }
 0x269   : > { %v1697_v9 = vadd.f32 %v9315_v29, %v1627_v39  ;;  %2617 = vmatmul.bf16.gmra.mxu0 %v9565_v53 }
 0x26a   : > { %v9700_v35 = vpack.c.b16 %v2000_v4, %v1998_v40  ;;  %v9702_v45 = vpack.c.b16 %v2001_v6, %v1999_v18  ;;  %v1698_v42 = vadd.f32 %v9319_v44, %v1628_v27  ;;  %2686 = vmatmul.bf16.gmra.mxu1 %v9567_v51 }
 0x26b   : > { %v1761_v1 = vmax.f32 %v1697_v9, 0.0 }
 0x26c   : > { %v1762_v58 = vmax.f32 %v1698_v42, 0.0  ;;  %2366 = vmatmul.bf16.gmra.mxu2 %v9700_v35  ;;  %2435 = vmatmul.bf16.gmra.mxu3 %v9702_v45 }
 0x26e   : > { %v1803_v38 = vpack.c.bf16 %v1762_v58, %v1761_v1  ;;  %v1471_v48 = vpop.f32.mrf.mxu0 }
 0x26f   : > { %v1629_v13 = vadd.f32 %v1471_v48, %v11396_v46  ;;  %v1560_v10 = vpop.f32.mrf.mxu1  ;;  %v2327_v20 = vpop.f32.mrf.mxu2 }
 0x270   : > { %v1630_v23 = vadd.f32 %v1560_v10, %v11397_v61  ;;  %v2396_v36 = vpop.f32.mrf.mxu3  ;;  %v2002_v5 = vunpack.c.l.b16 %v1803_v38  ;;  %v2003_v4 = vunpack.c.h.b16 %v1803_v38  ;;  %v8282_v10 = vld [vmem:[%s11339_s4 + $0x244] sm:$0xf] }
 0x271   : > { %v1699_v47 = vadd.f32 %v9315_v29, %v1629_v13  ;;  %v9717_v50 = vadd.f32 %v2396_v36, %v2327_v20  ;;  %v6967_v20 = vld [vmem:[%s11339_s4 + $0x24c] sm:$0xf0] }
 0x272   : > { %v1700_v62 = vadd.f32 %v9319_v44, %v1630_v23 }
 0x273   : > { %v1763_v41 = vmax.f32 %v1699_v47, 0.0  ;;  %v6970_v47 = vor.u32 %v8282_v10, %v6967_v20 }
 0x274   : > { %v1764_v32 = vmax.f32 %v1700_v62, 0.0  ;;  %v11398_v62 = vld [vmem:[#allocation21_spill] sm:$0xff] }
 0x275   : > { %2532 = vmatpush.bf16.msrb.mxu3 %v6970_v47 }
 0x276   : > { %v1804_v22 = vpack.c.bf16 %v1764_v32, %v1763_v41  ;;  %v1474_v40 = vpop.f32.mrf.mxu0 }
 0x277   : > { %v1631_v39 = vadd.f32 %v1474_v40, %v9284_v19  ;;  %v1563_v30 = vpop.f32.mrf.mxu1  ;;  %v2329_v18 = vpop.f32.mrf.mxu2 }
 0x278   : > { %v2004_v6 = vunpack.c.l.b16 %v1804_v22  ;;  %v2005_v12 = vunpack.c.h.b16 %v1804_v22  ;;  %v1632_v27 = vadd.f32 %v1563_v30, %v9286_v57  ;;  %v2398_v9 = vpop.f32.mrf.mxu3  ;;  %v6871_v57 = vld [vmem:[%s11339_s4 + $0x18c] sm:$0xf0] }
 0x279   : > { %v1701_v42 = vadd.f32 %v9315_v29, %v1631_v39  ;;  %v9723_v7 = vadd.f32 %v2398_v9, %v2329_v18  ;;  %2622 = vmatmul.bf16.gmra.mxu0 %v9594_v43  ;;  %v6874_v38 = vor.u32 %v8258_v28, %v6871_v57  ;;  %v11400_v57 = vld [vmem:[#allocation23_spill] sm:$0xff] }
 0x27a   : > { %v9726_v60 = vpack.c.b16 %v2004_v6, %v2002_v5  ;;  %v9728_v1 = vpack.c.b16 %v2005_v12, %v2003_v4  ;;  %v1702_v19 = vadd.f32 %v9319_v44, %v1632_v27  ;;  %2691 = vmatmul.bf16.gmra.mxu1 %v9596_v24  ;;  %v11399_v12 = vld [vmem:[#allocation22_spill] sm:$0xff] }
 0x27b   : > { %v1765_v58 = vmax.f32 %v1701_v42, 0.0  ;;  %2463 = vmatpush.bf16.msrb.mxu2 %v6874_v38 }
 0x27c   : > { %v1766_v48 = vmax.f32 %v1702_v19, 0.0  ;;  %2371 = vmatmul.bf16.gmra.mxu2 %v9726_v60  ;;  %2440 = vmatmul.bf16.gmra.mxu3 %v9728_v1 }
 0x27e   : > { %v1805_v46 = vpack.c.bf16 %v1766_v48, %v1765_v58  ;;  %v1476_v13 = vpop.f32.mrf.mxu0 }
 0x27f   : > { %v1633_v61 = vadd.f32 %v1476_v13, %v9288_v16  ;;  %v1565_v23 = vpop.f32.mrf.mxu1  ;;  %v2332_v36 = vpop.f32.mrf.mxu2 }
 0x280   : > { %v1634_v41 = vadd.f32 %v1565_v23, %v11398_v62  ;;  %v2401_v32 = vpop.f32.mrf.mxu3  ;;  %v2006_v6 = vunpack.c.l.b16 %v1805_v46  ;;  %v2007_v42 = vunpack.c.h.b16 %v1805_v46  ;;  %v7145_v62 = vld [vmem:[%s11339_s4 + $0xa8] sm:$0xf] }
 0x281   : > { %v1703_v22 = vadd.f32 %v9315_v29, %v1633_v61  ;;  %v9749_v40 = vadd.f32 %v2401_v32, %v2332_v36  ;;  %v11401_v32 = vld [vmem:[#allocation26_spill] sm:$0xff] }
 0x282   : > { %v1704_v5 = vadd.f32 %v9319_v44, %v1634_v41  ;;  %v8232_v41 = vld [vmem:[%s11339_s4 + $0xb0] sm:$0xf0] }
 0x283   : > { %v1767_v39 = vmax.f32 %v1703_v22, 0.0 }
 0x284   : > { %v1768_v30 = vmax.f32 %v1704_v5, 0.0 }
 0x286   : > { %v1806_v18 = vpack.c.bf16 %v1768_v30, %v1767_v39  ;;  %v1479_v4 = vpop.f32.mrf.mxu0  ;;  %v7146_v30 = vor.u32 %v8232_v41, %v7145_v62 }
 0x287   : > { %v1635_v16 = vadd.f32 %v1479_v4, %v11399_v12  ;;  %v1568_v27 = vpop.f32.mrf.mxu1  ;;  %v2334_v9 = vpop.f32.mrf.mxu2 }
 0x288   : > { %v2008_v19 = vunpack.c.l.b16 %v1806_v18  ;;  %v2009_v28 = vunpack.c.h.b16 %v1806_v18  ;;  %v1636_v58 = vadd.f32 %v1568_v27, %v11400_v57  ;;  %v2403_v38 = vpop.f32.mrf.mxu3  ;;  %v11402_v18 = vld [vmem:[#allocation27_spill] sm:$0xff]  ;;  %3008 = vmatpush.bf16.msra.mxu2 %v7146_v30  ;;  %v7241_v57 = vld [vmem:[%s11339_s4 + $0x168] sm:$0xf] }
 0x289   : > { %v1705_v48 = vadd.f32 %v9315_v29, %v1635_v16  ;;  %v9755_v13 = vadd.f32 %v2403_v38, %v2334_v9  ;;  %2627 = vmatmul.bf16.gmra.mxu0 %v9616_v31 }
 0x28a   : > { %v9758_v10 = vpack.c.b16 %v2008_v19, %v2006_v6  ;;  %v9760_v20 = vpack.c.b16 %v2009_v28, %v2007_v42  ;;  %v1706_v61 = vadd.f32 %v9319_v44, %v1636_v58  ;;  %2696 = vmatmul.bf16.gmra.mxu1 %v9618_v8  ;;  %v8256_v58 = vld [vmem:[%s11339_s4 + $0x170] sm:$0xf0] }
 0x28b   : > { %v1769_v46 = vmax.f32 %v1705_v48, 0.0  ;;  %v11403_v48 = vld [vmem:[#allocation28_spill] sm:$0xff] }
 0x28c   : > { %v1770_v23 = vmax.f32 %v1706_v61, 0.0  ;;  %2376 = vmatmul.bf16.gmra.mxu2 %v9758_v10  ;;  %2445 = vmatmul.bf16.gmra.mxu3 %v9760_v20 }
 0x28e   : > { %v1807_v36 = vpack.c.bf16 %v1770_v23, %v1769_v46  ;;  %v1481_v47 = vpop.f32.mrf.mxu0 }
 0x28f   : > { %v1637_v22 = vadd.f32 %v1481_v47, %v11401_v32  ;;  %v1570_v5 = vpop.f32.mrf.mxu1  ;;  %v2337_v39 = vpop.f32.mrf.mxu2  ;;  %v7242_v47 = vor.u32 %v8256_v58, %v7241_v57 }
 0x290   : > { %v1638_v4 = vadd.f32 %v1570_v5, %v11402_v18  ;;  %v2406_v6 = vpop.f32.mrf.mxu3  ;;  %v2010_v38 = vunpack.c.l.b16 %v1807_v36  ;;  %v2011_v62 = vunpack.c.h.b16 %v1807_v36 }
 0x291   : > { %v1707_v12 = vadd.f32 %v9315_v29, %v1637_v22  ;;  %v9775_v16 = vadd.f32 %v2406_v6, %v2337_v39  ;;  %v11404_v22 = vld [vmem:[#allocation29_spill] sm:$0xff]  ;;  %3077 = vmatpush.bf16.msra.mxu3 %v7242_v47 }
 0x292   : > { %v1708_v27 = vadd.f32 %v9319_v44, %v1638_v4 }
 0x293   : > { %v1771_v9 = vmax.f32 %v1707_v12, 0.0 }
 0x294   : > { %v1772_v42 = vmax.f32 %v1708_v27, 0.0 }
 0x296   : > { %v1808_v19 = vpack.c.bf16 %v1772_v42, %v1771_v9  ;;  %v1484_v28 = vpop.f32.mrf.mxu0  ;;  %v11405_v9 = vld [vmem:[#allocation24_spill] sm:$0xff] }
 0x297   : > { %v1639_v61 = vadd.f32 %v1484_v28, %v11403_v48  ;;  %v1573_v46 = vpop.f32.mrf.mxu1  ;;  %v2339_v23 = vpop.f32.mrf.mxu2  ;;  %v1256_v42 = vadd.f32 %v9662_v25, %v11405_v9  ;;  %v8229_v25 = vld [vmem:[%s11339_s4 + $0x98] sm:$0xf0] }
 0x298   : > { %v2012_v41 = vunpack.c.l.b16 %v1808_v19  ;;  %v2013_v32 = vunpack.c.h.b16 %v1808_v19  ;;  %v1640_v5 = vadd.f32 %v1573_v46, %v11404_v22  ;;  %v2408_v39 = vpop.f32.mrf.mxu3  ;;  %v11406_v19 = vld [vmem:[#allocation25_spill] sm:$0xff] }
 0x299   : > { %v1709_v30 = vadd.f32 %v9315_v29, %v1639_v61  ;;  %v9787_v18 = vadd.f32 %v2408_v39, %v2339_v23  ;;  %2632 = vmatmul.bf16.gmra.mxu0 %v9638_v63  ;;  %v1345_v28 = vadd.f32 %v9664_v0, %v11406_v19  ;;  %v11407_v39 = vld [vmem:[#allocation8_spill] sm:$0xff] }
 0x29a   : > { %v9790_v4 = vpack.c.b16 %v2012_v41, %v2010_v38  ;;  %v9792_v6 = vpack.c.b16 %v2013_v32, %v2011_v62  ;;  %v1710_v12 = vadd.f32 %v9319_v44, %v1640_v5  ;;  %2701 = vmatmul.bf16.gmra.mxu1 %v9640_v59  ;;  %v7133_v41 = vld [vmem:[%s11339_s4 + $0x90] sm:$0xf] }
 0x29b   : > { %v1773_v36 = vmax.f32 %v1709_v30, 0.0  ;;  %v7134_v32 = vor.u32 %v8229_v25, %v7133_v41  ;;  %v1259_v30 = vadd.f32 %v9678_v17, %v11407_v39  ;;  %v8253_v25 = vld [vmem:[%s11339_s4 + $0x158] sm:$0xf0]  ;;  %v11411_v39 = vld [vmem:[#allocation10_spill] sm:$0xff] }
 0x29c   : > { %v1774_v27 = vmax.f32 %v1710_v12, 0.0  ;;  %2381 = vmatmul.bf16.gmra.mxu2 %v9790_v4  ;;  %2450 = vmatmul.bf16.gmra.mxu3 %v9792_v6  ;;  %v11408_v12 = vld [vmem:[#allocation9_spill] sm:$0xff] }
 0x29d   : > { %3009 = vmatpush.bf16.msra.mxu2 %v7134_v32 }
 0x29e   : > { %v1809_v57 = vpack.c.bf16 %v1774_v27, %v1773_v36  ;;  %v1486_v58 = vpop.f32.mrf.mxu0  ;;  %v1348_v36 = vadd.f32 %v9680_v37, %v11408_v12  ;;  %v7229_v37 = vld [vmem:[%s11339_s4 + $0x150] sm:$0xf]  ;;  %v11412_v12 = vld [vmem:[#allocation11_spill] sm:$0xff] }
 0x29f   : > { %v1641_v38 = vadd.f32 %v1486_v58, %v1256_v42  ;;  %v1575_v48 = vpop.f32.mrf.mxu1  ;;  %v2342_v61 = vpop.f32.mrf.mxu2 }
 0x2a0   : > { %v1642_v46 = vadd.f32 %v1575_v48, %v1345_v28  ;;  %v2411_v23 = vpop.f32.mrf.mxu3  ;;  %v3491_v58 = vunpack.c.l.b16 %v1809_v57 }
 0x2a1   : > { %v1711_v47 = vadd.f32 %v9315_v29, %v1641_v38  ;;  %v9803_v62 = vadd.f32 %v2411_v23, %v2342_v61 }
 0x2a2   : > { %v1712_v0 = vadd.f32 %v9319_v44, %v1642_v46  ;;  %v3492_v46 = vunpack.c.h.b16 %v1809_v57 }
 0x2a3   : > { %v1775_v22 = vmax.f32 %v1711_v47, 0.0 }
 0x2a4   : > { %v1776_v5 = vmax.f32 %v1712_v0, 0.0 }
 0x2a6   : > { %v1810_v27 = vpack.c.bf16 %v1776_v5, %v1775_v22  ;;  %v1489_v9 = vpop.f32.mrf.mxu0  ;;  %v7230_v22 = vor.u32 %v8253_v25, %v7229_v37 }
 0x2a7   : > { %v1643_v42 = vadd.f32 %v1489_v9, %v1259_v30  ;;  %v1578_v19 = vpop.f32.mrf.mxu1  ;;  %v2344_v28 = vpop.f32.mrf.mxu2  ;;  %v1261_v30 = vadd.f32 %v9692_v21, %v11411_v39 }
 0x2a8   : > { %v1644_v38 = vadd.f32 %v1578_v19, %v1348_v36  ;;  %v2413_v48 = vpop.f32.mrf.mxu3  ;;  %v3493_v61 = vunpack.c.l.b16 %v1810_v27  ;;  %v3494_v23 = vunpack.c.h.b16 %v1810_v27  ;;  %3078 = vmatpush.bf16.msra.mxu3 %v7230_v22  ;;  %v1350_v36 = vadd.f32 %v9695_v33, %v11412_v12 }
 0x2a9   : > { %v1713_v47 = vadd.f32 %v9315_v29, %v1643_v42  ;;  %v9817_v41 = vadd.f32 %v2413_v48, %v2344_v28  ;;  %2637 = vmatmul.bf16.gmra.mxu0 %v9670_v2 }
 0x2aa   : > { %v1714_v17 = vadd.f32 %v9319_v44, %v1644_v38  ;;  %2706 = vmatmul.bf16.gmra.mxu1 %v9672_v56  ;;  %v9828_v57 = vpack.c.b16 %v3493_v61, %v3491_v58  ;;  %v9830_v0 = vpack.c.b16 %v3494_v23, %v3492_v46 }
 0x2ab   : > { %v1777_v32 = vmax.f32 %v1713_v47, 0.0 }
 0x2ac   : > { %11409 = vst [vmem:[#allocation12_spill] sm:$0xff] %v9828_v57  ;;  %v1778_v5 = vmax.f32 %v1714_v17, 0.0  ;;  %2464 = vmatmul.bf16.vlgmr.msrb.gmra.mxu2 %v9416_v54  ;;  %2533 = vmatmul.bf16.vlgmr.msrb.gmra.mxu3 %v9418_v15 }
 0x2ad   : > { %11410 = vst [vmem:[#allocation13_spill] sm:$0xff] %v9830_v0 }
 0x2ae   : > { %v1811_v27 = vpack.c.bf16 %v1778_v5, %v1777_v32  ;;  %v1491_v9 = vpop.f32.mrf.mxu0 }
 0x2af   : > { %v1645_v42 = vadd.f32 %v1491_v9, %v1261_v30  ;;  %v1580_v19 = vpop.f32.mrf.mxu1  ;;  %v2347_v28 = vpop.f32.mrf.mxu2  ;;  %v7243_v9 = vld [vmem:[%s11339_s4 + $0x174] sm:$0xf0] }
 0x2b0   : > { %v1646_v58 = vadd.f32 %v1580_v19, %v1350_v36  ;;  %v2416_v38 = vpop.f32.mrf.mxu3  ;;  %v3495_v33 = vunpack.c.l.b16 %v1811_v27  ;;  %v3496_v39 = vunpack.c.h.b16 %v1811_v27  ;;  %v8255_v36 = vld [vmem:[%s11339_s4 + $0x16c] sm:$0xf] }
 0x2b1   : > { %v1715_v48 = vadd.f32 %v9315_v29, %v1645_v42  ;;  %v9839_v61 = vadd.f32 %v2416_v38, %v2347_v28  ;;  %v7147_v29 = vld [vmem:[%s11339_s4 + $0xb4] sm:$0xf0]  ;;  %v7246_v28 = vor.u32 %v8255_v36, %v7243_v9  ;;  %v8226_v38 = vld [vmem:[%s11339_s4 + $0x80] sm:$0xf0]  ;;  %v8225_v36 = vld [vmem:[%s11339_s4 + $0x7c] sm:$0xf] }
 0x2b2   : > { %v1716_v46 = vadd.f32 %v9319_v44, %v1646_v58  ;;  %v8231_v44 = vld [vmem:[%s11339_s4 + $0xac] sm:$0xf]  ;;  %v7121_v58 = vld [vmem:[%s11339_s4 + $0x78] sm:$0xf]  ;;  %v7123_v9 = vld [vmem:[%s11339_s4 + $0x84] sm:$0xf0] }
 0x2b3   : > { %v1779_v23 = vmax.f32 %v1715_v48, 0.0  ;;  %v7150_v27 = vor.u32 %v8231_v44, %v7147_v29  ;;  %3215 = vmatpush.bf16.msrb.mxu1 %v7246_v28  ;;  %v7122_v48 = vor.u32 %v8226_v38, %v7121_v58  ;;  %v7217_v44 = vld [vmem:[%s11339_s4 + $0x138] sm:$0xf]  ;;  %v8250_v29 = vld [vmem:[%s11339_s4 + $0x140] sm:$0xf0]  ;;  %v7126_v38 = vor.u32 %v8225_v36, %v7123_v9 }
 0x2b4   : > { %v1780_v47 = vmax.f32 %v1716_v46, 0.0  ;;  %v8228_v46 = vld [vmem:[%s11339_s4 + $0x94] sm:$0xf]  ;;  %v8249_v28 = vld [vmem:[%s11339_s4 + $0x13c] sm:$0xf] }
 0x2b5   : > { %3146 = vmatpush.bf16.msrb.mxu0 %v7150_v27  ;;  %3010 = vmatpush.bf16.msra.mxu2 %v7122_v48  ;;  %v7218_v27 = vor.u32 %v8250_v29, %v7217_v44  ;;  %v7219_v58 = vld [vmem:[%s11339_s4 + $0x144] sm:$0xf0]  ;;  %v8219_v36 = vld [vmem:[%s11339_s4 + $0x4c] sm:$0xf] }
 0x2b6   : > { %v1812_v21 = vpack.c.bf16 %v1780_v47, %v1779_v23  ;;  %v2603_v17 = vpop.f32.mrf.mxu0  ;;  %v7135_v23 = vld [vmem:[%s11339_s4 + $0x9c] sm:$0xf0]  ;;  %v8252_v47 = vld [vmem:[%s11339_s4 + $0x154] sm:$0xf]  ;;  %v7222_v48 = vor.u32 %v8249_v28, %v7219_v58  ;;  %v8243_v9 = vld [vmem:[%s11339_s4 + $0x10c] sm:$0xf] }
 0x2b7   : > { %v2349_v37 = vpop.f32.mrf.mxu2  ;;  %v2672_v25 = vpop.f32.mrf.mxu1  ;;  %3079 = vmatpush.bf16.msra.mxu3 %v7218_v27  ;;  %v7099_v27 = vld [vmem:[%s11339_s4 + $0x54] sm:$0xf0] }
 0x2b8   : > { %v2418_v32 = vpop.f32.mrf.mxu3  ;;  %v9842_v22 = vadd.f32 %v2672_v25, %v2603_v17  ;;  %v3497_v5 = vunpack.c.l.b16 %v1812_v21  ;;  %v3498_v30 = vunpack.c.h.b16 %v1812_v21  ;;  %v7138_v17 = vor.u32 %v8228_v46, %v7135_v23  ;;  %v8222_v46 = vld [vmem:[%s11339_s4 + $0x64] sm:$0xf]  ;;  %v7111_v23 = vld [vmem:[%s11339_s4 + $0x6c] sm:$0xf0]  ;;  %v7195_v58 = vld [vmem:[%s11339_s4 + $0x114] sm:$0xf0] }
 0x2b9   : > { %v9844_v12 = vadd.f32 %v2418_v32, %v2349_v37  ;;  %2642 = vmatmul.bf16.gmra.mxu0 %v9700_v35  ;;  %v7231_v37 = vld [vmem:[%s11339_s4 + $0x15c] sm:$0xf0]  ;;  %v7102_v28 = vor.u32 %v8219_v36, %v7099_v27  ;;  %v8213_v27 = vld [vmem:[%s11339_s4 + $0x1c] sm:$0xf] }
 0x2ba   : > { %11413 = vst [vmem:[#allocation14_spill] sm:$0xff] %v9842_v22  ;;  %2711 = vmatmul.bf16.gmra.mxu1 %v9702_v45  ;;  %v9860_v42 = vpack.c.b16 %v3497_v5, %v3495_v33  ;;  %v9862_v19 = vpack.c.b16 %v3498_v30, %v3496_v39  ;;  %v7234_v32 = vor.u32 %v8252_v47, %v7231_v37  ;;  %v8246_v47 = vld [vmem:[%s11339_s4 + $0x124] sm:$0xf]  ;;  %v7207_v37 = vld [vmem:[%s11339_s4 + $0x12c] sm:$0xf0] }
 0x2bb   : > { %3147 = vmatpush.bf16.msrb.mxu0 %v7138_v17  ;;  %v7114_v17 = vor.u32 %v8222_v46, %v7111_v23  ;;  %v7087_v46 = vld [vmem:[%s11339_s4 + $0x3c] sm:$0xf0]  ;;  %v8240_v23 = vld [vmem:[%s11339_s4 + $0xf4] sm:$0xf] }
 0x2bc   : > { %11414 = vst [vmem:[#allocation15_spill] sm:$0xff] %v9860_v42  ;;  %2469 = vmatmul.bf16.gmra.mxu2 %v9446_v52  ;;  %2538 = vmatmul.bf16.gmra.mxu3 %v9448_v26 }
 0x2bd   : > { %11415 = vst [vmem:[#allocation16_spill] sm:$0xff] %v9862_v19  ;;  %3216 = vmatpush.bf16.msrb.mxu1 %v7234_v32  ;;  %v7210_v32 = vor.u32 %v8246_v47, %v7207_v37 }
 0x2be   : > { %v2605_v21 = vpop.f32.mrf.mxu0 }
 0x2bf   : > { %v2352_v25 = vpop.f32.mrf.mxu2  ;;  %v2674_v33 = vpop.f32.mrf.mxu1  ;;  %3148 = vmatpush.bf16.msrb.mxu0 %v7126_v38  ;;  %v7198_v38 = vor.u32 %v8243_v9, %v7195_v58  ;;  %v7075_v9 = vld [vmem:[%s11339_s4 + $0x24] sm:$0xf0] }
 0x2c0   : > { %v2421_v5 = vpop.f32.mrf.mxu3  ;;  %v9884_v39 = vadd.f32 %v2674_v33, %v2605_v21  ;;  %v7078_v58 = vor.u32 %v8213_v27, %v7075_v9 }
 0x2c1   : > { %v9886_v30 = vadd.f32 %v2421_v5, %v2352_v25  ;;  %3217 = vmatpush.bf16.msrb.mxu1 %v7222_v48  ;;  %v8216_v48 = vld [vmem:[%s11339_s4 + $0x34] sm:$0xf] }
 0x2c2   : > { %11416 = vst [vmem:[#allocation17_spill] sm:$0xff] %v9884_v39 }
 0x2c3   : > { %3149 = vmatpush.bf16.msrb.mxu0 %v7114_v17  ;;  %v7183_v17 = vld [vmem:[%s11339_s4 + $0xfc] sm:$0xf0] }
 0x2c5   : > { %3218 = vmatpush.bf16.msrb.mxu1 %v7210_v32 }
 0x2c6   : > { %v2608_v21 = vpop.f32.mrf.mxu0 }
 0x2c7   : > { %v2354_v25 = vpop.f32.mrf.mxu2  ;;  %v2677_v33 = vpop.f32.mrf.mxu1  ;;  %3150 = vmatpush.bf16.msrb.mxu0 %v7102_v28  ;;  %v8237_v28 = vld [vmem:[%s11339_s4 + $0xdc] sm:$0xf] }
 0x2c8   : > { %v2423_v5 = vpop.f32.mrf.mxu3  ;;  %v9918_v44 = vadd.f32 %v2677_v33, %v2608_v21  ;;  %v7090_v21 = vor.u32 %v8216_v48, %v7087_v46  ;;  %v7186_v33 = vor.u32 %v8240_v23, %v7183_v17  ;;  %v7109_v48 = vld [vmem:[%s11339_s4 + $0x60] sm:$0xf]  ;;  %v8223_v46 = vld [vmem:[%s11339_s4 + $0x68] sm:$0xf0]  ;;  %v7063_v17 = vld [vmem:[%s11339_s4 + $0xc] sm:$0xf0] }
 0x2c9   : > { %v9920_v29 = vadd.f32 %v2423_v5, %v2354_v25  ;;  %2647 = vmatmul.bf16.gmra.mxu0 %v9726_v60  ;;  %3219 = vmatpush.bf16.msrb.mxu1 %v7198_v38  ;;  %v7171_v38 = vld [vmem:[%s11339_s4 + $0xe4] sm:$0xf0] }
 0x2ca   : > { %11417 = vst [vmem:[#allocation18_spill] sm:$0xff] %v9918_v44  ;;  %2716 = vmatmul.bf16.gmra.mxu1 %v9728_v1  ;;  %v7174_v23 = vor.u32 %v8237_v28, %v7171_v38 }
 0x2cb   : > { %3151 = vmatpush.bf16.msrb.mxu0 %v7090_v21  ;;  %v8210_v21 = vld [vmem:[%s11339_s4 + $0x4] sm:$0xf] }
 0x2cc   : > { %2474 = vmatmul.bf16.gmra.mxu2 %v9506_v11  ;;  %2543 = vmatmul.bf16.gmra.mxu3 %v9508_v55 }
 0x2cd   : > { %3220 = vmatpush.bf16.msrb.mxu1 %v7186_v33  ;;  %v7066_v33 = vor.u32 %v8210_v21, %v7063_v17 }
 0x2ce   : > { %v2610_v47 = vpop.f32.mrf.mxu0 }
 0x2cf   : > { %v2357_v37 = vpop.f32.mrf.mxu2  ;;  %v2679_v25 = vpop.f32.mrf.mxu1  ;;  %3152 = vmatpush.bf16.msrb.mxu0 %v7078_v58  ;;  %v7205_v58 = vld [vmem:[%s11339_s4 + $0x120] sm:$0xf] }
 0x2d0   : > { %v2426_v32 = vpop.f32.mrf.mxu3  ;;  %v9950_v5 = vadd.f32 %v2679_v25, %v2610_v47  ;;  %v7110_v47 = vor.u32 %v8223_v46, %v7109_v48 }
 0x2d1   : > { %v9952_v36 = vadd.f32 %v2426_v32, %v2357_v37  ;;  %3221 = vmatpush.bf16.msrb.mxu1 %v7174_v23  ;;  %v8234_v37 = vld [vmem:[%s11339_s4 + $0xc4] sm:$0xf]  ;;  %v7159_v32 = vld [vmem:[%s11339_s4 + $0xcc] sm:$0xf0]  ;;  %v8247_v23 = vld [vmem:[%s11339_s4 + $0x128] sm:$0xf0] }
 0x2d2   : > { %11418 = vst [vmem:[#allocation19_spill] sm:$0xff] %v9950_v5  ;;  %3011 = vmatpush.bf16.msra.mxu2 %v7110_v47  ;;  %v7162_v28 = vor.u32 %v8234_v37, %v7159_v32  ;;  %v7206_v47 = vor.u32 %v8247_v23, %v7205_v58  ;;  %v7097_v58 = vld [vmem:[%s11339_s4 + $0x48] sm:$0xf]  ;;  %v8220_v23 = vld [vmem:[%s11339_s4 + $0x50] sm:$0xf0] }
 0x2d3   : > { %3153 = vmatpush.bf16.msrb.mxu0 %v7066_v33 }
 0x2d4   : > { %3080 = vmatpush.bf16.msra.mxu3 %v7206_v47  ;;  %v7098_v47 = vor.u32 %v8220_v23, %v7097_v58 }
 0x2d5   : > { %3222 = vmatpush.bf16.msrb.mxu1 %v7162_v28 }
 0x2d6   : > { %v2613_v25 = vpop.f32.mrf.mxu0  ;;  %3012 = vmatpush.bf16.msra.mxu2 %v7098_v47 }
 0x2d7   : > { %v2359_v27 = vpop.f32.mrf.mxu2  ;;  %v2682_v9 = vpop.f32.mrf.mxu1 }
 0x2d8   : > { %v2428_v38 = vpop.f32.mrf.mxu3  ;;  %v9984_v48 = vadd.f32 %v2682_v9, %v2613_v25 }
 0x2d9   : > { %v9986_v46 = vadd.f32 %v2428_v38, %v2359_v27  ;;  %2652 = vmatmul.bf16.gmra.mxu0 %v9758_v10 }
 0x2da   : > { %11419 = vst [vmem:[#allocation20_spill] sm:$0xff] %v9984_v48  ;;  %2721 = vmatmul.bf16.gmra.mxu1 %v9760_v20 }
 0x2db   : > { %11420 = vst [vmem:[#allocation21_spill] sm:$0xff] %v9986_v46 }
 0x2dc   : > { %2479 = vmatmul.bf16.gmra.mxu2 %v9565_v53  ;;  %2548 = vmatmul.bf16.gmra.mxu3 %v9567_v51 }
 0x2de   : > { %v2615_v21 = vpop.f32.mrf.mxu0 }
 0x2df   : > { %v2362_v17 = vpop.f32.mrf.mxu2  ;;  %v2684_v37 = vpop.f32.mrf.mxu1 }
 0x2e0   : > { %v2431_v25 = vpop.f32.mrf.mxu3  ;;  %v9998_v32 = vadd.f32 %v2684_v37, %v2615_v21 }
 0x2e1   : > { %v10000_v27 = vadd.f32 %v2431_v25, %v2362_v17 }
 0x2e2   : > { %11421 = vst [vmem:[#allocation22_spill] sm:$0xff] %v9998_v32 }
 0x2e3   : > { %11422 = vst [vmem:[#allocation23_spill] sm:$0xff] %v10000_v27 }
 0x2e6   : > { %v2618_v9 = vpop.f32.mrf.mxu0 }
 0x2e7   : > { %v2364_v28 = vpop.f32.mrf.mxu2  ;;  %v2687_v38 = vpop.f32.mrf.mxu1 }
 0x2e8   : > { %v2433_v48 = vpop.f32.mrf.mxu3  ;;  %v10002_v5 = vadd.f32 %v2687_v38, %v2618_v9  ;;  %v8244_v38 = vld [vmem:[%s11339_s4 + $0x110] sm:$0xf0] }
 0x2e9   : > { %v10004_v33 = vadd.f32 %v2433_v48, %v2364_v28  ;;  %2657 = vmatmul.bf16.gmra.mxu0 %v9790_v4  ;;  %v7193_v28 = vld [vmem:[%s11339_s4 + $0x108] sm:$0xf] }
 0x2ea   : > { %11423 = vst [vmem:[#allocation26_spill] sm:$0xff] %v10002_v5  ;;  %2726 = vmatmul.bf16.gmra.mxu1 %v9792_v6  ;;  %v7194_v5 = vor.u32 %v8244_v38, %v7193_v28 }
 0x2eb   : > { %11424 = vst [vmem:[#allocation27_spill] sm:$0xff] %v10004_v33 }
 0x2ec   : > { %2484 = vmatmul.bf16.gmra.mxu2 %v9594_v43  ;;  %2553 = vmatmul.bf16.gmra.mxu3 %v9596_v24 }
 0x2ed   : > { %3081 = vmatpush.bf16.msra.mxu3 %v7194_v5 }
 0x2ee   : > { %v2620_v21 = vpop.f32.mrf.mxu0 }
 0x2ef   : > { %v2367_v48 = vpop.f32.mrf.mxu2  ;;  %v2689_v17 = vpop.f32.mrf.mxu1 }
 0x2f0   : > { %v2436_v37 = vpop.f32.mrf.mxu3  ;;  %v10016_v25 = vadd.f32 %v2689_v17, %v2620_v21 }
 0x2f1   : > { %v10018_v9 = vadd.f32 %v2436_v37, %v2367_v48 }
 0x2f2   : > { %11425 = vst [vmem:[#allocation28_spill] sm:$0xff] %v10016_v25 }
 0x2f3   : > { %11426 = vst [vmem:[#allocation29_spill] sm:$0xff] %v10018_v9 }
 0x2f6   : > { %v2623_v58 = vpop.f32.mrf.mxu0 }
 0x2f7   : > { %v2369_v23 = vpop.f32.mrf.mxu2  ;;  %v2692_v32 = vpop.f32.mrf.mxu1 }
 0x2f8   : > { %v2438_v44 = vpop.f32.mrf.mxu3  ;;  %v10026_v47 = vadd.f32 %v2692_v32, %v2623_v58  ;;  %v8217_v32 = vld [vmem:[%s11339_s4 + $0x38] sm:$0xf0] }
 0x2f9   : > { %v10028_v21 = vadd.f32 %v2438_v44, %v2369_v23  ;;  %3154 = vmatmul.bf16.vlgmr.msrb.gmra.mxu0 %v9360_v14  ;;  %v7085_v44 = vld [vmem:[%s11339_s4 + $0x30] sm:$0xf] }
 0x2fa   : > { %11427 = vst [vmem:[#allocation24_spill] sm:$0xff] %v10026_v47  ;;  %3223 = vmatmul.bf16.vlgmr.msrb.gmra.mxu1 %v9362_v34  ;;  %v7086_v58 = vor.u32 %v8217_v32, %v7085_v44 }
 0x2fb   : > { %11428 = vst [vmem:[#allocation25_spill] sm:$0xff] %v10028_v21 }
 0x2fc   : > { %2489 = vmatmul.bf16.gmra.mxu2 %v9616_v31  ;;  %2558 = vmatmul.bf16.gmra.mxu3 %v9618_v8 }
 0x2fd   : > { %3013 = vmatpush.bf16.msra.mxu2 %v7086_v58 }
 0x2fe   : > { %v2625_v48 = vpop.f32.mrf.mxu0 }
 0x2ff   : > { %v2372_v17 = vpop.f32.mrf.mxu2  ;;  %v2694_v37 = vpop.f32.mrf.mxu1 }
 0x300   : > { %v2441_v5 = vpop.f32.mrf.mxu3  ;;  %v10034_v28 = vadd.f32 %v2694_v37, %v2625_v48  ;;  %v8241_v37 = vld [vmem:[%s11339_s4 + $0xf8] sm:$0xf0] }
 0x301   : > { %v10036_v38 = vadd.f32 %v2441_v5, %v2372_v17  ;;  %v7181_v17 = vld [vmem:[%s11339_s4 + $0xf0] sm:$0xf] }
 0x302   : > { %11429 = vst [vmem:[#allocation8_spill] sm:$0xff] %v10034_v28  ;;  %v7182_v5 = vor.u32 %v8241_v37, %v7181_v17  ;;  %v7073_v37 = vld [vmem:[%s11339_s4 + $0x18] sm:$0xf] }
 0x303   : > { %11430 = vst [vmem:[#allocation9_spill] sm:$0xff] %v10036_v38 }
 0x304   : > { %3082 = vmatpush.bf16.msra.mxu3 %v7182_v5  ;;  %v8214_v5 = vld [vmem:[%s11339_s4 + $0x20] sm:$0xf0] }
 0x306   : > { %v2628_v23 = vpop.f32.mrf.mxu0 }
 0x307   : > { %v2374_v47 = vpop.f32.mrf.mxu2  ;;  %v2697_v25 = vpop.f32.mrf.mxu1 }
 0x308   : > { %v2443_v39 = vpop.f32.mrf.mxu3  ;;  %v10044_v22 = vadd.f32 %v2697_v25, %v2628_v23 }
 0x309   : > { %v10046_v48 = vadd.f32 %v2443_v39, %v2374_v47  ;;  %3159 = vmatmul.bf16.gmra.mxu0 %v9391_v3 }
 0x30a   : > { %11431 = vst [vmem:[#allocation10_spill] sm:$0xff] %v10044_v22  ;;  %3228 = vmatmul.bf16.gmra.mxu1 %v9393_v49 }
 0x30b   : > { %11432 = vst [vmem:[#allocation11_spill] sm:$0xff] %v10046_v48 }
 0x30c   : > { %2494 = vmatmul.bf16.gmra.mxu2 %v9638_v63  ;;  %2563 = vmatmul.bf16.gmra.mxu3 %v9640_v59 }
 0x30e   : > { %v2630_v39 = vpop.f32.mrf.mxu0 }
 0x30f   : > { %v2377_v25 = vpop.f32.mrf.mxu2  ;;  %v2699_v47 = vpop.f32.mrf.mxu1 }
 0x310   : > { %v2446_v44 = vpop.f32.mrf.mxu3  ;;  %v10058_v32 = vadd.f32 %v2699_v47, %v2630_v39 }
 0x311   : > { %v10060_v58 = vadd.f32 %v2446_v44, %v2377_v25 }
 0x312   : > { %11433 = vst [vmem:[#allocation31_spill] sm:$0xff] %v10058_v32 }
 0x313   : > { %11434 = vst [vmem:[#allocation32_spill] sm:$0xff] %v10060_v58 }
 0x316   : > { %v2633_v23 = vpop.f32.mrf.mxu0 }
 0x317   : > { %v2379_v22 = vpop.f32.mrf.mxu2  ;;  %v2702_v28 = vpop.f32.mrf.mxu1 }
 0x318   : > { %v2448_v48 = vpop.f32.mrf.mxu3  ;;  %v10062_v38 = vadd.f32 %v2702_v28, %v2633_v23  ;;  %v7074_v28 = vor.u32 %v8214_v5, %v7073_v37  ;;  %v7169_v23 = vld [vmem:[%s11339_s4 + $0xd8] sm:$0xf] }
 0x319   : > { %v10064_v17 = vadd.f32 %v2448_v48, %v2379_v22  ;;  %3164 = vmatmul.bf16.gmra.mxu0 %v9416_v54 }
 0x31a   : > { %11435 = vst [vmem:[#allocation33_spill] sm:$0xff] %v10062_v38  ;;  %3233 = vmatmul.bf16.gmra.mxu1 %v9418_v15  ;;  %3014 = vmatpush.bf16.msra.mxu2 %v7074_v28  ;;  %v8238_v38 = vld [vmem:[%s11339_s4 + $0xe0] sm:$0xf0] }
 0x31b   : > { %11436 = vst [vmem:[#allocation34_spill] sm:$0xff] %v10064_v17  ;;  %v7170_v32 = vor.u32 %v8238_v38, %v7169_v23 }
 0x31c   : > { %2499 = vmatmul.bf16.gmra.mxu2 %v9670_v2  ;;  %2568 = vmatmul.bf16.gmra.mxu3 %v9672_v56 }
 0x31d   : > { %3083 = vmatpush.bf16.msra.mxu3 %v7170_v32 }
 0x31e   : > { %v2635_v39 = vpop.f32.mrf.mxu0 }
 0x31f   : > { %v2382_v22 = vpop.f32.mrf.mxu2  ;;  %v2704_v48 = vpop.f32.mrf.mxu1 }
 0x320   : > { %v2451_v25 = vpop.f32.mrf.mxu3  ;;  %v10076_v47 = vadd.f32 %v2704_v48, %v2635_v39 }
 0x321   : > { %v10078_v44 = vadd.f32 %v2451_v25, %v2382_v22 }
 0x322   : > { %11437 = vst [vmem:[#allocation35_spill] sm:$0xff] %v10076_v47 }
 0x323   : > { %11438 = vst [vmem:[#allocation36_spill] sm:$0xff] %v10078_v44 }
 0x326   : > { %v2638_v37 = vpop.f32.mrf.mxu0 }
 0x327   : > { %v2384_v5 = vpop.f32.mrf.mxu2  ;;  %v2707_v17 = vpop.f32.mrf.mxu1 }
 0x328   : > { %v2453_v58 = vpop.f32.mrf.mxu3  ;;  %v10086_v28 = vadd.f32 %v2707_v17, %v2638_v37  ;;  %v8211_v17 = vld [vmem:[%s11339_s4 + $0x8] sm:$0xf0] }
 0x329   : > { %v10088_v39 = vadd.f32 %v2453_v58, %v2384_v5  ;;  %3169 = vmatmul.bf16.gmra.mxu0 %v9446_v52  ;;  %v7061_v58 = vld [vmem:[%s11339_s4] sm:$0xf] }
 0x32a   : > { %11439 = vst [vmem:[#allocation37_spill] sm:$0xff] %v10086_v28  ;;  %3238 = vmatmul.bf16.gmra.mxu1 %v9448_v26  ;;  %v7062_v37 = vor.u32 %v8211_v17, %v7061_v58 }
 0x32b   : > { %11440 = vst [vmem:[#allocation38_spill] sm:$0xff] %v10088_v39 }
 0x32c   : > { %2504 = vmatmul.bf16.gmra.mxu2 %v9700_v35  ;;  %2573 = vmatmul.bf16.gmra.mxu3 %v9702_v45 }
 0x32d   : > { %3015 = vmatpush.bf16.msra.mxu2 %v7062_v37 }
 0x32e   : > { %v2640_v22 = vpop.f32.mrf.mxu0 }
 0x32f   : > { %v2465_v48 = vpop.f32.mrf.mxu2  ;;  %v2709_v38 = vpop.f32.mrf.mxu1 }
 0x330   : > { %v2534_v32 = vpop.f32.mrf.mxu3  ;;  %v10094_v25 = vadd.f32 %v2709_v38, %v2640_v22  ;;  %v8235_v38 = vld [vmem:[%s11339_s4 + $0xc8] sm:$0xf0] }
 0x331   : > { %v10096_v23 = vadd.f32 %v2534_v32, %v2465_v48  ;;  %v7157_v48 = vld [vmem:[%s11339_s4 + $0xc0] sm:$0xf] }
 0x332   : > { %11441 = vst [vmem:[#allocation39_spill] sm:$0xff] %v10094_v25  ;;  %v7158_v32 = vor.u32 %v8235_v38, %v7157_v48  ;;  %v7153_v38 = vld [vmem:[%s11339_s4 + $0xb0] sm:$0xf] }
 0x334   : > { %3084 = vmatpush.bf16.msra.mxu3 %v7158_v32  ;;  %v8233_v32 = vld [vmem:[%s11339_s4 + $0xb8] sm:$0xf0] }
 0x336   : > { %v2643_v5 = vpop.f32.mrf.mxu0 }
 0x337   : > { %v2467_v28 = vpop.f32.mrf.mxu2  ;;  %v2712_v47 = vpop.f32.mrf.mxu1 }
 0x338   : > { %v2536_v39 = vpop.f32.mrf.mxu3  ;;  %v10104_v44 = vadd.f32 %v2712_v47, %v2643_v5 }
 0x339   : > { %v10106_v22 = vadd.f32 %v2536_v39, %v2467_v28  ;;  %3174 = vmatmul.bf16.gmra.mxu0 %v9506_v11 }
 0x33a   : > { %11442 = vst [vmem:[#allocation40_spill] sm:$0xff] %v10104_v44  ;;  %3243 = vmatmul.bf16.gmra.mxu1 %v9508_v55 }
 0x33c   : > { %2509 = vmatmul.bf16.gmra.mxu2 %v9726_v60  ;;  %2578 = vmatmul.bf16.gmra.mxu3 %v9728_v1 }
 0x33e   : > { %v2645_v47 = vpop.f32.mrf.mxu0 }
 0x33f   : > { %v2470_v28 = vpop.f32.mrf.mxu2  ;;  %v2714_v39 = vpop.f32.mrf.mxu1 }
 0x340   : > { %v2539_v58 = vpop.f32.mrf.mxu3  ;;  %v10118_v17 = vadd.f32 %v2714_v39, %v2645_v47 }
 0x341   : > { %v10120_v37 = vadd.f32 %v2539_v58, %v2470_v28 }
 0x342   : > { %11443 = vst [vmem:[#allocation41_spill] sm:$0xff] %v10118_v17 }
 0x346   : > { %v2648_v5 = vpop.f32.mrf.mxu0 }
 0x347   : > { %v2472_v44 = vpop.f32.mrf.mxu2  ;;  %v2717_v25 = vpop.f32.mrf.mxu1 }
 0x348   : > { %v2541_v21 = vpop.f32.mrf.mxu3  ;;  %v10122_v9 = vadd.f32 %v2717_v25, %v2648_v5  ;;  %v7154_v25 = vor.u32 %v8233_v32, %v7153_v38  ;;  %v7249_v5 = vld [vmem:[%s11339_s4 + $0x170] sm:$0xf] }
 0x349   : > { %v10124_v48 = vadd.f32 %v2541_v21, %v2472_v44  ;;  %3179 = vmatmul.bf16.gmra.mxu0 %v9565_v53 }
 0x34a   : > { %11444 = vst [vmem:[#allocation42_spill] sm:$0xff] %v10122_v9  ;;  %3248 = vmatmul.bf16.gmra.mxu1 %v9567_v51  ;;  %3284 = vmatpush.bf16.msrb.mxu2 %v7154_v25  ;;  %v8257_v9 = vld [vmem:[%s11339_s4 + $0x178] sm:$0xf0] }
 0x34b   : > { %v7250_v17 = vor.u32 %v8257_v9, %v7249_v5 }
 0x34c   : > { %2514 = vmatmul.bf16.gmra.mxu2 %v9758_v10  ;;  %2583 = vmatmul.bf16.gmra.mxu3 %v9760_v20 }
 0x34d   : > { %3353 = vmatpush.bf16.msrb.mxu3 %v7250_v17 }
 0x34e   : > { %v2650_v47 = vpop.f32.mrf.mxu0 }
 0x34f   : > { %v2475_v21 = vpop.f32.mrf.mxu2  ;;  %v2719_v44 = vpop.f32.mrf.mxu1 }
 0x350   : > { %v2544_v28 = vpop.f32.mrf.mxu3  ;;  %v10136_v39 = vadd.f32 %v2719_v44, %v2650_v47 }
 0x351   : > { %v10138_v58 = vadd.f32 %v2544_v28, %v2475_v21 }
 0x352   : > { %11445 = vst [vmem:[#allocation43_spill] sm:$0xff] %v10136_v39 }
 0x356   : > { %v2653_v38 = vpop.f32.mrf.mxu0 }
 0x357   : > { %v2477_v32 = vpop.f32.mrf.mxu2  ;;  %v2722_v19 = vpop.f32.mrf.mxu1 }
 0x358   : > { %v2546_v42 = vpop.f32.mrf.mxu3  ;;  %v10146_v25 = vadd.f32 %v2722_v19, %v2653_v38  ;;  %v8230_v19 = vld [vmem:[%s11339_s4 + $0xa0] sm:$0xf0] }
 0x359   : > { %v10148_v47 = vadd.f32 %v2546_v42, %v2477_v32  ;;  %3184 = vmatmul.bf16.gmra.mxu0 %v9594_v43  ;;  %v7141_v42 = vld [vmem:[%s11339_s4 + $0x98] sm:$0xf] }
 0x35a   : > { %11446 = vst [vmem:[#allocation44_spill] sm:$0xff] %v10146_v25  ;;  %3253 = vmatmul.bf16.gmra.mxu1 %v9596_v24  ;;  %v7142_v38 = vor.u32 %v8230_v19, %v7141_v42 }
 0x35c   : > { %2519 = vmatmul.bf16.gmra.mxu2 %v9790_v4  ;;  %2588 = vmatmul.bf16.gmra.mxu3 %v9792_v6 }
 0x35d   : > { %3285 = vmatpush.bf16.msrb.mxu2 %v7142_v38 }
 0x35e   : > { %v2655_v21 = vpop.f32.mrf.mxu0 }
 0x35f   : > { %v2480_v44 = vpop.f32.mrf.mxu2  ;;  %v2724_v9 = vpop.f32.mrf.mxu1 }
 0x360   : > { %v2549_v17 = vpop.f32.mrf.mxu3  ;;  %v10154_v28 = vadd.f32 %v2724_v9, %v2655_v21  ;;  %v8254_v9 = vld [vmem:[%s11339_s4 + $0x160] sm:$0xf0] }
 0x361   : > { %v10156_v5 = vadd.f32 %v2549_v17, %v2480_v44  ;;  %v7237_v44 = vld [vmem:[%s11339_s4 + $0x158] sm:$0xf] }
 0x362   : > { %11447 = vst [vmem:[#allocation45_spill] sm:$0xff] %v10154_v28  ;;  %v7238_v17 = vor.u32 %v8254_v9, %v7237_v44 }
 0x364   : > { %3354 = vmatpush.bf16.msrb.mxu3 %v7238_v17  ;;  %v7401_v17 = vld [vmem:[%s11339_s4 + $0x3a8] sm:$0xf] }
 0x366   : > { %v2658_v32 = vpop.f32.mrf.mxu0 }
 0x367   : > { %v2482_v25 = vpop.f32.mrf.mxu2  ;;  %v2727_v39 = vpop.f32.mrf.mxu1 }
 0x368   : > { %v2551_v33 = vpop.f32.mrf.mxu3  ;;  %v10164_v27 = vadd.f32 %v2727_v39, %v2658_v32 }
 0x369   : > { %v10166_v21 = vadd.f32 %v2551_v33, %v2482_v25  ;;  %3189 = vmatmul.bf16.gmra.mxu0 %v9616_v31 }
 0x36a   : > { %11448 = vst [vmem:[#allocation46_spill] sm:$0xff] %v10164_v27  ;;  %3258 = vmatmul.bf16.gmra.mxu1 %v9618_v8 }
 0x36c   : > { %3016 = vmatmul.bf16.vlgmr.msra.gmra.mxu2 %v9360_v14  ;;  %3085 = vmatmul.bf16.vlgmr.msra.gmra.mxu3 %v9362_v34 }
 0x36e   : > { %v2660_v33 = vpop.f32.mrf.mxu0 }
 0x36f   : > { %v2485_v39 = vpop.f32.mrf.mxu2  ;;  %v2729_v25 = vpop.f32.mrf.mxu1 }
 0x370   : > { %v2554_v42 = vpop.f32.mrf.mxu3  ;;  %v10178_v19 = vadd.f32 %v2729_v25, %v2660_v33  ;;  %v8328_v33 = vld [vmem:[%s11339_s4 + $0x3b0] sm:$0xf0] }
 0x371   : > { %v10180_v38 = vadd.f32 %v2554_v42, %v2485_v39  ;;  %v8227_v39 = vld [vmem:[%s11339_s4 + $0x88] sm:$0xf0]  ;;  %v7389_v42 = vld [vmem:[%s11339_s4 + $0x390] sm:$0xf] }
 0x372   : > { %11449 = vst [vmem:[#allocation47_spill] sm:$0xff] %v10178_v19 }
 0x376   : > { %v3155_v32 = vpop.f32.mrf.mxu0 }
 0x377   : > { %v2487_v27 = vpop.f32.mrf.mxu2  ;;  %v3156_v28 = vadd.f32 %v3155_v32, %v10096_v23  ;;  %v3224_v0 = vpop.f32.mrf.mxu1  ;;  %v7497_v23 = vld [vmem:[%s11339_s4 + $0x468] sm:$0xf]  ;;  %v8325_v32 = vld [vmem:[%s11339_s4 + $0x398] sm:$0xf0] }
 0x378   : > { %v2556_v57 = vpop.f32.mrf.mxu3 }
 0x379   : > { %v10183_v44 = vadd.f32 %v2556_v57, %v2487_v27  ;;  %v10185_v9 = vadd.f32 %v3224_v0, %v3156_v28  ;;  %3194 = vmatmul.bf16.gmra.mxu0 %v9638_v63  ;;  %v7402_v57 = vor.u32 %v8328_v33, %v7401_v17  ;;  %v8352_v0 = vld [vmem:[%s11339_s4 + $0x470] sm:$0xf0]  ;;  %v7129_v28 = vld [vmem:[%s11339_s4 + $0x80] sm:$0xf]  ;;  %v7485_v17 = vld [vmem:[%s11339_s4 + $0x450] sm:$0xf] }
 0x37a   : > { %3263 = vmatmul.bf16.gmra.mxu1 %v9640_v59  ;;  %v7498_v27 = vor.u32 %v8352_v0, %v7497_v23  ;;  %v7130_v25 = vor.u32 %v8227_v39, %v7129_v28  ;;  %v7390_v23 = vor.u32 %v8325_v32, %v7389_v42  ;;  %v7225_v42 = vld [vmem:[%s11339_s4 + $0x140] sm:$0xf]  ;;  %v8251_v32 = vld [vmem:[%s11339_s4 + $0x148] sm:$0xf0] }
 0x37b   : > { %11450 = vst [vmem:[#allocation48_spill] sm:$0xff] %v10185_v9  ;;  %3763 = vmatpush.bf16.msra.mxu0 %v7402_v57  ;;  %v8349_v57 = vld [vmem:[%s11339_s4 + $0x458] sm:$0xf0] }
 0x37c   : > { %3021 = vmatmul.bf16.gmra.mxu2 %v9391_v3  ;;  %3090 = vmatmul.bf16.gmra.mxu3 %v9393_v49  ;;  %v7486_v39 = vor.u32 %v8349_v57, %v7485_v17  ;;  %v7473_v17 = vld [vmem:[%s11339_s4 + $0x438] sm:$0xf] }
 0x37d   : > { %3832 = vmatpush.bf16.msra.mxu1 %v7498_v27  ;;  %3286 = vmatpush.bf16.msrb.mxu2 %v7130_v25  ;;  %v7226_v25 = vor.u32 %v8251_v32, %v7225_v42  ;;  %v8343_v32 = vld [vmem:[%s11339_s4 + $0x428] sm:$0xf0] }
 0x37e   : > { %v3157_v33 = vpop.f32.mrf.mxu0 }
 0x37f   : > { %v2490_v0 = vpop.f32.mrf.mxu2  ;;  %v3158_v27 = vadd.f32 %v3157_v33, %v10106_v22  ;;  %v3226_v28 = vpop.f32.mrf.mxu1  ;;  %3764 = vmatpush.bf16.msra.mxu0 %v7390_v23  ;;  %v7377_v22 = vld [vmem:[%s11339_s4 + $0x378] sm:$0xf]  ;;  %v8346_v33 = vld [vmem:[%s11339_s4 + $0x440] sm:$0xf0]  ;;  %3355 = vmatpush.bf16.msrb.mxu3 %v7226_v25 }
 0x380   : > { %v2559_v9 = vpop.f32.mrf.mxu3  ;;  %v7474_v57 = vor.u32 %v8346_v33, %v7473_v17 }
 0x381   : > { %v10222_v19 = vadd.f32 %v2559_v9, %v2490_v0  ;;  %v10224_v46 = vadd.f32 %v3226_v28, %v3158_v27  ;;  %3833 = vmatpush.bf16.msra.mxu1 %v7486_v39  ;;  %v8322_v9 = vld [vmem:[%s11339_s4 + $0x380] sm:$0xf0]  ;;  %v7365_v0 = vld [vmem:[%s11339_s4 + $0x360] sm:$0xf]  ;;  %v8319_v27 = vld [vmem:[%s11339_s4 + $0x368] sm:$0xf0] }
 0x382   : > { %v7378_v23 = vor.u32 %v8322_v9, %v7377_v22  ;;  %v7461_v28 = vld [vmem:[%s11339_s4 + $0x420] sm:$0xf]  ;;  %v7366_v42 = vor.u32 %v8319_v27, %v7365_v0  ;;  %v7353_v0 = vld [vmem:[%s11339_s4 + $0x348] sm:$0xf]  ;;  %v8316_v27 = vld [vmem:[%s11339_s4 + $0x350] sm:$0xf0] }
 0x383   : > { %11451 = vst [vmem:[#allocation49_spill] sm:$0xff] %v10224_v46  ;;  %v7462_v17 = vor.u32 %v8343_v32, %v7461_v28  ;;  %v7354_v28 = vor.u32 %v8316_v27, %v7353_v0 }
 0x384   : > { %3765 = vmatpush.bf16.msra.mxu0 %v7378_v23 }
 0x385   : > { %3834 = vmatpush.bf16.msra.mxu1 %v7474_v57 }
 0x386   : > { %v3160_v39 = vpop.f32.mrf.mxu0 }
 0x387   : > { %v2492_v22 = vpop.f32.mrf.mxu2  ;;  %v3161_v25 = vadd.f32 %v3160_v39, %v10120_v37  ;;  %v3229_v9 = vpop.f32.mrf.mxu1  ;;  %v7449_v37 = vld [vmem:[%s11339_s4 + $0x408] sm:$0xf]  ;;  %v8340_v39 = vld [vmem:[%s11339_s4 + $0x410] sm:$0xf0] }
 0x388   : > { %v2561_v33 = vpop.f32.mrf.mxu3  ;;  %3766 = vmatpush.bf16.msra.mxu0 %v7366_v42  ;;  %v7450_v32 = vor.u32 %v8340_v39, %v7449_v37  ;;  %v7437_v42 = vld [vmem:[%s11339_s4 + $0x3f0] sm:$0xf] }
 0x389   : > { %v10257_v23 = vadd.f32 %v2561_v33, %v2492_v22  ;;  %v10259_v57 = vadd.f32 %v3229_v9, %v3161_v25  ;;  %3199 = vmatmul.bf16.gmra.mxu0 %v9670_v2  ;;  %3835 = vmatpush.bf16.msra.mxu1 %v7462_v17  ;;  %v7341_v22 = vld [vmem:[%s11339_s4 + $0x330] sm:$0xf]  ;;  %v8313_v25 = vld [vmem:[%s11339_s4 + $0x338] sm:$0xf0] }
 0x38a   : > { %3268 = vmatmul.bf16.gmra.mxu1 %v9672_v56  ;;  %v7342_v17 = vor.u32 %v8313_v25, %v7341_v22  ;;  %v8337_v33 = vld [vmem:[%s11339_s4 + $0x3f8] sm:$0xf0]  ;;  %v8310_v22 = vld [vmem:[%s11339_s4 + $0x320] sm:$0xf0] }
 0x38b   : > { %11452 = vst [vmem:[#allocation50_spill] sm:$0xff] %v10259_v57  ;;  %v7438_v39 = vor.u32 %v8337_v33, %v7437_v42  ;;  %v8334_v42 = vld [vmem:[%s11339_s4 + $0x3e0] sm:$0xf0]  ;;  %v8224_v33 = vld [vmem:[%s11339_s4 + $0x70] sm:$0xf0] }
 0x38c   : > { %3026 = vmatmul.bf16.gmra.mxu2 %v9416_v54  ;;  %3095 = vmatmul.bf16.gmra.mxu3 %v9418_v15 }
 0x38d   : > { %3836 = vmatpush.bf16.msra.mxu1 %v7450_v32  ;;  %3767 = vmatpush.bf16.msra.mxu0 %v7354_v28  ;;  %v7329_v28 = vld [vmem:[%s11339_s4 + $0x318] sm:$0xf] }
 0x38e   : > { %v3162_v9 = vpop.f32.mrf.mxu0  ;;  %v7330_v25 = vor.u32 %v8310_v22, %v7329_v28  ;;  %v8331_v22 = vld [vmem:[%s11339_s4 + $0x3c8] sm:$0xf0] }
 0x38f   : > { %v2495_v0 = vpop.f32.mrf.mxu2  ;;  %v3163_v27 = vadd.f32 %v3162_v9, %v10124_v48  ;;  %v3231_v37 = vpop.f32.mrf.mxu1  ;;  %v7425_v48 = vld [vmem:[%s11339_s4 + $0x3d8] sm:$0xf]  ;;  %v7117_v9 = vld [vmem:[%s11339_s4 + $0x68] sm:$0xf] }
 0x390   : > { %v2564_v32 = vpop.f32.mrf.mxu3 }
 0x391   : > { %v10290_v57 = vadd.f32 %v2564_v32, %v2495_v0  ;;  %v10292_v46 = vadd.f32 %v3231_v37, %v3163_v27  ;;  %3837 = vmatpush.bf16.msra.mxu1 %v7438_v39  ;;  %3768 = vmatpush.bf16.msra.mxu0 %v7342_v17  ;;  %v7426_v0 = vor.u32 %v8334_v42, %v7425_v48  ;;  %v7317_v17 = vld [vmem:[%s11339_s4 + $0x300] sm:$0xf]  ;;  %v8307_v37 = vld [vmem:[%s11339_s4 + $0x308] sm:$0xf0] }
 0x392   : > { %v7118_v27 = vor.u32 %v8224_v33, %v7117_v9  ;;  %v7413_v39 = vld [vmem:[%s11339_s4 + $0x3c0] sm:$0xf]  ;;  %v7318_v28 = vor.u32 %v8307_v37, %v7317_v17  ;;  %v8248_v17 = vld [vmem:[%s11339_s4 + $0x130] sm:$0xf0] }
 0x393   : > { %11453 = vst [vmem:[#allocation51_spill] sm:$0xff] %v10292_v46  ;;  %v7414_v33 = vor.u32 %v8331_v22, %v7413_v39 }
 0x394   : > { %3287 = vmatpush.bf16.msrb.mxu2 %v7118_v27 }
 0x395   : > { %3838 = vmatpush.bf16.msra.mxu1 %v7426_v0  ;;  %3769 = vmatpush.bf16.msra.mxu0 %v7330_v25  ;;  %v7213_v25 = vld [vmem:[%s11339_s4 + $0x128] sm:$0xf] }
 0x396   : > { %v3165_v32 = vpop.f32.mrf.mxu0 }
 0x397   : > { %v2497_v48 = vpop.f32.mrf.mxu2  ;;  %v3166_v42 = vadd.f32 %v3165_v32, %v10138_v58  ;;  %v3234_v9 = vpop.f32.mrf.mxu1  ;;  %v7214_v58 = vor.u32 %v8248_v17, %v7213_v25 }
 0x398   : > { %v2566_v0 = vpop.f32.mrf.mxu3 }
 0x399   : > { %v10325_v27 = vadd.f32 %v2566_v0, %v2497_v48  ;;  %v10327_v46 = vadd.f32 %v3234_v9, %v3166_v42  ;;  %3204 = vmatmul.bf16.gmra.mxu0 %v9700_v35  ;;  %3839 = vmatpush.bf16.msra.mxu1 %v7414_v33 }
 0x39a   : > { %3273 = vmatmul.bf16.gmra.mxu1 %v9702_v45  ;;  %3770 = vmatpush.bf16.msra.mxu0 %v7318_v28 }
 0x39b   : > { %11454 = vst [vmem:[#allocation52_spill] sm:$0xff] %v10327_v46  ;;  %3356 = vmatpush.bf16.msrb.mxu3 %v7214_v58 }
 0x39c   : > { %3031 = vmatmul.bf16.gmra.mxu2 %v9446_v52  ;;  %3100 = vmatmul.bf16.gmra.mxu3 %v9448_v26 }
 0x39e   : > { %v3167_v37 = vpop.f32.mrf.mxu0 }
 0x39f   : > { %v2500_v39 = vpop.f32.mrf.mxu2  ;;  %v3168_v32 = vadd.f32 %v3167_v37, %v10148_v47  ;;  %v3236_v22 = vpop.f32.mrf.mxu1  ;;  %v7105_v47 = vld [vmem:[%s11339_s4 + $0x50] sm:$0xf] }
 0x3a0   : > { %v2569_v48 = vpop.f32.mrf.mxu3 }
 0x3a1   : > { %v10340_v42 = vadd.f32 %v2569_v48, %v2500_v39  ;;  %v10342_v9 = vadd.f32 %v3236_v22, %v3168_v32 }
 0x3a3   : > { %11455 = vst [vmem:[#allocation53_spill] sm:$0xff] %v10342_v9 }
 0x3a6   : > { %v3170_v33 = vpop.f32.mrf.mxu0 }
 0x3a7   : > { %v2502_v0 = vpop.f32.mrf.mxu2  ;;  %v3171_v28 = vadd.f32 %v3170_v33, %v10156_v5  ;;  %v3239_v25 = vpop.f32.mrf.mxu1  ;;  %v8221_v5 = vld [vmem:[%s11339_s4 + $0x58] sm:$0xf0] }
 0x3a8   : > { %v2571_v17 = vpop.f32.mrf.mxu3  ;;  %v7106_v58 = vor.u32 %v8221_v5, %v7105_v47 }
 0x3a9   : > { %v10345_v46 = vadd.f32 %v2571_v17, %v2502_v0  ;;  %v10347_v26 = vadd.f32 %v3239_v25, %v3171_v28  ;;  %3209 = vmatmul.bf16.gmra.mxu0 %v9726_v60  ;;  %v7201_v28 = vld [vmem:[%s11339_s4 + $0x110] sm:$0xf]  ;;  %v8245_v25 = vld [vmem:[%s11339_s4 + $0x118] sm:$0xf0] }
 0x3aa   : > { %3278 = vmatmul.bf16.gmra.mxu1 %v9728_v1  ;;  %3288 = vmatpush.bf16.msrb.mxu2 %v7106_v58  ;;  %v7202_v17 = vor.u32 %v8245_v25, %v7201_v28 }
 0x3ab   : > { %11456 = vst [vmem:[#allocation54_spill] sm:$0xff] %v10347_v26 }
 0x3ac   : > { %3036 = vmatmul.bf16.gmra.mxu2 %v9506_v11  ;;  %3105 = vmatmul.bf16.gmra.mxu3 %v9508_v55 }
 0x3ad   : > { %3357 = vmatpush.bf16.msrb.mxu3 %v7202_v17 }
 0x3ae   : > { %v3172_v37 = vpop.f32.mrf.mxu0 }
 0x3af   : > { %v2505_v39 = vpop.f32.mrf.mxu2  ;;  %v3173_v32 = vadd.f32 %v3172_v37, %v10166_v21  ;;  %v3241_v22 = vpop.f32.mrf.mxu1 }
 0x3b0   : > { %v2574_v48 = vpop.f32.mrf.mxu3 }
 0x3b1   : > { %v10360_v33 = vadd.f32 %v2574_v48, %v2505_v39  ;;  %v10362_v0 = vadd.f32 %v3241_v22, %v3173_v32 }
 0x3b3   : > { %11457 = vst [vmem:[#allocation55_spill] sm:$0xff] %v10362_v0 }
 0x3b6   : > { %v3175_v47 = vpop.f32.mrf.mxu0 }
 0x3b7   : > { %v2507_v5 = vpop.f32.mrf.mxu2  ;;  %v3176_v21 = vadd.f32 %v3175_v47, %v10180_v38  ;;  %v3244_v58 = vpop.f32.mrf.mxu1 }
 0x3b8   : > { %v2576_v37 = vpop.f32.mrf.mxu3 }
 0x3b9   : > { %v10371_v39 = vadd.f32 %v2576_v37, %v2507_v5  ;;  %v10373_v32 = vadd.f32 %v3244_v58, %v3176_v21  ;;  %3771 = vmatmul.bf16.vlgmr.msra.gmra.mxu0 %v9506_v11  ;;  %v7093_v5 = vld [vmem:[%s11339_s4 + $0x38] sm:$0xf]  ;;  %v8218_v21 = vld [vmem:[%s11339_s4 + $0x40] sm:$0xf0] }
 0x3ba   : > { %3840 = vmatmul.bf16.vlgmr.msra.gmra.mxu1 %v9508_v55  ;;  %v7094_v58 = vor.u32 %v8218_v21, %v7093_v5 }
 0x3bb   : > { %11458 = vst [vmem:[#allocation56_spill] sm:$0xff] %v10373_v32 }
 0x3bc   : > { %3041 = vmatmul.bf16.gmra.mxu2 %v9565_v53  ;;  %3110 = vmatmul.bf16.gmra.mxu3 %v9567_v51 }
 0x3bd   : > { %3289 = vmatpush.bf16.msrb.mxu2 %v7094_v58 }
 0x3be   : > { %v3177_v22 = vpop.f32.mrf.mxu0 }
 0x3bf   : > { %v2510_v48 = vpop.f32.mrf.mxu2  ;;  %v3178_v28 = vadd.f32 %v3177_v22, %v10183_v44  ;;  %v3246_v25 = vpop.f32.mrf.mxu1 }
 0x3c0   : > { %v2579_v38 = vpop.f32.mrf.mxu3 }
 0x3c1   : > { %v10380_v17 = vadd.f32 %v2579_v38, %v2510_v48  ;;  %v10382_v47 = vadd.f32 %v3246_v25, %v3178_v28  ;;  %v7189_v25 = vld [vmem:[%s11339_s4 + $0xf8] sm:$0xf]  ;;  %v8242_v38 = vld [vmem:[%s11339_s4 + $0x100] sm:$0xf0] }
 0x3c2   : > { %v7190_v5 = vor.u32 %v8242_v38, %v7189_v25 }
 0x3c3   : > { %11459 = vst [vmem:[#allocation57_spill] sm:$0xff] %v10382_v47 }
 0x3c4   : > { %3358 = vmatpush.bf16.msrb.mxu3 %v7190_v5 }
 0x3c6   : > { %v3180_v37 = vpop.f32.mrf.mxu0 }
 0x3c7   : > { %v2512_v32 = vpop.f32.mrf.mxu2  ;;  %v3181_v44 = vadd.f32 %v3180_v37, %v10222_v19  ;;  %v3249_v22 = vpop.f32.mrf.mxu1 }
 0x3c8   : > { %v2581_v0 = vpop.f32.mrf.mxu3 }
 0x3c9   : > { %v10391_v48 = vadd.f32 %v2581_v0, %v2512_v32  ;;  %v10393_v28 = vadd.f32 %v3249_v22, %v3181_v44  ;;  %3776 = vmatmul.bf16.gmra.mxu0 %v9565_v53 }
 0x3ca   : > { %3845 = vmatmul.bf16.gmra.mxu1 %v9567_v51 }
 0x3cb   : > { %11460 = vst [vmem:[#allocation58_spill] sm:$0xff] %v10393_v28 }
 0x3cc   : > { %3046 = vmatmul.bf16.gmra.mxu2 %v9594_v43  ;;  %3115 = vmatmul.bf16.gmra.mxu3 %v9596_v24 }
 0x3ce   : > { %v3182_v19 = vpop.f32.mrf.mxu0 }
 0x3cf   : > { %v2515_v0 = vpop.f32.mrf.mxu2  ;;  %v3183_v32 = vadd.f32 %v3182_v19, %v10257_v23  ;;  %v3251_v21 = vpop.f32.mrf.mxu1  ;;  %v7081_v23 = vld [vmem:[%s11339_s4 + $0x20] sm:$0xf] }
 0x3d0   : > { %v2584_v58 = vpop.f32.mrf.mxu3 }
 0x3d1   : > { %v10406_v37 = vadd.f32 %v2584_v58, %v2515_v0  ;;  %v10408_v44 = vadd.f32 %v3251_v21, %v3183_v32 }
 0x3d3   : > { %11461 = vst [vmem:[#allocation59_spill] sm:$0xff] %v10408_v44 }
 0x3d6   : > { %v3185_v22 = vpop.f32.mrf.mxu0 }
 0x3d7   : > { %v2517_v28 = vpop.f32.mrf.mxu2  ;;  %v3186_v47 = vadd.f32 %v3185_v22, %v10290_v57  ;;  %v3254_v25 = vpop.f32.mrf.mxu1  ;;  %v8215_v57 = vld [vmem:[%s11339_s4 + $0x28] sm:$0xf0]  ;;  %v7177_v22 = vld [vmem:[%s11339_s4 + $0xe0] sm:$0xf] }
 0x3d8   : > { %v2586_v38 = vpop.f32.mrf.mxu3 }
 0x3d9   : > { %v10411_v26 = vadd.f32 %v2586_v38, %v2517_v28  ;;  %v10413_v9 = vadd.f32 %v3254_v25, %v3186_v47  ;;  %3781 = vmatmul.bf16.gmra.mxu0 %v9594_v43  ;;  %v7082_v28 = vor.u32 %v8215_v57, %v7081_v23  ;;  %v8239_v25 = vld [vmem:[%s11339_s4 + $0xe8] sm:$0xf0] }
 0x3da   : > { %3850 = vmatmul.bf16.gmra.mxu1 %v9596_v24  ;;  %v7178_v38 = vor.u32 %v8239_v25, %v7177_v22 }
 0x3db   : > { %11462 = vst [vmem:[#allocation60_spill] sm:$0xff] %v10413_v9  ;;  %3290 = vmatpush.bf16.msrb.mxu2 %v7082_v28 }
 0x3dc   : > { %3051 = vmatmul.bf16.gmra.mxu2 %v9616_v31  ;;  %3120 = vmatmul.bf16.gmra.mxu3 %v9618_v8 }
 0x3dd   : > { %3359 = vmatpush.bf16.msrb.mxu3 %v7178_v38 }
 0x3de   : > { %v3187_v5 = vpop.f32.mrf.mxu0 }
 0x3df   : > { %v2520_v47 = vpop.f32.mrf.mxu2  ;;  %v3188_v19 = vadd.f32 %v3187_v5, %v10325_v27  ;;  %v3256_v0 = vpop.f32.mrf.mxu1 }
 0x3e0   : > { %v2589_v32 = vpop.f32.mrf.mxu3 }
 0x3e1   : > { %v10426_v21 = vadd.f32 %v2589_v32, %v2520_v47  ;;  %v10428_v58 = vadd.f32 %v3256_v0, %v3188_v19 }
 0x3e3   : > { %11463 = vst [vmem:[#allocation61_spill] sm:$0xff] %v10428_v58 }
 0x3e6   : > { %v3190_v23 = vpop.f32.mrf.mxu0 }
 0x3e7   : > { %v2522_v57 = vpop.f32.mrf.mxu2  ;;  %v3191_v27 = vadd.f32 %v3190_v23, %v10340_v42  ;;  %v3259_v28 = vpop.f32.mrf.mxu1 }
 0x3e8   : > { %v2591_v5 = vpop.f32.mrf.mxu3 }
 0x3e9   : > { %v10437_v47 = vadd.f32 %v2591_v5, %v2522_v57  ;;  %v10439_v19 = vadd.f32 %v3259_v28, %v3191_v27  ;;  %3786 = vmatmul.bf16.gmra.mxu0 %v9616_v31  ;;  %v7069_v27 = vld [vmem:[%s11339_s4 + $0x8] sm:$0xf]  ;;  %v8212_v28 = vld [vmem:[%s11339_s4 + $0x10] sm:$0xf0] }
 0x3ea   : > { %3855 = vmatmul.bf16.gmra.mxu1 %v9618_v8  ;;  %v7070_v5 = vor.u32 %v8212_v28, %v7069_v27 }
 0x3eb   : > { %11464 = vst [vmem:[#allocation62_spill] sm:$0xff] %v10439_v19 }
 0x3ec   : > { %3056 = vmatmul.bf16.gmra.mxu2 %v9638_v63  ;;  %3125 = vmatmul.bf16.gmra.mxu3 %v9640_v59 }
 0x3ed   : > { %3291 = vmatpush.bf16.msrb.mxu2 %v7070_v5 }
 0x3ee   : > { %v3192_v0 = vpop.f32.mrf.mxu0 }
 0x3ef   : > { %v3017_v32 = vpop.f32.mrf.mxu2  ;;  %v3193_v22 = vadd.f32 %v3192_v0, %v10345_v46  ;;  %v3261_v25 = vpop.f32.mrf.mxu1 }
 0x3f0   : > { %v3018_v42 = vadd.f32 %v3017_v32, %v9717_v50  ;;  %v3086_v38 = vpop.f32.mrf.mxu3 }
 0x3f1   : > { %v10447_v23 = vadd.f32 %v3261_v25, %v3193_v22 }
 0x3f2   : > { %v10449_v57 = vadd.f32 %v3086_v38, %v3018_v42  ;;  %v7165_v38 = vld [vmem:[%s11339_s4 + $0xc8] sm:$0xf] }
 0x3f3   : > { %11465 = vst [vmem:[#allocation63_spill] sm:$0xff] %v10447_v23 }
 0x3f6   : > { %v3195_v19 = vpop.f32.mrf.mxu0 }
 0x3f7   : > { %v3019_v46 = vpop.f32.mrf.mxu2  ;;  %v3196_v0 = vadd.f32 %v3195_v19, %v10360_v33  ;;  %v3264_v50 = vpop.f32.mrf.mxu1  ;;  %v8236_v33 = vld [vmem:[%s11339_s4 + $0xd0] sm:$0xf0] }
 0x3f8   : > { %v3020_v32 = vadd.f32 %v3019_v46, %v9723_v7  ;;  %v3088_v22 = vpop.f32.mrf.mxu3  ;;  %v7166_v19 = vor.u32 %v8236_v33, %v7165_v38 }
 0x3f9   : > { %v10459_v25 = vadd.f32 %v3264_v50, %v3196_v0  ;;  %3791 = vmatmul.bf16.gmra.mxu0 %v9638_v63 }
 0x3fa   : > { %v10462_v42 = vadd.f32 %v3088_v22, %v3020_v32  ;;  %3860 = vmatmul.bf16.gmra.mxu1 %v9640_v59  ;;  %3360 = vmatpush.bf16.msrb.mxu3 %v7166_v19 }
 0x3fb   : > { %11466 = vst [vmem:[#allocation64_spill] sm:$0xff] %v10459_v25 }
 0x3fc   : > { %3061 = vmatmul.bf16.gmra.mxu2 %v9670_v2  ;;  %3130 = vmatmul.bf16.gmra.mxu3 %v9672_v56 }
 0x3fe   : > { %v3197_v7 = vpop.f32.mrf.mxu0 }
 0x3ff   : > { %v3022_v27 = vpop.f32.mrf.mxu2  ;;  %v3198_v28 = vadd.f32 %v3197_v7, %v10371_v39  ;;  %v3266_v5 = vpop.f32.mrf.mxu1 }
 0x400   : > { %v3023_v46 = vadd.f32 %v3022_v27, %v9749_v40  ;;  %v3091_v0 = vpop.f32.mrf.mxu3  ;;  %v8327_v40 = vld [vmem:[%s11339_s4 + $0x3ac] sm:$0xf] }
 0x401   : > { %v10475_v50 = vadd.f32 %v3266_v5, %v3198_v28 }
 0x402   : > { %v10477_v32 = vadd.f32 %v3091_v0, %v3023_v46 }
 0x403   : > { %11467 = vst [vmem:[#allocation65_spill] sm:$0xff] %v10475_v50 }
 0x406   : > { %v3200_v22 = vpop.f32.mrf.mxu0 }
 0x407   : > { %v3024_v25 = vpop.f32.mrf.mxu2  ;;  %v3201_v38 = vadd.f32 %v3200_v22, %v10380_v17  ;;  %v3269_v33 = vpop.f32.mrf.mxu1  ;;  %v8351_v22 = vld [vmem:[%s11339_s4 + $0x46c] sm:$0xf] }
 0x408   : > { %v3025_v23 = vadd.f32 %v3024_v25, %v9755_v13  ;;  %v3093_v19 = vpop.f32.mrf.mxu3  ;;  %v7403_v13 = vld [vmem:[%s11339_s4 + $0x3b4] sm:$0xf0] }
 0x409   : > { %v10481_v58 = vadd.f32 %v3269_v33, %v3201_v38  ;;  %3796 = vmatmul.bf16.gmra.mxu0 %v9670_v2  ;;  %v7406_v17 = vor.u32 %v8327_v40, %v7403_v13  ;;  %v7499_v38 = vld [vmem:[%s11339_s4 + $0x474] sm:$0xf0] }
 0x40a   : > { %v10484_v39 = vadd.f32 %v3093_v19, %v3025_v23  ;;  %3865 = vmatmul.bf16.gmra.mxu1 %v9672_v56  ;;  %v7502_v33 = vor.u32 %v8351_v22, %v7499_v38 }
 0x40b   : > { %11468 = vst [vmem:[#allocation66_spill] sm:$0xff] %v10481_v58  ;;  %3901 = vmatpush.bf16.msra.mxu2 %v7406_v17 }
 0x40c   : > { %3066 = vmatmul.bf16.gmra.mxu2 %v9700_v35  ;;  %3135 = vmatmul.bf16.gmra.mxu3 %v9702_v45 }
 0x40d   : > { %3970 = vmatpush.bf16.msra.mxu3 %v7502_v33 }
 0x40e   : > { %v3202_v25 = vpop.f32.mrf.mxu0 }
 0x40f   : > { %v3027_v7 = vpop.f32.mrf.mxu2  ;;  %v3203_v23 = vadd.f32 %v3202_v25, %v10391_v48  ;;  %v3271_v27 = vpop.f32.mrf.mxu1 }
 0x410   : > { %v3028_v28 = vadd.f32 %v3027_v7, %v9775_v16  ;;  %v3096_v5 = vpop.f32.mrf.mxu3 }
 0x411   : > { %v10497_v46 = vadd.f32 %v3271_v27, %v3203_v23 }
 0x412   : > { %v10499_v0 = vadd.f32 %v3096_v5, %v3028_v28 }
 0x413   : > { %11469 = vst [vmem:[#allocation67_spill] sm:$0xff] %v10497_v46  ;;  %v11487_v46 = vld [vmem:[#allocation34_spill] sm:$0xff] }
 0x416   : > { %v3205_v48 = vpop.f32.mrf.mxu0 }
 0x417   : > { %v3029_v19 = vpop.f32.mrf.mxu2  ;;  %v3206_v40 = vadd.f32 %v3205_v48, %v10406_v37  ;;  %v3274_v16 = vpop.f32.mrf.mxu1  ;;  %v8324_v48 = vld [vmem:[%s11339_s4 + $0x394] sm:$0xf] }
 0x418   : > { %v3030_v13 = vadd.f32 %v3029_v19, %v9787_v18  ;;  %v3098_v17 = vpop.f32.mrf.mxu3  ;;  %v7391_v19 = vld [vmem:[%s11339_s4 + $0x39c] sm:$0xf0] }
 0x419   : > { %v10509_v25 = vadd.f32 %v3274_v16, %v3206_v40  ;;  %3801 = vmatmul.bf16.gmra.mxu0 %v9700_v35 }
 0x41a   : > { %v10512_v7 = vadd.f32 %v3098_v17, %v3030_v13  ;;  %3870 = vmatmul.bf16.gmra.mxu1 %v9702_v45  ;;  %v7394_v13 = vor.u32 %v8324_v48, %v7391_v19 }
 0x41b   : > { %11470 = vst [vmem:[#allocation68_spill] sm:$0xff] %v10509_v25 }
 0x41c   : > { %3071 = vmatmul.bf16.gmra.mxu2 %v9726_v60  ;;  %3140 = vmatmul.bf16.gmra.mxu3 %v9728_v1 }
 0x41d   : > { %3902 = vmatpush.bf16.msra.mxu2 %v7394_v13 }
 0x41e   : > { %v3207_v23 = vpop.f32.mrf.mxu0 }
 0x41f   : > { %v3032_v27 = vpop.f32.mrf.mxu2  ;;  %v3208_v37 = vadd.f32 %v3207_v23, %v10411_v26  ;;  %v3276_v28 = vpop.f32.mrf.mxu1 }
 0x420   : > { %v3033_v18 = vadd.f32 %v3032_v27, %v9803_v62  ;;  %v3101_v5 = vpop.f32.mrf.mxu3 }
 0x421   : > { %v10519_v22 = vadd.f32 %v3276_v28, %v3208_v37 }
 0x422   : > { %v10521_v38 = vadd.f32 %v3101_v5, %v3033_v18 }
 0x423   : > { %11471 = vst [vmem:[#allocation69_spill] sm:$0xff] %v10519_v22 }
 0x426   : > { %v3210_v33 = vpop.f32.mrf.mxu0 }
 0x427   : > { %v3034_v40 = vpop.f32.mrf.mxu2  ;;  %v3211_v26 = vadd.f32 %v3210_v33, %v10426_v21  ;;  %v3279_v16 = vpop.f32.mrf.mxu1  ;;  %v8348_v21 = vld [vmem:[%s11339_s4 + $0x454] sm:$0xf] }
 0x428   : > { %v3035_v62 = vadd.f32 %v3034_v40, %v9817_v41  ;;  %v3103_v17 = vpop.f32.mrf.mxu3  ;;  %v7487_v41 = vld [vmem:[%s11339_s4 + $0x45c] sm:$0xf0] }
 0x429   : > { %v10531_v23 = vadd.f32 %v3279_v16, %v3211_v26  ;;  %3806 = vmatmul.bf16.gmra.mxu0 %v9726_v60  ;;  %v7490_v33 = vor.u32 %v8348_v21, %v7487_v41 }
 0x42a   : > { %v10534_v27 = vadd.f32 %v3103_v17, %v3035_v62  ;;  %3875 = vmatmul.bf16.gmra.mxu1 %v9728_v1 }
 0x42b   : > { %11472 = vst [vmem:[#allocation70_spill] sm:$0xff] %v10531_v23  ;;  %3971 = vmatpush.bf16.msra.mxu3 %v7490_v33  ;;  %v7493_v33 = vld [vmem:[%s11339_s4 + $0x458] sm:$0xf] }
 0x42c   : > { %3292 = vmatmul.bf16.vlgmr.msrb.gmra.mxu2 %v9360_v14  ;;  %3361 = vmatmul.bf16.vlgmr.msrb.gmra.mxu3 %v9362_v34 }
 0x42e   : > { %v3212_v37 = vpop.f32.mrf.mxu0 }
 0x42f   : > { %v3037_v28 = vpop.f32.mrf.mxu2  ;;  %v3213_v18 = vadd.f32 %v3212_v37, %v10437_v47  ;;  %v3281_v5 = vpop.f32.mrf.mxu1  ;;  %v7409_v47 = vld [vmem:[%s11339_s4 + $0x3b0] sm:$0xf] }
 0x430   : > { %v3038_v48 = vadd.f32 %v3037_v28, %v9839_v61  ;;  %v3106_v19 = vpop.f32.mrf.mxu3  ;;  %v8329_v61 = vld [vmem:[%s11339_s4 + $0x3b8] sm:$0xf0]  ;;  %v7505_v37 = vld [vmem:[%s11339_s4 + $0x470] sm:$0xf] }
 0x431   : > { %v10547_v14 = vadd.f32 %v3281_v5, %v3213_v18  ;;  %v7410_v41 = vor.u32 %v8329_v61, %v7409_v47  ;;  %v8353_v28 = vld [vmem:[%s11339_s4 + $0x478] sm:$0xf0]  ;;  %v7397_v5 = vld [vmem:[%s11339_s4 + $0x398] sm:$0xf] }
 0x432   : > { %v10549_v34 = vadd.f32 %v3106_v19, %v3038_v48  ;;  %v7506_v18 = vor.u32 %v8353_v28, %v7505_v37  ;;  %v7385_v37 = vld [vmem:[%s11339_s4 + $0x380] sm:$0xf] }
 0x433   : > { %11473 = vst [vmem:[#allocation71_spill] sm:$0xff] %v10547_v14  ;;  %4039 = vmatpush.bf16.msrb.mxu0 %v7410_v41  ;;  %v8323_v41 = vld [vmem:[%s11339_s4 + $0x388] sm:$0xf0]  ;;  %v7481_v28 = vld [vmem:[%s11339_s4 + $0x440] sm:$0xf]  ;;  %v11480_v14 = vld [vmem:[#allocation15_spill] sm:$0xff] }
 0x434   : > { %4108 = vmatpush.bf16.msrb.mxu1 %v7506_v18 }
 0x436   : > { %v3772_v40 = vpop.f32.mrf.mxu0 }
 0x437   : > { %v3039_v26 = vpop.f32.mrf.mxu2  ;;  %v3841_v16 = vpop.f32.mrf.mxu1 }
 0x438   : > { %v3040_v13 = vadd.f32 %v3039_v26, %v9844_v12  ;;  %v3108_v62 = vpop.f32.mrf.mxu3  ;;  %v3842_v17 = vadd.f32 %v3841_v16, %v3772_v40 }
 0x439   : > { %3811 = vmatmul.bf16.gmra.mxu0 %v9758_v10 }
 0x43a   : > { %v10562_v21 = vadd.f32 %v3108_v62, %v3040_v13  ;;  %v10565_v12 = vadd.f32 %v3842_v17, %v10449_v57  ;;  %3880 = vmatmul.bf16.gmra.mxu1 %v9760_v20  ;;  %v8326_v57 = vld [vmem:[%s11339_s4 + $0x3a0] sm:$0xf0] }
 0x43b   : > { %v7398_v19 = vor.u32 %v8326_v57, %v7397_v5  ;;  %v8350_v13 = vld [vmem:[%s11339_s4 + $0x460] sm:$0xf0]  ;;  %v7386_v5 = vor.u32 %v8323_v41, %v7385_v37  ;;  %v8347_v57 = vld [vmem:[%s11339_s4 + $0x448] sm:$0xf0] }
 0x43c   : > { %3297 = vmatmul.bf16.gmra.mxu2 %v9391_v3  ;;  %3366 = vmatmul.bf16.gmra.mxu3 %v9393_v49  ;;  %v8321_v3 = vld [vmem:[%s11339_s4 + $0x37c] sm:$0xf]  ;;  %v7379_v49 = vld [vmem:[%s11339_s4 + $0x384] sm:$0xf0]  ;;  %v7494_v61 = vor.u32 %v8350_v13, %v7493_v33  ;;  %v7482_v33 = vor.u32 %v8347_v57, %v7481_v28  ;;  %v7361_v28 = vld [vmem:[%s11339_s4 + $0x350] sm:$0xf] }
 0x43d   : > { %v7382_v16 = vor.u32 %v8321_v3, %v7379_v49  ;;  %4040 = vmatpush.bf16.msrb.mxu0 %v7398_v19  ;;  %v8320_v3 = vld [vmem:[%s11339_s4 + $0x370] sm:$0xf0]  ;;  %v8345_v19 = vld [vmem:[%s11339_s4 + $0x43c] sm:$0xf]  ;;  %v7457_v57 = vld [vmem:[%s11339_s4 + $0x410] sm:$0xf] }
 0x43e   : > { %v3774_v48 = vpop.f32.mrf.mxu0  ;;  %4109 = vmatpush.bf16.msrb.mxu1 %v7494_v61 }
 0x43f   : > { %v3042_v40 = vpop.f32.mrf.mxu2  ;;  %v3843_v26 = vpop.f32.mrf.mxu1  ;;  %3903 = vmatpush.bf16.msra.mxu2 %v7382_v16 }
 0x440   : > { %v3043_v62 = vadd.f32 %v3042_v40, %v9886_v30  ;;  %v3111_v17 = vpop.f32.mrf.mxu3  ;;  %v3844_v47 = vadd.f32 %v3843_v26, %v3774_v48  ;;  %v7373_v48 = vld [vmem:[%s11339_s4 + $0x368] sm:$0xf] }
 0x441   : > { %4041 = vmatpush.bf16.msrb.mxu0 %v7386_v5  ;;  %v7475_v40 = vld [vmem:[%s11339_s4 + $0x444] sm:$0xf0]  ;;  %v7374_v26 = vor.u32 %v8320_v3, %v7373_v48  ;;  %v8317_v5 = vld [vmem:[%s11339_s4 + $0x358] sm:$0xf0] }
 0x442   : > { %v10601_v18 = vadd.f32 %v3111_v17, %v3043_v62  ;;  %v10604_v30 = vadd.f32 %v3844_v47, %v10462_v42  ;;  %v7469_v42 = vld [vmem:[%s11339_s4 + $0x428] sm:$0xf]  ;;  %4110 = vmatpush.bf16.msrb.mxu1 %v7482_v33  ;;  %v7478_v62 = vor.u32 %v8345_v19, %v7475_v40  ;;  %v8344_v17 = vld [vmem:[%s11339_s4 + $0x430] sm:$0xf0]  ;;  %v7362_v48 = vor.u32 %v8317_v5, %v7361_v28  ;;  %v8341_v3 = vld [vmem:[%s11339_s4 + $0x418] sm:$0xf0] }
 0x443   : > { %v7470_v41 = vor.u32 %v8344_v17, %v7469_v42  ;;  %v7458_v42 = vor.u32 %v8341_v3, %v7457_v57  ;;  %v7445_v19 = vld [vmem:[%s11339_s4 + $0x3f8] sm:$0xf]  ;;  %v8335_v57 = vld [vmem:[%s11339_s4 + $0x3e8] sm:$0xf0]  ;;  %v7325_v3 = vld [vmem:[%s11339_s4 + $0x308] sm:$0xf] }
 0x444   : > { %3972 = vmatpush.bf16.msra.mxu3 %v7478_v62 }
 0x445   : > { %4042 = vmatpush.bf16.msrb.mxu0 %v7374_v26 }
 0x446   : > { %v3777_v49 = vpop.f32.mrf.mxu0  ;;  %4111 = vmatpush.bf16.msrb.mxu1 %v7470_v41  ;;  %v7433_v41 = vld [vmem:[%s11339_s4 + $0x3e0] sm:$0xf] }
 0x447   : > { %v3044_v16 = vpop.f32.mrf.mxu2  ;;  %v3846_v13 = vpop.f32.mrf.mxu1 }
 0x448   : > { %v3045_v47 = vadd.f32 %v3044_v16, %v9920_v29  ;;  %v3113_v61 = vpop.f32.mrf.mxu3  ;;  %v3847_v37 = vadd.f32 %v3846_v13, %v3777_v49  ;;  %v7349_v49 = vld [vmem:[%s11339_s4 + $0x338] sm:$0xf] }
 0x449   : > { %3816 = vmatmul.bf16.gmra.mxu0 %v9790_v4 }
 0x44a   : > { %v10638_v33 = vadd.f32 %v3113_v61, %v3045_v47  ;;  %v10641_v29 = vadd.f32 %v3847_v37, %v10477_v32  ;;  %3885 = vmatmul.bf16.gmra.mxu1 %v9792_v6  ;;  %v8314_v32 = vld [vmem:[%s11339_s4 + $0x340] sm:$0xf0]  ;;  %4043 = vmatpush.bf16.msrb.mxu0 %v7362_v48  ;;  %v7337_v61 = vld [vmem:[%s11339_s4 + $0x320] sm:$0xf]  ;;  %v8311_v37 = vld [vmem:[%s11339_s4 + $0x328] sm:$0xf0]  ;;  %v7434_v48 = vor.u32 %v8335_v57, %v7433_v41 }
 0x44b   : > { %v7350_v26 = vor.u32 %v8314_v32, %v7349_v49  ;;  %4112 = vmatpush.bf16.msrb.mxu1 %v7458_v42  ;;  %v8308_v42 = vld [vmem:[%s11339_s4 + $0x310] sm:$0xf0]  ;;  %v8318_v32 = vld [vmem:[%s11339_s4 + $0x364] sm:$0xf]  ;;  %v11476_v57 = vld [vmem:[#allocation13_spill] sm:$0xff] }
 0x44c   : > { %3302 = vmatmul.bf16.gmra.mxu2 %v9416_v54  ;;  %3371 = vmatmul.bf16.gmra.mxu3 %v9418_v15  ;;  %v8338_v54 = vld [vmem:[%s11339_s4 + $0x400] sm:$0xf0] }
 0x44d   : > { %v7446_v13 = vor.u32 %v8338_v54, %v7445_v19  ;;  %v7367_v19 = vld [vmem:[%s11339_s4 + $0x36c] sm:$0xf0] }
 0x44e   : > { %v3779_v40 = vpop.f32.mrf.mxu0  ;;  %4044 = vmatpush.bf16.msrb.mxu0 %v7350_v26 }
 0x44f   : > { %v3047_v15 = vpop.f32.mrf.mxu2  ;;  %v3848_v16 = vpop.f32.mrf.mxu1  ;;  %4113 = vmatpush.bf16.msrb.mxu1 %v7446_v13  ;;  %v11474_v13 = vld [vmem:[#allocation21_spill] sm:$0xff] }
 0x450   : > { %v3048_v62 = vadd.f32 %v3047_v15, %v9952_v36  ;;  %v3116_v17 = vpop.f32.mrf.mxu3  ;;  %v3849_v47 = vadd.f32 %v3848_v16, %v3779_v40  ;;  %v7338_v36 = vor.u32 %v8311_v37, %v7337_v61  ;;  %v7326_v40 = vor.u32 %v8308_v42, %v7325_v3  ;;  %v8332_v16 = vld [vmem:[%s11339_s4 + $0x3d0] sm:$0xf0]  ;;  %v11475_v37 = vld [vmem:[#allocation12_spill] sm:$0xff] }
 0x451   : > { %v7370_v15 = vor.u32 %v8318_v32, %v7367_v19  ;;  %v8342_v42 = vld [vmem:[%s11339_s4 + $0x424] sm:$0xf]  ;;  %v11478_v19 = vld [vmem:[#allocation23_spill] sm:$0xff] }
 0x452   : > { %v10671_v28 = vadd.f32 %v3116_v17, %v3048_v62  ;;  %v10674_v5 = vadd.f32 %v3849_v47, %v10484_v39  ;;  %v7421_v39 = vld [vmem:[%s11339_s4 + $0x3c8] sm:$0xf]  ;;  %4045 = vmatpush.bf16.msrb.mxu0 %v7338_v36 }
 0x453   : > { %4114 = vmatpush.bf16.msrb.mxu1 %v7434_v48  ;;  %v7422_v61 = vor.u32 %v8332_v16, %v7421_v39  ;;  %3904 = vmatpush.bf16.msra.mxu2 %v7370_v15  ;;  %v11477_v48 = vld [vmem:[#allocation30_spill] sm:$0xff] }
 0x454   : > { %v7463_v39 = vld [vmem:[%s11339_s4 + $0x42c] sm:$0xf0] }
 0x455   : > { %v7466_v32 = vor.u32 %v8342_v42, %v7463_v39 }
 0x456   : > { %v3782_v49 = vpop.f32.mrf.mxu0  ;;  %4046 = vmatpush.bf16.msrb.mxu0 %v7326_v40 }
 0x457   : > { %v3049_v26 = vpop.f32.mrf.mxu2  ;;  %v3851_v54 = vpop.f32.mrf.mxu1  ;;  %4115 = vmatpush.bf16.msrb.mxu1 %v7422_v61  ;;  %3973 = vmatpush.bf16.msra.mxu3 %v7466_v32 }
 0x458   : > { %v3050_v62 = vadd.f32 %v3049_v26, %v11474_v13  ;;  %v3118_v17 = vpop.f32.mrf.mxu3  ;;  %v3852_v47 = vadd.f32 %v3851_v54, %v3782_v49 }
 0x459   : > { %3821 = vmatmul.bf16.gmra.mxu0 %v11475_v37 }
 0x45a   : > { %v10699_v41 = vadd.f32 %v3118_v17, %v3050_v62  ;;  %v10702_v36 = vadd.f32 %v3852_v47, %v10499_v0  ;;  %3890 = vmatmul.bf16.gmra.mxu1 %v11476_v57  ;;  %v11479_v17 = vld [vmem:[#allocation27_spill] sm:$0xff] }
 0x45c   : > { %3307 = vmatmul.bf16.gmra.mxu2 %v9446_v52  ;;  %3376 = vmatmul.bf16.gmra.mxu3 %v11477_v48 }
 0x45e   : > { %v3784_v3 = vpop.f32.mrf.mxu0 }
 0x45f   : > { %v3052_v49 = vpop.f32.mrf.mxu2  ;;  %v3853_v0 = vpop.f32.mrf.mxu1 }
 0x460   : > { %v3053_v26 = vadd.f32 %v3052_v49, %v11478_v19  ;;  %v3121_v40 = vpop.f32.mrf.mxu3  ;;  %v3854_v54 = vadd.f32 %v3853_v0, %v3784_v3  ;;  %v11481_v3 = vld [vmem:[#allocation16_spill] sm:$0xff]  ;;  %v8315_v49 = vld [vmem:[%s11339_s4 + $0x34c] sm:$0xf]  ;;  %v7355_v0 = vld [vmem:[%s11339_s4 + $0x354] sm:$0xf0] }
 0x462   : > { %v10714_v52 = vadd.f32 %v3121_v40, %v3053_v26  ;;  %v10717_v15 = vadd.f32 %v3854_v54, %v10512_v7  ;;  %v7358_v26 = vor.u32 %v8315_v49, %v7355_v0 }
 0x464   : > { %3905 = vmatpush.bf16.msra.mxu2 %v7358_v26 }
 0x466   : > { %v3787_v16 = vpop.f32.mrf.mxu0 }
 0x467   : > { %v3054_v13 = vpop.f32.mrf.mxu2  ;;  %v3856_v62 = vpop.f32.mrf.mxu1 }
 0x468   : > { %v3055_v47 = vadd.f32 %v3054_v13, %v11479_v17  ;;  %v3123_v61 = vpop.f32.mrf.mxu3  ;;  %v3857_v48 = vadd.f32 %v3856_v62, %v3787_v16 }
 0x469   : > { %3826 = vmatmul.bf16.gmra.mxu0 %v11480_v14 }
 0x46a   : > { %v10721_v42 = vadd.f32 %v3123_v61, %v3055_v47  ;;  %v10724_v39 = vadd.f32 %v3857_v48, %v10521_v38  ;;  %3895 = vmatmul.bf16.gmra.mxu1 %v11481_v3  ;;  %v11482_v38 = vld [vmem:[#allocation29_spill] sm:$0xff]  ;;  %v7451_v61 = vld [vmem:[%s11339_s4 + $0x414] sm:$0xf0] }
 0x46b   : > { %v8339_v47 = vld [vmem:[%s11339_s4 + $0x40c] sm:$0xf] }
 0x46c   : > { %3312 = vmatmul.bf16.gmra.mxu2 %v9506_v11  ;;  %3381 = vmatmul.bf16.gmra.mxu3 %v9508_v55  ;;  %v7454_v0 = vor.u32 %v8339_v47, %v7451_v61  ;;  %v11484_v47 = vld [vmem:[#allocation9_spill] sm:$0xff] }
 0x46e   : > { %v3789_v7 = vpop.f32.mrf.mxu0  ;;  %3974 = vmatpush.bf16.msra.mxu3 %v7454_v0 }
 0x46f   : > { %v3057_v32 = vpop.f32.mrf.mxu2  ;;  %v3858_v19 = vpop.f32.mrf.mxu1 }
 0x470   : > { %v3058_v40 = vadd.f32 %v3057_v32, %v11482_v38  ;;  %v3126_v54 = vpop.f32.mrf.mxu3  ;;  %v3859_v16 = vadd.f32 %v3858_v19, %v3789_v7  ;;  %v11483_v32 = vld [vmem:[#allocation25_spill] sm:$0xff] }
 0x472   : > { %v10736_v13 = vadd.f32 %v3126_v54, %v3058_v40  ;;  %v10739_v62 = vadd.f32 %v3859_v16, %v10534_v27 }
 0x476   : > { %v3792_v17 = vpop.f32.mrf.mxu0 }
 0x477   : > { %v3059_v48 = vpop.f32.mrf.mxu2  ;;  %v3861_v49 = vpop.f32.mrf.mxu1 }
 0x478   : > { %v3060_v7 = vadd.f32 %v3059_v48, %v11483_v32  ;;  %v3128_v19 = vpop.f32.mrf.mxu3  ;;  %v3862_v26 = vadd.f32 %v3861_v49, %v3792_v17  ;;  %v8312_v32 = vld [vmem:[%s11339_s4 + $0x334] sm:$0xf] }
 0x479   : > { %4047 = vmatmul.bf16.vlgmr.msrb.gmra.mxu0 %v9506_v11 }
 0x47a   : > { %v10749_v27 = vadd.f32 %v3128_v19, %v3060_v7  ;;  %v10752_v38 = vadd.f32 %v3862_v26, %v10549_v34  ;;  %4116 = vmatmul.bf16.vlgmr.msrb.gmra.mxu1 %v9508_v55  ;;  %v7343_v7 = vld [vmem:[%s11339_s4 + $0x33c] sm:$0xf0] }
 0x47b   : > { %v7346_v23 = vor.u32 %v8312_v32, %v7343_v7 }
 0x47c   : > { %3317 = vmatmul.bf16.gmra.mxu2 %v9565_v53  ;;  %3386 = vmatmul.bf16.gmra.mxu3 %v9567_v51 }
 0x47d   : > { %3906 = vmatpush.bf16.msra.mxu2 %v7346_v23  ;;  %v7439_v23 = vld [vmem:[%s11339_s4 + $0x3fc] sm:$0xf0] }
 0x47e   : > { %v3794_v40 = vpop.f32.mrf.mxu0 }
 0x47f   : > { %v3062_v54 = vpop.f32.mrf.mxu2  ;;  %v3863_v16 = vpop.f32.mrf.mxu1 }
 0x480   : > { %v3063_v61 = vadd.f32 %v3062_v54, %v11484_v47  ;;  %v3131_v17 = vpop.f32.mrf.mxu3  ;;  %v3864_v48 = vadd.f32 %v3863_v16, %v3794_v40  ;;  %v11485_v54 = vld [vmem:[#allocation11_spill] sm:$0xff] }
 0x482   : > { %v10758_v49 = vadd.f32 %v3131_v17, %v3063_v61  ;;  %v10761_v0 = vadd.f32 %v3864_v48, %v10562_v21  ;;  %v8336_v48 = vld [vmem:[%s11339_s4 + $0x3f4] sm:$0xf] }
 0x483   : > { %v7442_v7 = vor.u32 %v8336_v48, %v7439_v23 }
 0x485   : > { %3975 = vmatpush.bf16.msra.mxu3 %v7442_v7 }
 0x486   : > { %v3797_v34 = vpop.f32.mrf.mxu0 }
 0x487   : > { %v3064_v19 = vpop.f32.mrf.mxu2  ;;  %v3866_v26 = vpop.f32.mrf.mxu1 }
 0x488   : > { %v3065_v47 = vadd.f32 %v3064_v19, %v11485_v54  ;;  %v3133_v40 = vpop.f32.mrf.mxu3  ;;  %v3867_v16 = vadd.f32 %v3866_v26, %v3797_v34 }
 0x489   : > { %4052 = vmatmul.bf16.gmra.mxu0 %v9565_v53 }
 0x48a   : > { %v10771_v21 = vadd.f32 %v3133_v40, %v3065_v47  ;;  %v10774_v61 = vadd.f32 %v3867_v16, %v10601_v18  ;;  %4121 = vmatmul.bf16.gmra.mxu1 %v9567_v51  ;;  %v11486_v18 = vld [vmem:[#allocation32_spill] sm:$0xff] }
 0x48c   : > { %3322 = vmatmul.bf16.gmra.mxu2 %v9594_v43  ;;  %3391 = vmatmul.bf16.gmra.mxu3 %v9596_v24 }
 0x48e   : > { %v3799_v17 = vpop.f32.mrf.mxu0 }
 0x48f   : > { %v3067_v34 = vpop.f32.mrf.mxu2  ;;  %v3868_v32 = vpop.f32.mrf.mxu1 }
 0x490   : > { %v3068_v19 = vadd.f32 %v3067_v34, %v11486_v18  ;;  %v3136_v26 = vpop.f32.mrf.mxu3  ;;  %v3869_v54 = vadd.f32 %v3868_v32, %v3799_v17 }
 0x492   : > { %v10786_v47 = vadd.f32 %v3136_v26, %v3068_v19  ;;  %v10789_v40 = vadd.f32 %v3869_v54, %v10638_v33  ;;  %v8333_v19 = vld [vmem:[%s11339_s4 + $0x3dc] sm:$0xf]  ;;  %v7427_v26 = vld [vmem:[%s11339_s4 + $0x3e4] sm:$0xf0] }
 0x496   : > { %v3802_v16 = vpop.f32.mrf.mxu0 }
 0x497   : > { %v3069_v22 = vpop.f32.mrf.mxu2  ;;  %v3871_v25 = vpop.f32.mrf.mxu1 }
 0x498   : > { %v3070_v58 = vadd.f32 %v3069_v22, %v11487_v46  ;;  %v3138_v50 = vpop.f32.mrf.mxu3  ;;  %v3872_v9 = vadd.f32 %v3871_v25, %v3802_v16  ;;  %v8309_v46 = vld [vmem:[%s11339_s4 + $0x31c] sm:$0xf]  ;;  %v7331_v25 = vld [vmem:[%s11339_s4 + $0x324] sm:$0xf0] }
 0x499   : > { %4057 = vmatmul.bf16.gmra.mxu0 %v9594_v43  ;;  %v7334_v22 = vor.u32 %v8309_v46, %v7331_v25  ;;  %v7430_v46 = vor.u32 %v8333_v19, %v7427_v26  ;;  %v11491_v25 = vld [vmem:[#allocation38_spill] sm:$0xff] }
 0x49a   : > { %v10793_v48 = vadd.f32 %v3138_v50, %v3070_v58  ;;  %v10796_v23 = vadd.f32 %v3872_v9, %v10671_v28  ;;  %4126 = vmatmul.bf16.gmra.mxu1 %v9596_v24  ;;  %v11489_v9 = vld [vmem:[#allocation36_spill] sm:$0xff] }
 0x49b   : > { %3907 = vmatpush.bf16.msra.mxu2 %v7334_v22  ;;  %3976 = vmatpush.bf16.msra.mxu3 %v7430_v46  ;;  %v8306_v46 = vld [vmem:[%s11339_s4 + $0x304] sm:$0xf] }
 0x49c   : > { %11488 = vst [vmem:[#allocation21_spill] sm:$0xff] %v10796_v23  ;;  %3327 = vmatmul.bf16.gmra.mxu2 %v9616_v31  ;;  %3396 = vmatmul.bf16.gmra.mxu3 %v9618_v8 }
 0x49e   : > { %v3804_v33 = vpop.f32.mrf.mxu0 }
 0x49f   : > { %v3072_v58 = vpop.f32.mrf.mxu2  ;;  %v3873_v50 = vpop.f32.mrf.mxu1 }
 0x4a0   : > { %v3073_v28 = vadd.f32 %v3072_v58, %v11489_v9  ;;  %v3141_v17 = vpop.f32.mrf.mxu3  ;;  %v3874_v34 = vadd.f32 %v3873_v50, %v3804_v33 }
 0x4a2   : > { %v10808_v32 = vadd.f32 %v3141_v17, %v3073_v28  ;;  %v10811_v7 = vadd.f32 %v3874_v34, %v10699_v41  ;;  %v11493_v34 = vld [vmem:[#allocation14_spill] sm:$0xff] }
 0x4a4   : > { %11490 = vst [vmem:[#allocation12_spill] sm:$0xff] %v10811_v7 }
 0x4a6   : > { %v3807_v18 = vpop.f32.mrf.mxu0 }
 0x4a7   : > { %v3074_v54 = vpop.f32.mrf.mxu2  ;;  %v3876_v16 = vpop.f32.mrf.mxu1 }
 0x4a8   : > { %v3075_v33 = vadd.f32 %v3074_v54, %v11491_v25  ;;  %v3143_v58 = vpop.f32.mrf.mxu3  ;;  %v3877_v50 = vadd.f32 %v3876_v16, %v3807_v18  ;;  %v7319_v25 = vld [vmem:[%s11339_s4 + $0x30c] sm:$0xf0] }
 0x4a9   : > { %4062 = vmatmul.bf16.gmra.mxu0 %v9616_v31 }
 0x4aa   : > { %v10821_v41 = vadd.f32 %v3143_v58, %v3075_v33  ;;  %v10824_v22 = vadd.f32 %v3877_v50, %v10714_v52  ;;  %4131 = vmatmul.bf16.gmra.mxu1 %v9618_v8  ;;  %v7322_v50 = vor.u32 %v8306_v46, %v7319_v25 }
 0x4ac   : > { %11492 = vst [vmem:[#allocation13_spill] sm:$0xff] %v10824_v22  ;;  %3332 = vmatmul.bf16.gmra.mxu2 %v9638_v63  ;;  %3401 = vmatmul.bf16.gmra.mxu3 %v9640_v59  ;;  %v11498_v22 = vld [vmem:[#allocation19_spill] sm:$0xff] }
 0x4ad   : > { %3908 = vmatpush.bf16.msra.mxu2 %v7322_v50 }
 0x4ae   : > { %v3809_v9 = vpop.f32.mrf.mxu0 }
 0x4af   : > { %v3293_v28 = vpop.f32.mrf.mxu2  ;;  %v3878_v17 = vpop.f32.mrf.mxu1 }
 0x4b0   : > { %v3294_v19 = vadd.f32 %v3293_v28, %v11493_v34  ;;  %v3362_v18 = vpop.f32.mrf.mxu3  ;;  %v3879_v26 = vadd.f32 %v3878_v17, %v3809_v9  ;;  %v11495_v28 = vld [vmem:[#allocation17_spill] sm:$0xff] }
 0x4b2   : > { %v10830_v54 = vadd.f32 %v3362_v18, %v3294_v19  ;;  %v10833_v16 = vadd.f32 %v3879_v26, %v10721_v42  ;;  %v8330_v26 = vld [vmem:[%s11339_s4 + $0x3c4] sm:$0xf] }
 0x4b4   : > { %11494 = vst [vmem:[#allocation30_spill] sm:$0xff] %v10833_v16 }
 0x4b6   : > { %v3812_v52 = vpop.f32.mrf.mxu0 }
 0x4b7   : > { %v3295_v33 = vpop.f32.mrf.mxu2  ;;  %v3881_v58 = vpop.f32.mrf.mxu1 }
 0x4b8   : > { %v3296_v34 = vadd.f32 %v3295_v33, %v11495_v28  ;;  %v3364_v9 = vpop.f32.mrf.mxu3  ;;  %v3882_v17 = vadd.f32 %v3881_v58, %v3812_v52  ;;  %v7415_v52 = vld [vmem:[%s11339_s4 + $0x3cc] sm:$0xf0] }
 0x4b9   : > { %4067 = vmatmul.bf16.gmra.mxu0 %v9638_v63  ;;  %v7418_v33 = vor.u32 %v8330_v26, %v7415_v52 }
 0x4ba   : > { %v10843_v42 = vadd.f32 %v3364_v9, %v3296_v34  ;;  %v10846_v19 = vadd.f32 %v3882_v17, %v10736_v13  ;;  %4136 = vmatmul.bf16.gmra.mxu1 %v9640_v59  ;;  %v11497_v13 = vld [vmem:[#allocation18_spill] sm:$0xff] }
 0x4bb   : > { %3977 = vmatpush.bf16.msra.mxu3 %v7418_v33 }
 0x4bc   : > { %11496 = vst [vmem:[#allocation23_spill] sm:$0xff] %v10846_v19  ;;  %3337 = vmatmul.bf16.gmra.mxu2 %v9670_v2  ;;  %3406 = vmatmul.bf16.gmra.mxu3 %v9672_v56 }
 0x4be   : > { %v3814_v18 = vpop.f32.mrf.mxu0 }
 0x4bf   : > { %v3298_v46 = vpop.f32.mrf.mxu2  ;;  %v3883_v25 = vpop.f32.mrf.mxu1 }
 0x4c0   : > { %v3299_v58 = vadd.f32 %v3298_v46, %v11497_v13  ;;  %v3367_v50 = vpop.f32.mrf.mxu3  ;;  %v3884_v28 = vadd.f32 %v3883_v25, %v3814_v18  ;;  %v8385_v18 = vld [vmem:[#allocation3 + $0xf8] sm:$0xff] }
 0x4c1   : > { %4722 = vmatpush.bf16.msrb.mxu2 %v8385_v18 }
 0x4c2   : > { %v10858_v34 = vadd.f32 %v3367_v50, %v3299_v58  ;;  %v10861_v9 = vadd.f32 %v3884_v28, %v10749_v27  ;;  %v11502_v58 = vld [vmem:[#allocation22_spill] sm:$0xff] }
 0x4c6   : > { %v3817_v17 = vpop.f32.mrf.mxu0 }
 0x4c7   : > { %v3300_v19 = vpop.f32.mrf.mxu2  ;;  %v3886_v16 = vpop.f32.mrf.mxu1 }
 0x4c8   : > { %v3301_v7 = vadd.f32 %v3300_v19, %v11498_v22  ;;  %v3369_v23 = vpop.f32.mrf.mxu3  ;;  %v3887_v44 = vadd.f32 %v3886_v16, %v3817_v17  ;;  %v11500_v22 = vld [vmem:[#allocation20_spill] sm:$0xff] }
 0x4c9   : > { %4072 = vmatmul.bf16.gmra.mxu0 %v9670_v2 }
 0x4ca   : > { %v10865_v26 = vadd.f32 %v3369_v23, %v3301_v7  ;;  %v10868_v52 = vadd.f32 %v3887_v44, %v10758_v49  ;;  %4141 = vmatmul.bf16.gmra.mxu1 %v9672_v56 }
 0x4cc   : > { %11499 = vst [vmem:[#allocation27_spill] sm:$0xff] %v10868_v52  ;;  %3342 = vmatmul.bf16.gmra.mxu2 %v9700_v35  ;;  %3411 = vmatmul.bf16.gmra.mxu3 %v9702_v45 }
 0x4ce   : > { %v3819_v27 = vpop.f32.mrf.mxu0 }
 0x4cf   : > { %v3303_v46 = vpop.f32.mrf.mxu2  ;;  %v3888_v25 = vpop.f32.mrf.mxu1 }
 0x4d0   : > { %v3304_v19 = vadd.f32 %v3303_v46, %v11500_v22  ;;  %v3372_v16 = vpop.f32.mrf.mxu3  ;;  %v3889_v33 = vadd.f32 %v3888_v25, %v3819_v27  ;;  %v11504_v25 = vld [vmem:[#allocation26_spill] sm:$0xff] }
 0x4d2   : > { %v10874_v23 = vadd.f32 %v3372_v16, %v3304_v19  ;;  %v10877_v44 = vadd.f32 %v3889_v33, %v10771_v21 }
 0x4d4   : > { %11501 = vst [vmem:[#allocation15_spill] sm:$0xff] %v10877_v44 }
 0x4d6   : > { %v3822_v49 = vpop.f32.mrf.mxu0 }
 0x4d7   : > { %v3305_v7 = vpop.f32.mrf.mxu2  ;;  %v3891_v13 = vpop.f32.mrf.mxu1 }
 0x4d8   : > { %v3306_v50 = vadd.f32 %v3305_v7, %v11502_v58  ;;  %v3374_v28 = vpop.f32.mrf.mxu3  ;;  %v3892_v17 = vadd.f32 %v3891_v13, %v3822_v49  ;;  %v11506_v58 = vld [vmem:[#allocation28_spill] sm:$0xff] }
 0x4d9   : > { %4077 = vmatmul.bf16.gmra.mxu0 %v9700_v35 }
 0x4da   : > { %v10881_v52 = vadd.f32 %v3374_v28, %v3306_v50  ;;  %v10884_v46 = vadd.f32 %v3892_v17, %v10786_v47  ;;  %4146 = vmatmul.bf16.gmra.mxu1 %v9702_v45 }
 0x4dc   : > { %11503 = vst [vmem:[#allocation16_spill] sm:$0xff] %v10884_v46  ;;  %3347 = vmatmul.bf16.gmra.mxu2 %v9726_v60  ;;  %3416 = vmatmul.bf16.gmra.mxu3 %v9728_v1 }
 0x4de   : > { %v3824_v21 = vpop.f32.mrf.mxu0 }
 0x4df   : > { %v3308_v27 = vpop.f32.mrf.mxu2  ;;  %v3893_v18 = vpop.f32.mrf.mxu1 }
 0x4e0   : > { %v3309_v22 = vadd.f32 %v3308_v27, %v11504_v25  ;;  %v3377_v19 = vpop.f32.mrf.mxu3  ;;  %v3894_v16 = vadd.f32 %v3893_v18, %v3824_v21 }
 0x4e2   : > { %v10890_v33 = vadd.f32 %v3377_v19, %v3309_v22  ;;  %v10893_v49 = vadd.f32 %v3894_v16, %v10793_v48  ;;  %v8384_v48 = vld [vmem:[#allocation3 + $0xf0] sm:$0xff]  ;;  %v11508_v22 = vld [vmem:[#allocation24_spill] sm:$0xff] }
 0x4e3   : > { %4723 = vmatpush.bf16.msrb.mxu2 %v8384_v48 }
 0x4e4   : > { %11505 = vst [vmem:[#allocation29_spill] sm:$0xff] %v10893_v49  ;;  %v8374_v49 = vld [vmem:[#allocation3 + $0xa0] sm:$0xff] }
 0x4e6   : > { %v3827_v47 = vpop.f32.mrf.mxu0 }
 0x4e7   : > { %v3310_v7 = vpop.f32.mrf.mxu2  ;;  %v3896_v13 = vpop.f32.mrf.mxu1 }
 0x4e8   : > { %v3311_v50 = vadd.f32 %v3310_v7, %v11506_v58  ;;  %v3379_v28 = vpop.f32.mrf.mxu3  ;;  %v3897_v17 = vadd.f32 %v3896_v13, %v3827_v47  ;;  %v8393_v7 = vld [vmem:[#allocation3 + $0x138] sm:$0xff] }
 0x4e9   : > { %4082 = vmatmul.bf16.gmra.mxu0 %v9726_v60  ;;  %4741 = vmatpush.bf16.msrb.mxu3 %v8393_v7 }
 0x4ea   : > { %v10897_v46 = vadd.f32 %v3379_v28, %v3311_v50  ;;  %v10900_v27 = vadd.f32 %v3897_v17, %v10808_v32  ;;  %4151 = vmatmul.bf16.gmra.mxu1 %v9728_v1 }
 0x4ec   : > { %11507 = vst [vmem:[#allocation25_spill] sm:$0xff] %v10900_v27  ;;  %3909 = vmatmul.bf16.vlgmr.msra.gmra.mxu2 %v9506_v11  ;;  %3978 = vmatmul.bf16.vlgmr.msra.gmra.mxu3 %v9508_v55  ;;  %v11510_v55 = vld [vmem:[#allocation8_spill] sm:$0xff] }
 0x4ee   : > { %v3829_v21 = vpop.f32.mrf.mxu0 }
 0x4ef   : > { %v3313_v18 = vpop.f32.mrf.mxu2  ;;  %v3898_v25 = vpop.f32.mrf.mxu1 }
 0x4f0   : > { %v3314_v19 = vadd.f32 %v3313_v18, %v11508_v22  ;;  %v3382_v16 = vpop.f32.mrf.mxu3  ;;  %v3899_v47 = vadd.f32 %v3898_v25, %v3829_v21  ;;  %v10915_v18 = vld [vmem:[%s11340_s5] sm:$0x7]  ;;  %v8377_v22 = vld [vmem:[#allocation3 + $0xb8] sm:$0xff] }
 0x4f1   : > { %v10922_v25 = vperm.slane %v10915_v18, 2  ;;  %4993 = vmatpush.bf16.msra.mxu1 %v8377_v22 }
 0x4f2   : > { %v10906_v13 = vadd.f32 %v3382_v16, %v3314_v19  ;;  %v10909_v32 = vadd.f32 %v3899_v47, %v10821_v41  ;;  %v8376_v47 = vld [vmem:[#allocation3 + $0xb0] sm:$0xff] }
 0x4f4   : > { %11509 = vst [vmem:[#allocation9_spill] sm:$0xff] %v10909_v32  ;;  %v8375_v32 = vld [vmem:[#allocation3 + $0xa8] sm:$0xff] }
 0x4f5   : > { %4994 = vmatpush.bf16.msra.mxu1 %v8376_v47 }
 0x4f6   : > { %v4048_v58 = vpop.f32.mrf.mxu0 }
 0x4f7   : > { %v3315_v11 = vpop.f32.mrf.mxu2  ;;  %v4117_v50 = vpop.f32.mrf.mxu1 }
 0x4f8   : > { %v3316_v28 = vadd.f32 %v3315_v11, %v11510_v55  ;;  %v3384_v17 = vpop.f32.mrf.mxu3  ;;  %v4118_v48 = vadd.f32 %v4117_v50, %v4048_v58  ;;  %v11511_v11 = vld [vmem:[#allocation10_spill] sm:$0xff] }
 0x4f9   : > { %4087 = vmatmul.bf16.gmra.mxu0 %v9758_v10  ;;  %4995 = vmatpush.bf16.msra.mxu1 %v8375_v32 }
 0x4fa   : > { %v10918_v21 = vadd.f32 %v3384_v17, %v3316_v28  ;;  %v4179_v41 = vadd.f32 %v4118_v48, %v10830_v54  ;;  %4156 = vmatmul.bf16.gmra.mxu1 %v9760_v20 }
 0x4fc   : > { %3914 = vmatmul.bf16.gmra.mxu2 %v9565_v53  ;;  %3983 = vmatmul.bf16.gmra.mxu3 %v9567_v51  ;;  %v4259_v19 = vadd.f32 %v10922_v25, %v4179_v41  ;;  %v8383_v53 = vld [vmem:[#allocation3 + $0xe8] sm:$0xff] }
 0x4fd   : > { %4724 = vmatpush.bf16.msrb.mxu2 %v8383_v53  ;;  %4996 = vmatpush.bf16.msra.mxu1 %v8374_v49 }
 0x4fe   : > { %v4050_v16 = vpop.f32.mrf.mxu0  ;;  %v4331_v28 = vmax.f32 %v4259_v19, 0.0 }
 0x4ff   : > { %v3318_v7 = vpop.f32.mrf.mxu2  ;;  %v4119_v58 = vpop.f32.mrf.mxu1 }
 0x500   : > { %v3319_v50 = vadd.f32 %v3318_v7, %v11511_v11  ;;  %v3387_v54 = vpop.f32.mrf.mxu3  ;;  %v4120_v55 = vadd.f32 %v4119_v58, %v4050_v16  ;;  %v4402_v41 = vpack.c.bf16 %v4331_v28, %v4331_v28  ;;  %v11512_v16 = vld [vmem:[#allocation31_spill] sm:$0xff] }
 0x502   : > { %v10929_v17 = vadd.f32 %v3387_v54, %v3319_v50  ;;  %v4182_v48 = vadd.f32 %v4120_v55, %v10843_v42  ;;  %v4789_v42 = vunpack.c.l.b16 %v4402_v41  ;;  %v8373_v55 = vld [vmem:[#allocation3 + $0x98] sm:$0xff]  ;;  %v11513_v41 = vld [vmem:[#allocation33_spill] sm:$0xff] }
 0x503   : > { %4997 = vmatpush.bf16.msra.mxu1 %v8373_v55  ;;  %v8370_v55 = vld [vmem:[#allocation3 + $0x80] sm:$0xff] }
 0x504   : > { %v4262_v51 = vadd.f32 %v10922_v25, %v4182_v48  ;;  %v8372_v48 = vld [vmem:[#allocation3 + $0x90] sm:$0xff] }
 0x506   : > { %v4334_v22 = vmax.f32 %v4262_v51, 0.0  ;;  %v4053_v27 = vpop.f32.mrf.mxu0 }
 0x507   : > { %v3320_v44 = vpop.f32.mrf.mxu2  ;;  %v4122_v7 = vpop.f32.mrf.mxu1  ;;  %4998 = vmatpush.bf16.msra.mxu1 %v8372_v48 }
 0x508   : > { %v4404_v11 = vpack.c.bf16 %v4334_v22, %v4334_v22  ;;  %v3321_v47 = vadd.f32 %v3320_v44, %v11512_v16  ;;  %v3389_v19 = vpop.f32.mrf.mxu3  ;;  %v4123_v58 = vadd.f32 %v4122_v7, %v4053_v27  ;;  %v8392_v44 = vld [vmem:[#allocation3 + $0x130] sm:$0xff] }
 0x509   : > { %4092 = vmatmul.bf16.gmra.mxu0 %v9790_v4  ;;  %4742 = vmatpush.bf16.msrb.mxu3 %v8392_v44 }
 0x50a   : > { %v4792_v50 = vunpack.c.l.b16 %v4404_v11  ;;  %v10935_v54 = vadd.f32 %v3389_v19, %v3321_v47  ;;  %v4185_v32 = vadd.f32 %v4123_v58, %v10858_v34  ;;  %4161 = vmatmul.bf16.gmra.mxu1 %v9792_v6 }
 0x50c   : > { %v10939_v28 = vpack.c.b16 %v4792_v50, %v4789_v42  ;;  %3919 = vmatmul.bf16.gmra.mxu2 %v9594_v43  ;;  %3988 = vmatmul.bf16.gmra.mxu3 %v9596_v24  ;;  %v4265_v27 = vadd.f32 %v10922_v25, %v4185_v32  ;;  %v8371_v24 = vld [vmem:[#allocation3 + $0x88] sm:$0xff]  ;;  %v8369_v50 = vld [vmem:[#allocation3 + $0x78] sm:$0xff]  ;;  %v8382_v32 = vld [vmem:[#allocation3 + $0xe0] sm:$0xff] }
 0x50d   : > { %4999 = vmatpush.bf16.msra.mxu1 %v8371_v24  ;;  %4974 = vmatpush.bf16.msra.mxu0 %v8369_v50 }
 0x50e   : > { %v4055_v49 = vpop.f32.mrf.mxu0  ;;  %v4337_v11 = vmax.f32 %v4265_v27, 0.0  ;;  %4725 = vmatpush.bf16.msrb.mxu2 %v8382_v32 }
 0x50f   : > { %v3323_v53 = vpop.f32.mrf.mxu2  ;;  %v4124_v51 = vpop.f32.mrf.mxu1 }
 0x510   : > { %v3324_v34 = vadd.f32 %v3323_v53, %v11513_v41  ;;  %v3392_v22 = vpop.f32.mrf.mxu3  ;;  %v4125_v7 = vadd.f32 %v4124_v51, %v4055_v49  ;;  %v4406_v19 = vpack.c.bf16 %v4337_v11, %v4337_v11  ;;  %v11514_v41 = vld [vmem:[#allocation35_spill] sm:$0xff] }
 0x511   : > { %5000 = vmatpush.bf16.msra.mxu1 %v8370_v55 }
 0x512   : > { %v10945_v16 = vadd.f32 %v3392_v22, %v3324_v34  ;;  %v4188_v43 = vadd.f32 %v4125_v7, %v10865_v26  ;;  %v4795_v22 = vunpack.c.l.b16 %v4406_v19 }
 0x514   : > { %v4268_v47 = vadd.f32 %v10922_v25, %v4188_v43 }
 0x516   : > { %v4340_v58 = vmax.f32 %v4268_v47, 0.0  ;;  %v4058_v42 = vpop.f32.mrf.mxu0 }
 0x517   : > { %v3325_v44 = vpop.f32.mrf.mxu2  ;;  %v4127_v53 = vpop.f32.mrf.mxu1 }
 0x518   : > { %v3326_v49 = vadd.f32 %v3325_v44, %v11514_v41  ;;  %v3394_v48 = vpop.f32.mrf.mxu3  ;;  %v4128_v27 = vadd.f32 %v4127_v53, %v4058_v42  ;;  %v4408_v51 = vpack.c.bf16 %v4340_v58, %v4340_v58  ;;  %v11515_v42 = vld [vmem:[#allocation37_spill] sm:$0xff] }
 0x519   : > { %4097 = vmatmul.bf16.gmra.mxu0 %v11475_v37  ;;  %v8391_v53 = vld [vmem:[#allocation3 + $0x128] sm:$0xff] }
 0x51a   : > { %v10951_v26 = vadd.f32 %v3394_v48, %v3326_v49  ;;  %v4191_v34 = vadd.f32 %v4128_v27, %v10874_v23  ;;  %4166 = vmatmul.bf16.gmra.mxu1 %v11476_v57  ;;  %v4798_v7 = vunpack.c.l.b16 %v4408_v51  ;;  %4743 = vmatpush.bf16.msrb.mxu3 %v8391_v53 }
 0x51c   : > { %3924 = vmatmul.bf16.gmra.mxu2 %v9616_v31  ;;  %3993 = vmatmul.bf16.gmra.mxu3 %v9618_v8  ;;  %v10957_v11 = vpack.c.b16 %v4798_v7, %v4795_v22  ;;  %v4271_v43 = vadd.f32 %v10922_v25, %v4191_v34  ;;  %v11516_v34 = vld [vmem:[#allocation39_spill] sm:$0xff] }
 0x51e   : > { %v4060_v24 = vpop.f32.mrf.mxu0  ;;  %v4343_v23 = vmax.f32 %v4271_v43, 0.0 }
 0x51f   : > { %v3328_v47 = vpop.f32.mrf.mxu2  ;;  %v4129_v58 = vpop.f32.mrf.mxu1 }
 0x520   : > { %v3329_v50 = vadd.f32 %v3328_v47, %v11515_v42  ;;  %v3397_v32 = vpop.f32.mrf.mxu3  ;;  %v4130_v55 = vadd.f32 %v4129_v58, %v4060_v24  ;;  %v4410_v8 = vpack.c.bf16 %v4343_v23, %v4343_v23 }
 0x522   : > { %v10961_v44 = vadd.f32 %v3397_v32, %v3329_v50  ;;  %v4194_v19 = vadd.f32 %v4130_v55, %v10881_v52  ;;  %v4556_v43 = vunpack.c.l.b16 %v4410_v8 }
 0x524   : > { %v4274_v31 = vadd.f32 %v10922_v25, %v4194_v19  ;;  %v11517_v19 = vld [vmem:[#allocation40_spill] sm:$0xff] }
 0x526   : > { %v4346_v41 = vmax.f32 %v4274_v31, 0.0  ;;  %v4063_v49 = vpop.f32.mrf.mxu0 }
 0x527   : > { %v3330_v48 = vpop.f32.mrf.mxu2  ;;  %v4132_v27 = vpop.f32.mrf.mxu1 }
 0x528   : > { %v4412_v51 = vpack.c.bf16 %v4346_v41, %v4346_v41  ;;  %v3331_v22 = vadd.f32 %v3330_v48, %v11516_v34  ;;  %v3399_v7 = vpop.f32.mrf.mxu3  ;;  %v4133_v47 = vadd.f32 %v4132_v27, %v4063_v49  ;;  %v8368_v41 = vld [vmem:[#allocation3 + $0x70] sm:$0xff]  ;;  %v8381_v49 = vld [vmem:[#allocation3 + $0xd8] sm:$0xff] }
 0x529   : > { %4102 = vmatmul.bf16.gmra.mxu0 %v11480_v14  ;;  %4726 = vmatpush.bf16.msrb.mxu2 %v8381_v49 }
 0x52a   : > { %v4559_v24 = vunpack.c.l.b16 %v4412_v51  ;;  %v10967_v58 = vadd.f32 %v3399_v7, %v3331_v22  ;;  %v4197_v52 = vadd.f32 %v4133_v47, %v10890_v33  ;;  %4171 = vmatmul.bf16.gmra.mxu1 %v11481_v3  ;;  %4975 = vmatpush.bf16.msra.mxu0 %v8368_v41  ;;  %v8390_v22 = vld [vmem:[#allocation3 + $0x120] sm:$0xff] }
 0x52b   : > { %4744 = vmatpush.bf16.msrb.mxu3 %v8390_v22 }
 0x52c   : > { %v10971_v42 = vpack.c.b16 %v4559_v24, %v4556_v43  ;;  %3929 = vmatmul.bf16.gmra.mxu2 %v9638_v63  ;;  %3998 = vmatmul.bf16.gmra.mxu3 %v9640_v59  ;;  %v4277_v50 = vadd.f32 %v10922_v25, %v4197_v52  ;;  %v11518_v43 = vld [vmem:[#allocation41_spill] sm:$0xff] }
 0x52e   : > { %v4065_v32 = vpop.f32.mrf.mxu0  ;;  %v4349_v33 = vmax.f32 %v4277_v50, 0.0 }
 0x52f   : > { %v3333_v55 = vpop.f32.mrf.mxu2  ;;  %v4134_v23 = vpop.f32.mrf.mxu1 }
 0x530   : > { %v3334_v53 = vadd.f32 %v3333_v55, %v11517_v19  ;;  %v3402_v31 = vpop.f32.mrf.mxu3  ;;  %v4135_v8 = vadd.f32 %v4134_v23, %v4065_v32  ;;  %v4414_v59 = vpack.c.bf16 %v4349_v33, %v4349_v33  ;;  %v11519_v33 = vld [vmem:[#allocation42_spill] sm:$0xff] }
 0x532   : > { %v10977_v48 = vadd.f32 %v3402_v31, %v3334_v53  ;;  %v4200_v27 = vadd.f32 %v4135_v8, %v10897_v46  ;;  %v4562_v23 = vunpack.c.l.b16 %v4414_v59 }
 0x534   : > { %v4280_v63 = vadd.f32 %v10922_v25, %v4200_v27 }
 0x536   : > { %v4352_v51 = vmax.f32 %v4280_v63, 0.0  ;;  %v4068_v34 = vpop.f32.mrf.mxu0 }
 0x537   : > { %v3335_v7 = vpop.f32.mrf.mxu2  ;;  %v4137_v47 = vpop.f32.mrf.mxu1 }
 0x538   : > { %v3336_v24 = vadd.f32 %v3335_v7, %v11518_v43  ;;  %v3404_v52 = vpop.f32.mrf.mxu3  ;;  %v4138_v32 = vadd.f32 %v4137_v47, %v4068_v34  ;;  %v4416_v50 = vpack.c.bf16 %v4352_v51, %v4352_v51 }
 0x53a   : > { %v10982_v55 = vadd.f32 %v3404_v52, %v3336_v24  ;;  %v4203_v46 = vadd.f32 %v4138_v32, %v10906_v13  ;;  %5001 = vmatmul.bf16.vlgmr.msra.gmra.mxu1 %v10939_v28  ;;  %v4565_v19 = vunpack.c.l.b16 %v4416_v50  ;;  %v11520_v24 = vld [vmem:[#allocation43_spill] sm:$0xff] }
 0x53c   : > { %3934 = vmatmul.bf16.gmra.mxu2 %v9670_v2  ;;  %4003 = vmatmul.bf16.gmra.mxu3 %v9672_v56  ;;  %v10988_v53 = vpack.c.b16 %v4565_v19, %v4562_v23  ;;  %v4283_v31 = vadd.f32 %v10922_v25, %v4203_v46 }
 0x53e   : > { %v4070_v8 = vpop.f32.mrf.mxu0  ;;  %v4355_v13 = vmax.f32 %v4283_v31, 0.0 }
 0x53f   : > { %v3338_v41 = vpop.f32.mrf.mxu2  ;;  %v4139_v49 = vpop.f32.mrf.mxu1 }
 0x540   : > { %v3339_v27 = vadd.f32 %v3338_v41, %v11519_v33  ;;  %v3407_v63 = vpop.f32.mrf.mxu3  ;;  %v4140_v51 = vadd.f32 %v4139_v49, %v4070_v8  ;;  %v4418_v59 = vpack.c.bf16 %v4355_v13, %v4355_v13  ;;  %v8367_v8 = vld [vmem:[#allocation3 + $0x68] sm:$0xff]  ;;  %v8380_v41 = vld [vmem:[#allocation3 + $0xd0] sm:$0xff] }
 0x541   : > { %4976 = vmatpush.bf16.msra.mxu0 %v8367_v8  ;;  %4727 = vmatpush.bf16.msrb.mxu2 %v8380_v41  ;;  %v8364_v41 = vld [vmem:[#allocation3 + $0x50] sm:$0xff] }
 0x542   : > { %v10992_v34 = vadd.f32 %v3407_v63, %v3339_v27  ;;  %v4206_v28 = vadd.f32 %v4140_v51, %v10918_v21  ;;  %v5071_v46 = vunpack.c.l.b16 %v4418_v59  ;;  %v11521_v51 = vld [vmem:[#allocation44_spill] sm:$0xff] }
 0x544   : > { %v4286_v2 = vadd.f32 %v10922_v25, %v4206_v28 }
 0x546   : > { %v4358_v56 = vmax.f32 %v4286_v2, 0.0  ;;  %v4073_v22 = vpop.f32.mrf.mxu0 }
 0x547   : > { %v3340_v7 = vpop.f32.mrf.mxu2  ;;  %v4142_v47 = vpop.f32.mrf.mxu1 }
 0x548   : > { %v4420_v43 = vpack.c.bf16 %v4358_v56, %v4358_v56  ;;  %v3341_v52 = vadd.f32 %v3340_v7, %v11520_v24  ;;  %v3409_v32 = vpop.f32.mrf.mxu3  ;;  %v4143_v50 = vadd.f32 %v4142_v47, %v4073_v22 }
 0x54a   : > { %v5074_v23 = vunpack.c.l.b16 %v4420_v43  ;;  %v10997_v19 = vadd.f32 %v3409_v32, %v3341_v52  ;;  %v4209_v31 = vadd.f32 %v4143_v50, %v10929_v17  ;;  %5006 = vmatmul.bf16.gmra.mxu1 %v10957_v11  ;;  %v8389_v11 = vld [vmem:[#allocation3 + $0x118] sm:$0xff]  ;;  %v11522_v32 = vld [vmem:[#allocation45_spill] sm:$0xff] }
 0x54b   : > { %4745 = vmatpush.bf16.msrb.mxu3 %v8389_v11  ;;  %v8365_v43 = vld [vmem:[#allocation3 + $0x58] sm:$0xff]  ;;  %v11523_v11 = vld [vmem:[#allocation46_spill] sm:$0xff] }
 0x54c   : > { %v11001_v21 = vpack.c.b16 %v5074_v23, %v5071_v46  ;;  %3939 = vmatmul.bf16.gmra.mxu2 %v9700_v35  ;;  %4008 = vmatmul.bf16.gmra.mxu3 %v9702_v45  ;;  %v4289_v49 = vadd.f32 %v10922_v25, %v4209_v31  ;;  %v8366_v45 = vld [vmem:[#allocation3 + $0x60] sm:$0xff] }
 0x54d   : > { %4977 = vmatpush.bf16.msra.mxu0 %v8366_v45 }
 0x54e   : > { %v4075_v33 = vpop.f32.mrf.mxu0  ;;  %v4361_v2 = vmax.f32 %v4289_v49, 0.0 }
 0x54f   : > { %v3343_v27 = vpop.f32.mrf.mxu2  ;;  %v4144_v63 = vpop.f32.mrf.mxu1 }
 0x550   : > { %v3344_v13 = vadd.f32 %v3343_v27, %v11521_v51  ;;  %v3412_v17 = vpop.f32.mrf.mxu3  ;;  %v4145_v28 = vadd.f32 %v4144_v63, %v4075_v33  ;;  %v4422_v22 = vpack.c.bf16 %v4361_v2, %v4361_v2 }
 0x551   : > { %4978 = vmatpush.bf16.msra.mxu0 %v8365_v43 }
 0x552   : > { %v11007_v59 = vadd.f32 %v3412_v17, %v3344_v13  ;;  %v4212_v35 = vadd.f32 %v4145_v28, %v10935_v54  ;;  %v5077_v49 = vunpack.c.l.b16 %v4422_v22  ;;  %v8363_v13 = vld [vmem:[#allocation3 + $0x48] sm:$0xff] }
 0x553   : > { %v8379_v22 = vld [vmem:[#allocation3 + $0xc8] sm:$0xff] }
 0x554   : > { %v4292_v56 = vadd.f32 %v10922_v25, %v4212_v35  ;;  %4728 = vmatpush.bf16.msrb.mxu2 %v8379_v22  ;;  %v11038_v22 = vperm.slane %v10915_v18, 1 }
 0x555   : > { %4979 = vmatpush.bf16.msra.mxu0 %v8364_v41 }
 0x556   : > { %v4364_v7 = vmax.f32 %v4292_v56, 0.0  ;;  %v4078_v47 = vpop.f32.mrf.mxu0 }
 0x557   : > { %v3345_v24 = vpop.f32.mrf.mxu2  ;;  %v4147_v52 = vpop.f32.mrf.mxu1 }
 0x558   : > { %v3346_v50 = vadd.f32 %v3345_v24, %v11522_v32  ;;  %v3414_v46 = vpop.f32.mrf.mxu3  ;;  %v4148_v23 = vadd.f32 %v4147_v52, %v4078_v47  ;;  %v4424_v31 = vpack.c.bf16 %v4364_v7, %v4364_v7  ;;  %v8425_v52 = vld [vmem:[#allocation3 + $0x238] sm:$0xff] }
 0x559   : > { %4980 = vmatpush.bf16.msra.mxu0 %v8363_v13 }
 0x55a   : > { %v11012_v8 = vadd.f32 %v3414_v46, %v3346_v50  ;;  %v4215_v54 = vadd.f32 %v4148_v23, %v10945_v16  ;;  %v5080_v33 = vunpack.c.l.b16 %v4424_v31  ;;  %v11524_v23 = vld [vmem:[#allocation47_spill] sm:$0xff] }
 0x55c   : > { %3944 = vmatmul.bf16.gmra.mxu2 %v9726_v60  ;;  %4013 = vmatmul.bf16.gmra.mxu3 %v9728_v1  ;;  %v11017_v27 = vpack.c.b16 %v5080_v33, %v5077_v49  ;;  %v4295_v63 = vadd.f32 %v10922_v25, %v4215_v54  ;;  %v8362_v1 = vld [vmem:[#allocation3 + $0x40] sm:$0xff] }
 0x55d   : > { %4981 = vmatpush.bf16.msra.mxu0 %v8362_v1 }
 0x55e   : > { %v4080_v51 = vpop.f32.mrf.mxu0  ;;  %v4367_v45 = vmax.f32 %v4295_v63, 0.0 }
 0x55f   : > { %v3348_v17 = vpop.f32.mrf.mxu2  ;;  %v4149_v28 = vpop.f32.mrf.mxu1 }
 0x560   : > { %v3349_v2 = vadd.f32 %v3348_v17, %v11523_v11  ;;  %v3417_v35 = vpop.f32.mrf.mxu3  ;;  %v4150_v16 = vadd.f32 %v4149_v28, %v4080_v51  ;;  %v4426_v47 = vpack.c.bf16 %v4367_v45, %v4367_v45  ;;  %v8424_v51 = vld [vmem:[#allocation3 + $0x230] sm:$0xff] }
 0x561   : > { %5275 = vmatpush.bf16.msrb.mxu0 %v8425_v52  ;;  %v8388_v17 = vld [vmem:[#allocation3 + $0x110] sm:$0xff] }
 0x562   : > { %v11021_v56 = vadd.f32 %v3417_v35, %v3349_v2  ;;  %v4218_v60 = vadd.f32 %v4150_v16, %v10951_v26  ;;  %v5357_v49 = vunpack.c.l.b16 %v4426_v47  ;;  %4746 = vmatpush.bf16.msrb.mxu3 %v8388_v17  ;;  %v8423_v2 = vld [vmem:[#allocation3 + $0x228] sm:$0xff]  ;;  %v11035_v35 = vperm.slane %v10915_v18, 0  ;;  %v8421_v18 = vld [vmem:[#allocation3 + $0x218] sm:$0xff] }
 0x564   : > { %v4298_v7 = vadd.f32 %v10922_v25, %v4218_v60  ;;  %v4257_v47 = vadd.f32 %v11035_v35, %v10565_v12 }
 0x565   : > { %5276 = vmatpush.bf16.msrb.mxu0 %v8424_v51 }
 0x566   : > { %v4370_v43 = vmax.f32 %v4298_v7, 0.0  ;;  %v4083_v24 = vpop.f32.mrf.mxu0  ;;  %v8422_v7 = vld [vmem:[#allocation3 + $0x220] sm:$0xff] }
 0x567   : > { %v3350_v32 = vpop.f32.mrf.mxu2  ;;  %v4152_v50 = vpop.f32.mrf.mxu1 }
 0x568   : > { %v4428_v46 = vpack.c.bf16 %v4370_v43, %v4370_v43  ;;  %v3351_v31 = vadd.f32 %v3350_v32, %v11524_v23  ;;  %v3419_v54 = vpop.f32.mrf.mxu3  ;;  %v4153_v41 = vadd.f32 %v4152_v50, %v4083_v24  ;;  %v11525_v43 = vld [vmem:[#allocation48_spill] sm:$0xff] }
 0x569   : > { %5277 = vmatpush.bf16.msrb.mxu0 %v8423_v2 }
 0x56a   : > { %v5360_v26 = vunpack.c.l.b16 %v4428_v46  ;;  %v11026_v33 = vadd.f32 %v3419_v54, %v3351_v31  ;;  %v4221_v63 = vadd.f32 %v4153_v41, %v10961_v44  ;;  %v4329_v31 = vmax.f32 %v4257_v47, 0.0 }
 0x56c   : > { %v11029_v13 = vpack.c.b16 %v5360_v26, %v5357_v49  ;;  %3949 = vmatmul.bf16.gmra.mxu2 %v9758_v10  ;;  %4018 = vmatmul.bf16.gmra.mxu3 %v9760_v20  ;;  %v4301_v28 = vadd.f32 %v10922_v25, %v4221_v63 }
 0x56d   : > { %5278 = vmatpush.bf16.msrb.mxu0 %v8422_v7  ;;  %v8419_v7 = vld [vmem:[#allocation3 + $0x208] sm:$0xff] }
 0x56e   : > { %v4085_v11 = vpop.f32.mrf.mxu0  ;;  %v4373_v10 = vmax.f32 %v4301_v28, 0.0  ;;  %v8420_v28 = vld [vmem:[#allocation3 + $0x210] sm:$0xff] }
 0x56f   : > { %v3910_v16 = vpop.f32.mrf.mxu2  ;;  %v4154_v45 = vpop.f32.mrf.mxu1 }
 0x570   : > { %v3979_v44 = vpop.f32.mrf.mxu3  ;;  %v4155_v60 = vadd.f32 %v4154_v45, %v4085_v11  ;;  %v4430_v50 = vpack.c.bf16 %v4373_v10, %v4373_v10  ;;  %v11526_v45 = vld [vmem:[#allocation49_spill] sm:$0xff] }
 0x571   : > { %v3980_v1 = vadd.f32 %v3979_v44, %v3910_v16  ;;  %5279 = vmatpush.bf16.msrb.mxu0 %v8421_v18  ;;  %v4260_v16 = vadd.f32 %v11035_v35, %v10604_v30 }
 0x572   : > { %v4224_v20 = vadd.f32 %v4155_v60, %v10967_v58  ;;  %v5363_v11 = vunpack.c.l.b16 %v4430_v50  ;;  %v8378_v60 = vld [vmem:[#allocation3 + $0xc0] sm:$0xff] }
 0x573   : > { %v4178_v24 = vadd.f32 %v3980_v1, %v11525_v43  ;;  %4729 = vmatpush.bf16.msrb.mxu2 %v8378_v60  ;;  %v4332_v47 = vmax.f32 %v4260_v16, 0.0 }
 0x574   : > { %v4304_v52 = vadd.f32 %v10922_v25, %v4224_v20 }
 0x575   : > { %v4258_v32 = vadd.f32 %v11038_v22, %v4178_v24  ;;  %5280 = vmatpush.bf16.msrb.mxu0 %v8420_v28 }
 0x576   : > { %v4376_v46 = vmax.f32 %v4304_v52, 0.0  ;;  %v4088_v23 = vpop.f32.mrf.mxu0 }
 0x577   : > { %v4330_v54 = vmax.f32 %v4258_v32, 0.0  ;;  %v3912_v41 = vpop.f32.mrf.mxu2  ;;  %v4157_v49 = vpop.f32.mrf.mxu1 }
 0x578   : > { %v3981_v58 = vpop.f32.mrf.mxu3  ;;  %v4158_v26 = vadd.f32 %v4157_v49, %v4088_v23  ;;  %v4432_v63 = vpack.c.bf16 %v4376_v46, %v4376_v46 }
 0x579   : > { %v4401_v51 = vpack.c.bf16 %v4330_v54, %v4329_v31  ;;  %v3982_v12 = vadd.f32 %v3981_v58, %v3912_v41  ;;  %5281 = vmatpush.bf16.msrb.mxu0 %v8419_v7  ;;  %v8418_v31 = vld [vmem:[#allocation3 + $0x200] sm:$0xff]  ;;  %v11527_v58 = vld [vmem:[#allocation50_spill] sm:$0xff] }
 0x57a   : > { %v4227_v17 = vadd.f32 %v4158_v26, %v10977_v48  ;;  %v5366_v2 = vunpack.c.l.b16 %v4432_v63  ;;  %v8387_v63 = vld [vmem:[#allocation3 + $0x108] sm:$0xff] }
 0x57b   : > { %v4181_v44 = vadd.f32 %v3982_v12, %v11526_v45  ;;  %v4787_v46 = vunpack.c.l.b16 %v4401_v51  ;;  %v4788_v54 = vunpack.c.h.b16 %v4401_v51  ;;  %4747 = vmatpush.bf16.msrb.mxu3 %v8387_v63  ;;  %v8360_v63 = vld [vmem:[#allocation3 + $0x30] sm:$0xff] }
 0x57c   : > { %3954 = vmatmul.bf16.gmra.mxu2 %v9790_v4  ;;  %4023 = vmatmul.bf16.gmra.mxu3 %v9792_v6  ;;  %v11052_v1 = vpack.c.b16 %v5366_v2, %v5363_v11  ;;  %v4307_v48 = vadd.f32 %v10922_v25, %v4227_v17  ;;  %v4263_v6 = vadd.f32 %v11035_v35, %v10641_v29 }
 0x57d   : > { %v4261_v10 = vadd.f32 %v11038_v22, %v4181_v44  ;;  %5282 = vmatpush.bf16.msrb.mxu0 %v8418_v31 }
 0x57e   : > { %v4090_v20 = vpop.f32.mrf.mxu0  ;;  %v4379_v23 = vmax.f32 %v4307_v48, 0.0 }
 0x57f   : > { %v4333_v43 = vmax.f32 %v4261_v10, 0.0  ;;  %v3915_v30 = vpop.f32.mrf.mxu2  ;;  %v4159_v24 = vpop.f32.mrf.mxu1 }
 0x580   : > { %v3984_v52 = vpop.f32.mrf.mxu3  ;;  %v4160_v32 = vadd.f32 %v4159_v24, %v4090_v20  ;;  %v4434_v29 = vpack.c.bf16 %v4379_v23, %v4379_v23  ;;  %v8386_v20 = vld [vmem:[#allocation3 + $0x100] sm:$0xff] }
 0x581   : > { %v4403_v50 = vpack.c.bf16 %v4333_v43, %v4332_v47  ;;  %v3985_v4 = vadd.f32 %v3984_v52, %v3915_v30  ;;  %4748 = vmatpush.bf16.msrb.mxu3 %v8386_v20  ;;  %v4266_v52 = vadd.f32 %v11035_v35, %v10674_v5 }
 0x582   : > { %v4230_v18 = vadd.f32 %v4160_v32, %v10982_v55  ;;  %v4335_v55 = vmax.f32 %v4263_v6, 0.0  ;;  %v5643_v43 = vunpack.c.l.b16 %v4434_v29  ;;  %v11528_v32 = vld [vmem:[#allocation51_spill] sm:$0xff] }
 0x583   : > { %v4790_v41 = vunpack.c.l.b16 %v4403_v50  ;;  %v4791_v49 = vunpack.c.h.b16 %v4403_v50  ;;  %v4184_v26 = vadd.f32 %v3985_v4, %v11527_v58  ;;  %v8401_v6 = vld [vmem:[#allocation3 + $0x178] sm:$0xff] }
 0x584   : > { %v4310_v12 = vadd.f32 %v10922_v25, %v4230_v18  ;;  %4760 = vmatpush.bf16.msra.mxu2 %v8401_v6  ;;  %v8398_v6 = vld [vmem:[#allocation3 + $0x160] sm:$0xff] }
 0x585   : > { %v4264_v17 = vadd.f32 %v11038_v22, %v4184_v26  ;;  %v4800_v28 = vpack.c.b16 %v4791_v49, %v4788_v54  ;;  %v11062_v11 = vpack.c.b16 %v4790_v41, %v4787_v46  ;;  %v8361_v46 = vld [vmem:[#allocation3 + $0x38] sm:$0xff]  ;;  %v8400_v26 = vld [vmem:[#allocation3 + $0x170] sm:$0xff] }
 0x586   : > { %v4382_v2 = vmax.f32 %v4310_v12, 0.0  ;;  %v4093_v16 = vpop.f32.mrf.mxu0  ;;  %4955 = vmatpush.bf16.msra.mxu3 %v8361_v46  ;;  %v8358_v46 = vld [vmem:[#allocation3 + $0x20] sm:$0xff] }
 0x587   : > { %v4336_v45 = vmax.f32 %v4264_v17, 0.0  ;;  %4982 = vmatmul.bf16.vlgmr.msra.gmra.mxu0 %v4800_v28  ;;  %v3917_v51 = vpop.f32.mrf.mxu2  ;;  %v4162_v44 = vpop.f32.mrf.mxu1 }
 0x588   : > { %v4436_v60 = vpack.c.bf16 %v4382_v2, %v4382_v2  ;;  %v3986_v10 = vpop.f32.mrf.mxu3  ;;  %v4163_v48 = vadd.f32 %v4162_v44, %v4093_v16  ;;  %4761 = vmatpush.bf16.msra.mxu2 %v8400_v26  ;;  %v11529_v2 = vld [vmem:[#allocation52_spill] sm:$0xff]  ;;  %v8397_v26 = vld [vmem:[#allocation3 + $0x158] sm:$0xff] }
 0x589   : > { %v4405_v7 = vpack.c.bf16 %v4336_v45, %v4335_v55  ;;  %v3987_v47 = vadd.f32 %v3986_v10, %v3917_v51  ;;  %v8359_v10 = vld [vmem:[#allocation3 + $0x28] sm:$0xff] }
 0x58a   : > { %v5646_v30 = vunpack.c.l.b16 %v4436_v60  ;;  %v4233_v24 = vadd.f32 %v4163_v48, %v10992_v34  ;;  %v4338_v34 = vmax.f32 %v4266_v52, 0.0  ;;  %4956 = vmatpush.bf16.msra.mxu3 %v8360_v63  ;;  %v8399_v60 = vld [vmem:[#allocation3 + $0x168] sm:$0xff]  ;;  %v8357_v63 = vld [vmem:[#allocation3 + $0x18] sm:$0xff] }
 0x58b   : > { %v4187_v50 = vadd.f32 %v3987_v47, %v11528_v32  ;;  %v4794_v29 = vunpack.c.h.b16 %v4405_v7  ;;  %v4793_v45 = vunpack.c.l.b16 %v4405_v7 }
 0x58c   : > { %v11068_v4 = vpack.c.b16 %v5646_v30, %v5643_v43  ;;  %3959 = vmatmul.bf16.gmra.mxu2 %v11475_v37  ;;  %4028 = vmatmul.bf16.gmra.mxu3 %v11476_v57  ;;  %v4313_v18 = vadd.f32 %v10922_v25, %v4233_v24  ;;  %v4269_v57 = vadd.f32 %v11035_v35, %v10702_v36 }
 0x58d   : > { %v4267_v23 = vadd.f32 %v11038_v22, %v4187_v50  ;;  %4762 = vmatpush.bf16.msra.mxu2 %v8399_v60 }
 0x58e   : > { %v4095_v31 = vpop.f32.mrf.mxu0  ;;  %v4385_v17 = vmax.f32 %v4313_v18, 0.0  ;;  %4957 = vmatpush.bf16.msra.mxu3 %v8359_v10  ;;  %v4341_v30 = vmax.f32 %v4269_v57, 0.0 }
 0x58f   : > { %v4339_v54 = vmax.f32 %v4267_v23, 0.0  ;;  %v3920_v5 = vpop.f32.mrf.mxu2  ;;  %v4164_v41 = vpop.f32.mrf.mxu1 }
 0x590   : > { %v3989_v49 = vpop.f32.mrf.mxu3  ;;  %v4165_v58 = vadd.f32 %v4164_v41, %v4095_v31  ;;  %v4438_v36 = vpack.c.bf16 %v4385_v17, %v4385_v17  ;;  %v4272_v41 = vadd.f32 %v11035_v35, %v10717_v15 }
 0x591   : > { %v3990_v37 = vadd.f32 %v3989_v49, %v3920_v5  ;;  %v4407_v12 = vpack.c.bf16 %v4339_v54, %v4338_v34  ;;  %4763 = vmatpush.bf16.msra.mxu2 %v8398_v6  ;;  %v11530_v49 = vld [vmem:[#allocation53_spill] sm:$0xff] }
 0x592   : > { %v4236_v28 = vadd.f32 %v4165_v58, %v10997_v19  ;;  %4958 = vmatpush.bf16.msra.mxu3 %v8358_v46  ;;  %v5649_v54 = vunpack.c.l.b16 %v4438_v36  ;;  %v4344_v17 = vmax.f32 %v4272_v41, 0.0 }
 0x593   : > { %v4190_v16 = vadd.f32 %v3990_v37, %v11529_v2  ;;  %v4797_v55 = vunpack.c.h.b16 %v4407_v12  ;;  %v4796_v51 = vunpack.c.l.b16 %v4407_v12 }
 0x594   : > { %v4316_v44 = vadd.f32 %v10922_v25, %v4236_v28 }
 0x595   : > { %v4270_v48 = vadd.f32 %v11038_v22, %v4190_v16  ;;  %v4803_v20 = vpack.c.b16 %v4797_v55, %v4794_v29  ;;  %v11080_v47 = vpack.c.b16 %v4796_v51, %v4793_v45  ;;  %4764 = vmatpush.bf16.msra.mxu2 %v8397_v26  ;;  %v8356_v55 = vld [vmem:[#allocation3 + $0x10] sm:$0xff]  ;;  %v4275_v51 = vadd.f32 %v11035_v35, %v10724_v39 }
 0x596   : > { %v4388_v43 = vmax.f32 %v4316_v44, 0.0  ;;  %v4098_v19 = vpop.f32.mrf.mxu0  ;;  %4959 = vmatpush.bf16.msra.mxu3 %v8357_v63 }
 0x597   : > { %v4342_v24 = vmax.f32 %v4270_v48, 0.0  ;;  %4987 = vmatmul.bf16.gmra.mxu0 %v4803_v20  ;;  %v3922_v52 = vpop.f32.mrf.mxu2  ;;  %v4167_v7 = vpop.f32.mrf.mxu1 }
 0x598   : > { %v3991_v32 = vpop.f32.mrf.mxu3  ;;  %v4168_v50 = vadd.f32 %v4167_v7, %v4098_v19  ;;  %v4440_v23 = vpack.c.bf16 %v4388_v43, %v4388_v43  ;;  %v11531_v43 = vld [vmem:[#allocation54_spill] sm:$0xff] }
 0x599   : > { %v4409_v18 = vpack.c.bf16 %v4342_v24, %v4341_v30  ;;  %v3992_v31 = vadd.f32 %v3991_v32, %v3922_v52  ;;  %v8395_v24 = vld [vmem:[#allocation3 + $0x148] sm:$0xff] }
 0x59a   : > { %v4239_v34 = vadd.f32 %v4168_v50, %v11007_v59  ;;  %v5652_v5 = vunpack.c.l.b16 %v4440_v23  ;;  %4960 = vmatpush.bf16.msra.mxu3 %v8356_v55  ;;  %v8355_v52 = vld [vmem:[#allocation3 + $0x8] sm:$0xff]  ;;  %v4347_v23 = vmax.f32 %v4275_v51, 0.0 }
 0x59b   : > { %v4193_v58 = vadd.f32 %v3992_v31, %v11530_v49  ;;  %v4554_v44 = vunpack.c.l.b16 %v4409_v18  ;;  %v4555_v48 = vunpack.c.h.b16 %v4409_v18  ;;  %v8394_v49 = vld [vmem:[#allocation3 + $0x140] sm:$0xff] }
 0x59c   : > { %3964 = vmatmul.bf16.gmra.mxu2 %v11480_v14  ;;  %4033 = vmatmul.bf16.gmra.mxu3 %v11481_v3  ;;  %v11088_v37 = vpack.c.b16 %v5652_v5, %v5649_v54  ;;  %v4319_v59 = vadd.f32 %v10922_v25, %v4239_v34  ;;  %v8396_v14 = vld [vmem:[#allocation3 + $0x150] sm:$0xff] }
 0x59d   : > { %v4273_v12 = vadd.f32 %v11038_v22, %v4193_v58  ;;  %4765 = vmatpush.bf16.msra.mxu2 %v8396_v14  ;;  %v8354_v58 = vld [vmem:[#allocation3] sm:$0xff] }
 0x59e   : > { %v4100_v57 = vpop.f32.mrf.mxu0  ;;  %v4391_v60 = vmax.f32 %v4319_v59, 0.0  ;;  %4961 = vmatpush.bf16.msra.mxu3 %v8355_v52 }
 0x59f   : > { %v4345_v28 = vmax.f32 %v4273_v12, 0.0  ;;  %v3925_v15 = vpop.f32.mrf.mxu2  ;;  %v4169_v29 = vpop.f32.mrf.mxu1 }
 0x5a0   : > { %v3994_v2 = vpop.f32.mrf.mxu3  ;;  %v4170_v16 = vadd.f32 %v4169_v29, %v4100_v57  ;;  %v4442_v39 = vpack.c.bf16 %v4391_v60, %v4391_v60 }
 0x5a1   : > { %v4411_v3 = vpack.c.bf16 %v4345_v28, %v4344_v17  ;;  %v3995_v45 = vadd.f32 %v3994_v2, %v3925_v15  ;;  %4766 = vmatpush.bf16.msra.mxu2 %v8395_v24  ;;  %v8432_v17 = vld [vmem:[#allocation3 + $0x270] sm:$0xff]  ;;  %v11532_v28 = vld [vmem:[#allocation55_spill] sm:$0xff] }
 0x5a2   : > { %v4242_v10 = vadd.f32 %v4170_v16, %v11012_v8  ;;  %v8433_v8 = vld [vmem:[#allocation3 + $0x278] sm:$0xff]  ;;  %v5929_v12 = vunpack.c.l.b16 %v4442_v39  ;;  %4962 = vmatpush.bf16.msra.mxu3 %v8354_v58 }
 0x5a3   : > { %v4557_v20 = vunpack.c.l.b16 %v4411_v3  ;;  %v4558_v36 = vunpack.c.h.b16 %v4411_v3  ;;  %v4196_v19 = vadd.f32 %v3995_v45, %v11531_v43  ;;  %5523 = vmatpush.bf16.msrb.mxu1 %v8433_v8  ;;  %v8409_v2 = vld [vmem:[#allocation3 + $0x1b8] sm:$0xff]  ;;  %v8431_v3 = vld [vmem:[#allocation3 + $0x268] sm:$0xff] }
 0x5a4   : > { %v4322_v30 = vadd.f32 %v10922_v25, %v4242_v10  ;;  %v8417_v16 = vld [vmem:[#allocation3 + $0x1f8] sm:$0xff] }
 0x5a5   : > { %v4276_v7 = vadd.f32 %v11038_v22, %v4196_v19  ;;  %v4566_v32 = vpack.c.b16 %v4557_v20, %v4554_v44  ;;  %v4567_v50 = vpack.c.b16 %v4558_v36, %v4555_v48  ;;  %4767 = vmatpush.bf16.msra.mxu2 %v8394_v49  ;;  %v8408_v48 = vld [vmem:[#allocation3 + $0x1b0] sm:$0xff]  ;;  %v4281_v19 = vadd.f32 %v11035_v35, %v10752_v38 }
 0x5a6   : > { %v4394_v6 = vmax.f32 %v4322_v30, 0.0  ;;  %v4103_v46 = vpop.f32.mrf.mxu0  ;;  %v8416_v20 = vld [vmem:[#allocation3 + $0x1f0] sm:$0xff] }
 0x5a7   : > { %v4348_v18 = vmax.f32 %v4276_v7, 0.0  ;;  %5283 = vmatmul.bf16.vlgmr.msrb.gmra.mxu0 %v11001_v21  ;;  %v3927_v31 = vpop.f32.mrf.mxu2  ;;  %v4172_v34 = vpop.f32.mrf.mxu1  ;;  %v4278_v21 = vadd.f32 %v11035_v35, %v10739_v62  ;;  %5524 = vmatpush.bf16.msrb.mxu1 %v8432_v17  ;;  %v8430_v7 = vld [vmem:[#allocation3 + $0x260] sm:$0xff]  ;;  %v8428_v17 = vld [vmem:[#allocation3 + $0x250] sm:$0xff] }
 0x5a8   : > { %v4444_v54 = vpack.c.bf16 %v4394_v6, %v4394_v6  ;;  %v3996_v5 = vpop.f32.mrf.mxu3  ;;  %v4173_v41 = vadd.f32 %v4172_v34, %v4103_v46 }
 0x5a9   : > { %v4413_v26 = vpack.c.bf16 %v4348_v18, %v4347_v23  ;;  %v3997_v63 = vadd.f32 %v3996_v5, %v3927_v31  ;;  %v4350_v45 = vmax.f32 %v4278_v21, 0.0  ;;  %v8407_v23 = vld [vmem:[#allocation3 + $0x1a8] sm:$0xff]  ;;  %v8429_v5 = vld [vmem:[#allocation3 + $0x258] sm:$0xff] }
 0x5aa   : > { %v5932_v59 = vunpack.c.l.b16 %v4444_v54  ;;  %v4245_v57 = vadd.f32 %v4173_v41, %v11021_v56  ;;  %v8415_v18 = vld [vmem:[#allocation3 + $0x1e8] sm:$0xff]  ;;  %v4353_v41 = vmax.f32 %v4281_v19, 0.0 }
 0x5ab   : > { %v4199_v15 = vadd.f32 %v3997_v63, %v11532_v28  ;;  %5525 = vmatpush.bf16.msrb.mxu1 %v8431_v3  ;;  %v4560_v52 = vunpack.c.l.b16 %v4413_v26  ;;  %v4561_v6 = vunpack.c.h.b16 %v4413_v26  ;;  %v8427_v3 = vld [vmem:[#allocation3 + $0x248] sm:$0xff] }
 0x5ac   : > { %v11103_v29 = vpack.c.b16 %v5932_v59, %v5929_v12  ;;  %4730 = vmatmul.bf16.vlgmr.msrb.gmra.mxu2 %v4566_v32  ;;  %4749 = vmatmul.bf16.vlgmr.msrb.gmra.mxu3 %v4567_v50  ;;  %v4325_v55 = vadd.f32 %v10922_v25, %v4245_v57  ;;  %v11533_v32 = vld [vmem:[#allocation56_spill] sm:$0xff] }
 0x5ad   : > { %v4279_v14 = vadd.f32 %v11038_v22, %v4199_v15  ;;  %5237 = vmatpush.bf16.msrb.mxu2 %v8409_v2  ;;  %5256 = vmatpush.bf16.msrb.mxu3 %v8417_v16  ;;  %v8414_v12 = vld [vmem:[#allocation3 + $0x1e0] sm:$0xff]  ;;  %v4284_v15 = vadd.f32 %v11035_v35, %v10761_v0  ;;  %v11534_v2 = vld [vmem:[#allocation57_spill] sm:$0xff]  ;;  %v8412_v0 = vld [vmem:[#allocation3 + $0x1d0] sm:$0xff] }
 0x5ae   : > { %v4105_v56 = vpop.f32.mrf.mxu0  ;;  %v4397_v30 = vmax.f32 %v4325_v55, 0.0 }
 0x5af   : > { %v4351_v51 = vmax.f32 %v4279_v14, 0.0  ;;  %v3930_v62 = vpop.f32.mrf.mxu2  ;;  %v4174_v44 = vpop.f32.mrf.mxu1  ;;  %5526 = vmatpush.bf16.msrb.mxu1 %v8430_v7  ;;  %v8413_v14 = vld [vmem:[#allocation3 + $0x1d8] sm:$0xff] }
 0x5b0   : > { %v3999_v60 = vpop.f32.mrf.mxu3  ;;  %v4175_v10 = vadd.f32 %v4174_v44, %v4105_v56  ;;  %v4446_v54 = vpack.c.bf16 %v4397_v30, %v4397_v30 }
 0x5b1   : > { %v4000_v36 = vadd.f32 %v3999_v60, %v3930_v62  ;;  %v4415_v43 = vpack.c.bf16 %v4351_v51, %v4350_v45  ;;  %5238 = vmatpush.bf16.msrb.mxu2 %v8408_v48  ;;  %5257 = vmatpush.bf16.msrb.mxu3 %v8416_v20  ;;  %v4356_v45 = vmax.f32 %v4284_v15, 0.0  ;;  %v8404_v60 = vld [vmem:[#allocation3 + $0x190] sm:$0xff]  ;;  %v4287_v20 = vadd.f32 %v11035_v35, %v10774_v61  ;;  %v8457_v61 = vld [vmem:[#allocation3 + $0x338] sm:$0xff] }
 0x5b2   : > { %v4248_v24 = vadd.f32 %v4175_v10, %v11026_v33  ;;  %v5935_v21 = vunpack.c.l.b16 %v4446_v54  ;;  %5809 = vmatpush.bf16.msra.mxu0 %v8457_v61  ;;  %v8410_v54 = vld [vmem:[#allocation3 + $0x1c0] sm:$0xff] }
 0x5b3   : > { %v4202_v50 = vadd.f32 %v4000_v36, %v11533_v32  ;;  %v4563_v39 = vunpack.c.l.b16 %v4415_v43  ;;  %v4564_v46 = vunpack.c.h.b16 %v4415_v43  ;;  %5527 = vmatpush.bf16.msrb.mxu1 %v8429_v5  ;;  %v8426_v43 = vld [vmem:[#allocation3 + $0x240] sm:$0xff]  ;;  %v8403_v32 = vld [vmem:[#allocation3 + $0x188] sm:$0xff] }
 0x5b4   : > { %v4328_v8 = vadd.f32 %v10922_v25, %v4248_v24  ;;  %v8406_v25 = vld [vmem:[#allocation3 + $0x1a0] sm:$0xff] }
 0x5b5   : > { %v4282_v31 = vadd.f32 %v11038_v22, %v4202_v50  ;;  %v4569_v34 = vpack.c.b16 %v4563_v39, %v4560_v52  ;;  %v4570_v38 = vpack.c.b16 %v4564_v46, %v4561_v6  ;;  %5239 = vmatpush.bf16.msrb.mxu2 %v8407_v23  ;;  %5258 = vmatpush.bf16.msrb.mxu3 %v8415_v18  ;;  %v11535_v52 = vld [vmem:[#allocation58_spill] sm:$0xff]  ;;  %v8411_v50 = vld [vmem:[#allocation3 + $0x1c8] sm:$0xff]  ;;  %v4359_v23 = vmax.f32 %v4287_v20, 0.0 }
 0x5b6   : > { %v4400_v33 = vmax.f32 %v4328_v8, 0.0  ;;  %v8465_v8 = vld [vmem:[#allocation3 + $0x378] sm:$0xff] }
 0x5b7   : > { %v4354_v49 = vmax.f32 %v4282_v31, 0.0  ;;  %5288 = vmatmul.bf16.gmra.mxu0 %v11017_v27  ;;  %v3932_v58 = vpop.f32.mrf.mxu2  ;;  %v8405_v27 = vld [vmem:[#allocation3 + $0x198] sm:$0xff]  ;;  %5528 = vmatpush.bf16.msrb.mxu1 %v8428_v17  ;;  %v8463_v17 = vld [vmem:[#allocation3 + $0x368] sm:$0xff] }
 0x5b8   : > { %v4448_v26 = vpack.c.bf16 %v4400_v33, %v4400_v33  ;;  %v4001_v63 = vpop.f32.mrf.mxu3 }
 0x5b9   : > { %v4417_v59 = vpack.c.bf16 %v4354_v49, %v4353_v41  ;;  %v4002_v57 = vadd.f32 %v4001_v63, %v3932_v58  ;;  %5240 = vmatpush.bf16.msrb.mxu2 %v8406_v25  ;;  %5259 = vmatpush.bf16.msrb.mxu3 %v8414_v12  ;;  %v8456_v41 = vld [vmem:[#allocation3 + $0x330] sm:$0xff]  ;;  %v4290_v58 = vadd.f32 %v11035_v35, %v10789_v40  ;;  %v8441_v25 = vld [vmem:[#allocation3 + $0x2b8] sm:$0xff] }
 0x5ba   : > { %v5938_v28 = vunpack.c.l.b16 %v4448_v26  ;;  %v8464_v49 = vld [vmem:[#allocation3 + $0x370] sm:$0xff]  ;;  %v11536_v26 = vld [vmem:[#allocation59_spill] sm:$0xff]  ;;  %5810 = vmatpush.bf16.msra.mxu0 %v8456_v41 }
 0x5bb   : > { %v4205_v16 = vadd.f32 %v4002_v57, %v11534_v2  ;;  %5529 = vmatpush.bf16.msrb.mxu1 %v8427_v3  ;;  %v5069_v36 = vunpack.c.l.b16 %v4417_v59  ;;  %v5070_v19 = vunpack.c.h.b16 %v4417_v59  ;;  %v8449_v12 = vld [vmem:[#allocation3 + $0x2f8] sm:$0xff]  ;;  %v8455_v57 = vld [vmem:[#allocation3 + $0x328] sm:$0xff]  ;;  %v8440_v2 = vld [vmem:[#allocation3 + $0x2b0] sm:$0xff] }
 0x5bc   : > { %4735 = vmatmul.bf16.gmra.mxu2 %v4569_v34  ;;  %4754 = vmatmul.bf16.gmra.mxu3 %v4570_v38  ;;  %v11117_v55 = vpack.c.b16 %v5938_v28, %v5935_v21  ;;  %v8402_v38 = vld [vmem:[#allocation3 + $0x180] sm:$0xff]  ;;  %v4362_v21 = vmax.f32 %v4290_v58, 0.0  ;;  %v8459_v58 = vld [vmem:[#allocation3 + $0x348] sm:$0xff] }
 0x5bd   : > { %v4285_v56 = vadd.f32 %v11038_v22, %v4205_v16  ;;  %5241 = vmatpush.bf16.msrb.mxu2 %v8405_v27  ;;  %5260 = vmatpush.bf16.msrb.mxu3 %v8413_v14  ;;  %v8448_v16 = vld [vmem:[#allocation3 + $0x2f0] sm:$0xff]  ;;  %v8462_v3 = vld [vmem:[#allocation3 + $0x360] sm:$0xff] }
 0x5be   : > { %5811 = vmatpush.bf16.msra.mxu0 %v8455_v57  ;;  %v8444_v57 = vld [vmem:[#allocation3 + $0x2d0] sm:$0xff] }
 0x5bf   : > { %v4357_v51 = vmax.f32 %v4285_v56, 0.0  ;;  %v3935_v62 = vpop.f32.mrf.mxu2  ;;  %5530 = vmatpush.bf16.msrb.mxu1 %v8426_v43  ;;  %v8454_v56 = vld [vmem:[#allocation3 + $0x320] sm:$0xff] }
 0x5c0   : > { %v4004_v44 = vpop.f32.mrf.mxu3 }
 0x5c1   : > { %v4419_v10 = vpack.c.bf16 %v4357_v51, %v4356_v45  ;;  %v4005_v48 = vadd.f32 %v4004_v44, %v3935_v62  ;;  %5242 = vmatpush.bf16.msrb.mxu2 %v8404_v60  ;;  %5261 = vmatpush.bf16.msrb.mxu3 %v8412_v0  ;;  %v11538_v51 = vld [vmem:[#allocation60_spill] sm:$0xff] }
 0x5c2   : > { %5812 = vmatpush.bf16.msra.mxu0 %v8454_v56  ;;  %v8443_v56 = vld [vmem:[#allocation3 + $0x2c8] sm:$0xff] }
 0x5c3   : > { %v5072_v30 = vunpack.c.l.b16 %v4419_v10  ;;  %v5073_v24 = vunpack.c.h.b16 %v4419_v10  ;;  %v4208_v7 = vadd.f32 %v4005_v48, %v11535_v52  ;;  %5828 = vmatpush.bf16.msra.mxu1 %v8465_v8  ;;  %v8439_v10 = vld [vmem:[#allocation3 + $0x2a8] sm:$0xff] }
 0x5c4   : > { %v8447_v48 = vld [vmem:[#allocation3 + $0x2e8] sm:$0xff] }
 0x5c5   : > { %v4288_v39 = vadd.f32 %v11038_v22, %v4208_v7  ;;  %v11124_v6 = vpack.c.b16 %v5072_v30, %v5069_v36  ;;  %v11126_v46 = vpack.c.b16 %v5073_v24, %v5070_v19  ;;  %5243 = vmatpush.bf16.msrb.mxu2 %v8403_v32  ;;  %5262 = vmatpush.bf16.msrb.mxu3 %v8411_v50  ;;  %v8453_v19 = vld [vmem:[#allocation3 + $0x318] sm:$0xff]  ;;  %v8438_v50 = vld [vmem:[#allocation3 + $0x2a0] sm:$0xff] }
 0x5c6   : > { %v8461_v30 = vld [vmem:[#allocation3 + $0x358] sm:$0xff]  ;;  %5813 = vmatpush.bf16.msra.mxu0 %v8453_v19  ;;  %v8442_v19 = vld [vmem:[#allocation3 + $0x2c0] sm:$0xff] }
 0x5c7   : > { %v4360_v18 = vmax.f32 %v4288_v39, 0.0  ;;  %v3937_v31 = vpop.f32.mrf.mxu2  ;;  %5829 = vmatpush.bf16.msra.mxu1 %v8464_v49  ;;  %v8446_v39 = vld [vmem:[#allocation3 + $0x2e0] sm:$0xff]  ;;  %v8451_v49 = vld [vmem:[#allocation3 + $0x308] sm:$0xff] }
 0x5c8   : > { %v4006_v34 = vpop.f32.mrf.mxu3 }
 0x5c9   : > { %v4421_v33 = vpack.c.bf16 %v4360_v18, %v4359_v23  ;;  %v4007_v5 = vadd.f32 %v4006_v34, %v3937_v31  ;;  %5244 = vmatpush.bf16.msrb.mxu2 %v8402_v38  ;;  %5263 = vmatpush.bf16.msrb.mxu3 %v8410_v54  ;;  %v8452_v23 = vld [vmem:[#allocation3 + $0x310] sm:$0xff]  ;;  %v11539_v31 = vld [vmem:[#allocation12_spill] sm:$0xff]  ;;  %v11540_v38 = vld [vmem:[#allocation61_spill] sm:$0xff] }
 0x5ca   : > { %v8460_v18 = vld [vmem:[#allocation3 + $0x350] sm:$0xff]  ;;  %v4296_v34 = vadd.f32 %v11035_v35, %v11539_v31  ;;  %5814 = vmatpush.bf16.msra.mxu0 %v8452_v23  ;;  %v8481_v23 = vld [vmem:[#allocation3 + $0x3f8] sm:$0xff]  ;;  %v8487_v31 = vld [vmem:[#allocation3 + $0x428] sm:$0xff] }
 0x5cb   : > { %v4211_v63 = vadd.f32 %v4007_v5, %v11536_v26  ;;  %5830 = vmatpush.bf16.msra.mxu1 %v8463_v17  ;;  %v5075_v45 = vunpack.c.l.b16 %v4421_v33  ;;  %v5076_v60 = vunpack.c.h.b16 %v4421_v33  ;;  %v8437_v33 = vld [vmem:[#allocation3 + $0x298] sm:$0xff] }
 0x5cc   : > { %4768 = vmatmul.bf16.vlgmr.msra.gmra.mxu2 %v10971_v42  ;;  %4963 = vmatmul.bf16.vlgmr.msra.gmra.mxu3 %v11062_v11  ;;  %v11537_v11 = vld [vmem:[#allocation21_spill] sm:$0xff]  ;;  %v8445_v5 = vld [vmem:[#allocation3 + $0x2d8] sm:$0xff]  ;;  %v4368_v26 = vmax.f32 %v4296_v34, 0.0 }
 0x5cd   : > { %v4291_v59 = vadd.f32 %v11038_v22, %v4211_v63  ;;  %5542 = vmatpush.bf16.msra.mxu2 %v8441_v25  ;;  %5561 = vmatpush.bf16.msra.mxu3 %v8449_v12  ;;  %v4293_v14 = vadd.f32 %v11035_v35, %v11537_v11  ;;  %v8495_v34 = vld [vmem:[#allocation3 + $0x468] sm:$0xff] }
 0x5ce   : > { %5815 = vmatpush.bf16.msra.mxu0 %v8451_v49  ;;  %v8480_v49 = vld [vmem:[#allocation3 + $0x3f0] sm:$0xff] }
 0x5cf   : > { %v4363_v28 = vmax.f32 %v4291_v59, 0.0  ;;  %v3940_v15 = vpop.f32.mrf.mxu2  ;;  %5831 = vmatpush.bf16.msra.mxu1 %v8462_v3  ;;  %v4365_v24 = vmax.f32 %v4293_v14, 0.0  ;;  %v8436_v59 = vld [vmem:[#allocation3 + $0x290] sm:$0xff]  ;;  %v8435_v14 = vld [vmem:[#allocation3 + $0x288] sm:$0xff] }
 0x5d0   : > { %v4009_v40 = vpop.f32.mrf.mxu3 }
 0x5d1   : > { %v4010_v27 = vadd.f32 %v4009_v40, %v3940_v15  ;;  %v4423_v42 = vpack.c.bf16 %v4363_v28, %v4362_v21  ;;  %5543 = vmatpush.bf16.msra.mxu2 %v8440_v2  ;;  %5562 = vmatpush.bf16.msra.mxu3 %v8448_v16  ;;  %v8450_v15 = vld [vmem:[#allocation3 + $0x300] sm:$0xff] }
 0x5d2   : > { %v8458_v40 = vld [vmem:[#allocation3 + $0x340] sm:$0xff]  ;;  %5816 = vmatpush.bf16.msra.mxu0 %v8450_v15 }
 0x5d3   : > { %v4214_v62 = vadd.f32 %v4010_v27, %v11538_v51  ;;  %v5078_v44 = vunpack.c.l.b16 %v4423_v42  ;;  %v5079_v0 = vunpack.c.h.b16 %v4423_v42  ;;  %5832 = vmatpush.bf16.msra.mxu1 %v8461_v30  ;;  %v11542_v42 = vld [vmem:[#allocation62_spill] sm:$0xff] }
 0x5d5   : > { %v4294_v20 = vadd.f32 %v11038_v22, %v4214_v62  ;;  %v11138_v36 = vpack.c.b16 %v5078_v44, %v5075_v45  ;;  %v11140_v43 = vpack.c.b16 %v5079_v0, %v5076_v60  ;;  %5544 = vmatpush.bf16.msra.mxu2 %v8439_v10  ;;  %5563 = vmatpush.bf16.msra.mxu3 %v8447_v48  ;;  %v8489_v62 = vld [vmem:[#allocation3 + $0x438] sm:$0xff] }
 0x5d6   : > { %v8497_v44 = vld [vmem:[#allocation3 + $0x478] sm:$0xff]  ;;  %6114 = vmatpush.bf16.msrb.mxu0 %v8489_v62 }
 0x5d7   : > { %v4366_v52 = vmax.f32 %v4294_v20, 0.0  ;;  %v3942_v7 = vpop.f32.mrf.mxu2  ;;  %5833 = vmatpush.bf16.msra.mxu1 %v8460_v18  ;;  %v8434_v20 = vld [vmem:[#allocation3 + $0x280] sm:$0xff] }
 0x5d8   : > { %v4011_v32 = vpop.f32.mrf.mxu3 }
 0x5d9   : > { %v4425_v61 = vpack.c.bf16 %v4366_v52, %v4365_v24  ;;  %v4012_v8 = vadd.f32 %v4011_v32, %v3942_v7  ;;  %5545 = vmatpush.bf16.msra.mxu2 %v8438_v50  ;;  %5564 = vmatpush.bf16.msra.mxu3 %v8446_v39  ;;  %v8488_v52 = vld [vmem:[#allocation3 + $0x430] sm:$0xff]  ;;  %v11544_v39 = vld [vmem:[#allocation63_spill] sm:$0xff] }
 0x5da   : > { %v8496_v7 = vld [vmem:[#allocation3 + $0x470] sm:$0xff]  ;;  %6115 = vmatpush.bf16.msrb.mxu0 %v8488_v52  ;;  %v8483_v52 = vld [vmem:[#allocation3 + $0x408] sm:$0xff] }
 0x5db   : > { %v4217_v54 = vadd.f32 %v4012_v8, %v11540_v38  ;;  %5834 = vmatpush.bf16.msra.mxu1 %v8459_v58  ;;  %v5355_v28 = vunpack.c.l.b16 %v4425_v61  ;;  %v5356_v2 = vunpack.c.h.b16 %v4425_v61  ;;  %v11543_v32 = vld [vmem:[#allocation30_spill] sm:$0xff]  ;;  %v8473_v8 = vld [vmem:[#allocation3 + $0x3b8] sm:$0xff] }
 0x5dc   : > { %4773 = vmatmul.bf16.gmra.mxu2 %v10988_v53  ;;  %4968 = vmatmul.bf16.gmra.mxu3 %v11080_v47  ;;  %v11541_v47 = vld [vmem:[#allocation13_spill] sm:$0xff]  ;;  %v4302_v50 = vadd.f32 %v11035_v35, %v11543_v32 }
 0x5dd   : > { %v4297_v41 = vadd.f32 %v11038_v22, %v4217_v54  ;;  %5546 = vmatpush.bf16.msra.mxu2 %v8437_v33  ;;  %5565 = vmatpush.bf16.msra.mxu3 %v8445_v5  ;;  %v4299_v21 = vadd.f32 %v11035_v35, %v11541_v47 }
 0x5de   : > { %v4374_v38 = vmax.f32 %v4302_v50, 0.0  ;;  %6116 = vmatpush.bf16.msrb.mxu0 %v8487_v31 }
 0x5df   : > { %v4369_v63 = vmax.f32 %v4297_v41, 0.0  ;;  %v3945_v25 = vpop.f32.mrf.mxu2  ;;  %5835 = vmatpush.bf16.msra.mxu1 %v8458_v40  ;;  %v4371_v60 = vmax.f32 %v4299_v21, 0.0  ;;  %v8472_v41 = vld [vmem:[#allocation3 + $0x3b0] sm:$0xff]  ;;  %v8471_v21 = vld [vmem:[#allocation3 + $0x3a8] sm:$0xff] }
 0x5e0   : > { %v4014_v12 = vpop.f32.mrf.mxu3 }
 0x5e1   : > { %v4427_v17 = vpack.c.bf16 %v4369_v63, %v4368_v26  ;;  %v4015_v53 = vadd.f32 %v4014_v12, %v3945_v25  ;;  %5547 = vmatpush.bf16.msra.mxu2 %v8436_v59  ;;  %5566 = vmatpush.bf16.msra.mxu3 %v8444_v57  ;;  %v8486_v25 = vld [vmem:[#allocation3 + $0x420] sm:$0xff] }
 0x5e2   : > { %v8494_v12 = vld [vmem:[#allocation3 + $0x460] sm:$0xff]  ;;  %6117 = vmatpush.bf16.msrb.mxu0 %v8486_v25 }
 0x5e3   : > { %v5358_v16 = vunpack.c.l.b16 %v4427_v17  ;;  %v5359_v27 = vunpack.c.h.b16 %v4427_v17  ;;  %v4220_v11 = vadd.f32 %v4015_v53, %v11542_v42  ;;  %v11546_v59 = vld [vmem:[#allocation64_spill] sm:$0xff] }
 0x5e5   : > { %v4300_v3 = vadd.f32 %v11038_v22, %v4220_v11  ;;  %v5367_v45 = vpack.c.b16 %v5358_v16, %v5355_v28  ;;  %v11152_v51 = vpack.c.b16 %v5359_v27, %v5356_v2  ;;  %5548 = vmatpush.bf16.msra.mxu2 %v8435_v14  ;;  %5567 = vmatpush.bf16.msra.mxu3 %v8443_v56  ;;  %v8479_v28 = vld [vmem:[#allocation3 + $0x3e8] sm:$0xff]  ;;  %v8485_v16 = vld [vmem:[#allocation3 + $0x418] sm:$0xff] }
 0x5e6   : > { %v8493_v27 = vld [vmem:[#allocation3 + $0x458] sm:$0xff]  ;;  %6118 = vmatpush.bf16.msrb.mxu0 %v8485_v16 }
 0x5e7   : > { %v4372_v0 = vmax.f32 %v4300_v3, 0.0  ;;  %5531 = vmatmul.bf16.vlgmr.msrb.gmra.mxu1 %v5367_v45  ;;  %v3947_v10 = vpop.f32.mrf.mxu2  ;;  %v8470_v3 = vld [vmem:[#allocation3 + $0x3a0] sm:$0xff] }
 0x5e8   : > { %v4016_v48 = vpop.f32.mrf.mxu3  ;;  %6133 = vmatpush.bf16.msrb.mxu1 %v8497_v44  ;;  %v8478_v45 = vld [vmem:[#allocation3 + $0x3e0] sm:$0xff] }
 0x5e9   : > { %v4429_v30 = vpack.c.bf16 %v4372_v0, %v4371_v60  ;;  %v4017_v24 = vadd.f32 %v4016_v48, %v3947_v10  ;;  %5549 = vmatpush.bf16.msra.mxu2 %v8434_v20  ;;  %5568 = vmatpush.bf16.msra.mxu3 %v8442_v19  ;;  %v8484_v60 = vld [vmem:[#allocation3 + $0x410] sm:$0xff]  ;;  %v4308_v10 = vadd.f32 %v11035_v35, %v10861_v9  ;;  %v11547_v48 = vld [vmem:[#allocation65_spill] sm:$0xff]  ;;  %v8469_v19 = vld [vmem:[#allocation3 + $0x398] sm:$0xff] }
 0x5ea   : > { %v8492_v0 = vld [vmem:[#allocation3 + $0x450] sm:$0xff]  ;;  %6119 = vmatpush.bf16.msrb.mxu0 %v8484_v60  ;;  %v11552_v60 = vld [vmem:[#allocation16_spill] sm:$0xff] }
 0x5eb   : > { %v4223_v61 = vadd.f32 %v4017_v24, %v11544_v39  ;;  %v5361_v63 = vunpack.c.l.b16 %v4429_v30  ;;  %v5362_v53 = vunpack.c.h.b16 %v4429_v30  ;;  %v8477_v30 = vld [vmem:[#allocation3 + $0x3d8] sm:$0xff]  ;;  %v4380_v32 = vmax.f32 %v4308_v10, 0.0 }
 0x5ec   : > { %5245 = vmatmul.bf16.vlgmr.msrb.gmra.mxu2 %v11124_v6  ;;  %5264 = vmatmul.bf16.vlgmr.msrb.gmra.mxu3 %v11126_v46  ;;  %v11545_v46 = vld [vmem:[#allocation23_spill] sm:$0xff] }
 0x5ed   : > { %v4303_v18 = vadd.f32 %v11038_v22, %v4223_v61  ;;  %6134 = vmatpush.bf16.msrb.mxu1 %v8496_v7  ;;  %5847 = vmatpush.bf16.msrb.mxu2 %v8473_v8  ;;  %v4305_v26 = vadd.f32 %v11035_v35, %v11545_v46  ;;  %v8491_v7 = vld [vmem:[#allocation3 + $0x448] sm:$0xff]  ;;  %v8468_v61 = vld [vmem:[#allocation3 + $0x390] sm:$0xff] }
 0x5ee   : > { %6095 = vmatpush.bf16.msrb.mxu3 %v8481_v23  ;;  %v8476_v8 = vld [vmem:[#allocation3 + $0x3d0] sm:$0xff]  ;;  %6120 = vmatpush.bf16.msrb.mxu0 %v8483_v52 }
 0x5ef   : > { %v4375_v54 = vmax.f32 %v4303_v18, 0.0  ;;  %v3950_v33 = vpop.f32.mrf.mxu2  ;;  %v4377_v42 = vmax.f32 %v4305_v26, 0.0 }
 0x5f0   : > { %v4019_v5 = vpop.f32.mrf.mxu3 }
 0x5f1   : > { %v4020_v58 = vadd.f32 %v4019_v5, %v3950_v33  ;;  %v4431_v6 = vpack.c.bf16 %v4375_v54, %v4374_v38  ;;  %6135 = vmatpush.bf16.msrb.mxu1 %v8495_v34  ;;  %5848 = vmatpush.bf16.msrb.mxu2 %v8472_v41  ;;  %v8482_v34 = vld [vmem:[#allocation3 + $0x400] sm:$0xff]  ;;  %v11549_v41 = vld [vmem:[#allocation66_spill] sm:$0xff] }
 0x5f2   : > { %6096 = vmatpush.bf16.msrb.mxu3 %v8480_v49  ;;  %v8490_v38 = vld [vmem:[#allocation3 + $0x440] sm:$0xff]  ;;  %6121 = vmatpush.bf16.msrb.mxu0 %v8482_v34 }
 0x5f3   : > { %v4226_v57 = vadd.f32 %v4020_v58, %v11546_v59  ;;  %v5364_v17 = vunpack.c.l.b16 %v4431_v6  ;;  %v5365_v47 = vunpack.c.h.b16 %v4431_v6  ;;  %v8467_v58 = vld [vmem:[#allocation3 + $0x388] sm:$0xff] }
 0x5f4   : > { %v8475_v6 = vld [vmem:[#allocation3 + $0x3c8] sm:$0xff] }
 0x5f5   : > { %v4306_v15 = vadd.f32 %v11038_v22, %v4226_v57  ;;  %v5370_v40 = vpack.c.b16 %v5364_v17, %v5361_v63  ;;  %6136 = vmatpush.bf16.msrb.mxu1 %v8494_v12  ;;  %v11164_v2 = vpack.c.b16 %v5365_v47, %v5362_v53  ;;  %5849 = vmatpush.bf16.msrb.mxu2 %v8471_v21  ;;  %v8466_v17 = vld [vmem:[#allocation3 + $0x380] sm:$0xff] }
 0x5f6   : > { %6097 = vmatpush.bf16.msrb.mxu3 %v8479_v28  ;;  %v8474_v53 = vld [vmem:[#allocation3 + $0x3c0] sm:$0xff]  ;;  %v11550_v28 = vld [vmem:[#allocation15_spill] sm:$0xff] }
 0x5f7   : > { %v4378_v11 = vmax.f32 %v4306_v15, 0.0  ;;  %5536 = vmatmul.bf16.gmra.mxu1 %v5370_v40  ;;  %v3952_v14 = vpop.f32.mrf.mxu2  ;;  %v4314_v15 = vadd.f32 %v11035_v35, %v11550_v28  ;;  %v11551_v40 = vld [vmem:[#allocation67_spill] sm:$0xff]  ;;  %v11558_v28 = vld [vmem:[#allocation9_spill] sm:$0xff] }
 0x5f8   : > { %v4021_v56 = vpop.f32.mrf.mxu3 }
 0x5f9   : > { %v4433_v62 = vpack.c.bf16 %v4378_v11, %v4377_v42  ;;  %v4022_v44 = vadd.f32 %v4021_v56, %v3952_v14  ;;  %6137 = vmatpush.bf16.msrb.mxu1 %v8493_v27  ;;  %5850 = vmatpush.bf16.msrb.mxu2 %v8470_v3  ;;  %v4386_v42 = vmax.f32 %v4314_v15, 0.0  ;;  %v6174_v56 = vld [vmem:[%s11343_s8] sm:$0xf]  ;;  %v4326_v15 = vadd.f32 %v11035_v35, %v11558_v28 }
 0x5fa   : > { %6098 = vmatpush.bf16.msrb.mxu3 %v8478_v45  ;;  %v6197_v45 = vsel %vm942_vm0, %v6174_v56, 0 }
 0x5fb   : > { %v4229_v20 = vadd.f32 %v4022_v44, %v11547_v48  ;;  %v5641_v31 = vunpack.c.l.b16 %v4433_v62  ;;  %v5642_v54 = vunpack.c.h.b16 %v4433_v62 }
 0x5fc   : > { %5250 = vmatmul.bf16.gmra.mxu2 %v11138_v36  ;;  %5269 = vmatmul.bf16.gmra.mxu3 %v11140_v43  ;;  %v11548_v43 = vld [vmem:[#allocation27_spill] sm:$0xff] }
 0x5fd   : > { %v4309_v24 = vadd.f32 %v11038_v22, %v4229_v20  ;;  %6138 = vmatpush.bf16.msrb.mxu1 %v8492_v0  ;;  %5851 = vmatpush.bf16.msrb.mxu2 %v8469_v19  ;;  %v4311_v18 = vadd.f32 %v11035_v35, %v11548_v43 }
 0x5fe   : > { %6099 = vmatpush.bf16.msrb.mxu3 %v8477_v30 }
 0x5ff   : > { %v4381_v50 = vmax.f32 %v4309_v24, 0.0  ;;  %v3955_v39 = vpop.f32.mrf.mxu2  ;;  %v4383_v25 = vmax.f32 %v4311_v18, 0.0 }
 0x600   : > { %v4024_v9 = vpop.f32.mrf.mxu3 }
 0x601   : > { %v4435_v23 = vpack.c.bf16 %v4381_v50, %v4380_v32  ;;  %v4025_v36 = vadd.f32 %v4024_v9, %v3955_v39  ;;  %6139 = vmatpush.bf16.msrb.mxu1 %v8491_v7  ;;  %5852 = vmatpush.bf16.msrb.mxu2 %v8468_v61 }
 0x602   : > { %6100 = vmatpush.bf16.msrb.mxu3 %v8476_v8  ;;  %v11554_v8 = vld [vmem:[#allocation29_spill] sm:$0xff] }
 0x603   : > { %v5644_v33 = vunpack.c.l.b16 %v4435_v23  ;;  %v5645_v5 = vunpack.c.h.b16 %v4435_v23  ;;  %v4232_v49 = vadd.f32 %v4025_v36, %v11549_v41  ;;  %v4320_v23 = vadd.f32 %v11035_v35, %v11554_v8  ;;  %v11555_v36 = vld [vmem:[#allocation69_spill] sm:$0xff] }
 0x604   : > { %v11556_v41 = vld [vmem:[#allocation25_spill] sm:$0xff] }
 0x605   : > { %v4312_v46 = vadd.f32 %v11038_v22, %v4232_v49  ;;  %v5653_v26 = vpack.c.b16 %v5644_v33, %v5641_v31  ;;  %v5654_v63 = vpack.c.b16 %v5645_v5, %v5642_v54  ;;  %6140 = vmatpush.bf16.msrb.mxu1 %v8490_v38  ;;  %5853 = vmatpush.bf16.msrb.mxu2 %v8467_v58  ;;  %v4392_v31 = vmax.f32 %v4320_v23, 0.0 }
 0x606   : > { %6101 = vmatpush.bf16.msrb.mxu3 %v8475_v6  ;;  %v4323_v49 = vadd.f32 %v11035_v35, %v11556_v41 }
 0x607   : > { %v4384_v12 = vmax.f32 %v4312_v46, 0.0  ;;  %5817 = vmatmul.bf16.vlgmr.msra.gmra.mxu0 %v5653_v26  ;;  %5836 = vmatmul.bf16.vlgmr.msra.gmra.mxu1 %v5654_v63  ;;  %v3957_v59 = vpop.f32.mrf.mxu2  ;;  %v11557_v63 = vld [vmem:[#allocation70_spill] sm:$0xff] }
 0x608   : > { %v4026_v57 = vpop.f32.mrf.mxu3 }
 0x609   : > { %v4437_v47 = vpack.c.bf16 %v4384_v12, %v4383_v25  ;;  %v4027_v21 = vadd.f32 %v4026_v57, %v3957_v59  ;;  %5854 = vmatpush.bf16.msrb.mxu2 %v8466_v17  ;;  %v4395_v59 = vmax.f32 %v4323_v49, 0.0 }
 0x60a   : > { %6102 = vmatpush.bf16.msrb.mxu3 %v8474_v53 }
 0x60b   : > { %v4235_v16 = vadd.f32 %v4027_v21, %v11551_v40  ;;  %v5647_v0 = vunpack.c.l.b16 %v4437_v47  ;;  %v5648_v20 = vunpack.c.h.b16 %v4437_v47  ;;  %v11559_v40 = vld [vmem:[#allocation71_spill] sm:$0xff] }
 0x60c   : > { %5550 = vmatmul.bf16.vlgmr.msra.gmra.mxu2 %v11152_v51  ;;  %5569 = vmatmul.bf16.vlgmr.msra.gmra.mxu3 %v11029_v13  ;;  %v4317_v51 = vadd.f32 %v11035_v35, %v11552_v60  ;;  %v11553_v13 = vld [vmem:[#allocation68_spill] sm:$0xff] }
 0x60d   : > { %v4315_v27 = vadd.f32 %v11038_v22, %v4235_v16  ;;  %6206 = vmatpush.bf16.msra.mxu2 %v6197_v45 }
 0x60e   : > { %v4389_v7 = vmax.f32 %v4317_v51, 0.0 }
 0x60f   : > { %v4387_v11 = vmax.f32 %v4315_v27, 0.0  ;;  %v3960_v14 = vpop.f32.mrf.mxu2 }
 0x610   : > { %v4029_v3 = vpop.f32.mrf.mxu3 }
 0x611   : > { %v4030_v62 = vadd.f32 %v4029_v3, %v3960_v14  ;;  %v4439_v44 = vpack.c.bf16 %v4387_v11, %v4386_v42  ;;  %v4398_v42 = vmax.f32 %v4326_v15, 0.0 }
 0x613   : > { %v4238_v10 = vadd.f32 %v4030_v62, %v11553_v13  ;;  %v5650_v48 = vunpack.c.l.b16 %v4439_v44  ;;  %v5651_v19 = vunpack.c.h.b16 %v4439_v44 }
 0x615   : > { %v4318_v30 = vadd.f32 %v11038_v22, %v4238_v10  ;;  %v5656_v24 = vpack.c.b16 %v5650_v48, %v5647_v0  ;;  %v5657_v52 = vpack.c.b16 %v5651_v19, %v5648_v20  ;;  %v4983_v0 = vpop.f32.mrf.mxu0  ;;  %v5002_v10 = vpop.f32.mrf.mxu1 }
 0x617   : > { %v4390_v32 = vmax.f32 %v4318_v30, 0.0  ;;  %5822 = vmatmul.bf16.gmra.mxu0 %v5656_v24  ;;  %5841 = vmatmul.bf16.gmra.mxu1 %v5657_v52  ;;  %v3962_v50 = vpop.f32.mrf.mxu2 }
 0x618   : > { %v4031_v39 = vpop.f32.mrf.mxu3 }
 0x619   : > { %v4441_v9 = vpack.c.bf16 %v4390_v32, %v4389_v7  ;;  %v4032_v61 = vadd.f32 %v4031_v39, %v3962_v50 }
 0x61b   : > { %v4241_v43 = vadd.f32 %v4032_v61, %v11555_v36  ;;  %v5927_v58 = vunpack.c.l.b16 %v4441_v9  ;;  %v5928_v6 = vunpack.c.h.b16 %v4441_v9 }
 0x61c   : > { %5555 = vmatmul.bf16.gmra.mxu2 %v11164_v2  ;;  %5574 = vmatmul.bf16.gmra.mxu3 %v11052_v1 }
 0x61d   : > { %v4321_v18 = vadd.f32 %v11038_v22, %v4241_v43  ;;  %v11212_v20 = vpop.f32.mrf.mxu0  ;;  %v11218_v24 = vpop.f32.mrf.mxu1 }
 0x61f   : > { %v4393_v34 = vmax.f32 %v4321_v18, 0.0  ;;  %v3965_v38 = vpop.f32.mrf.mxu2 }
 0x620   : > { %v4034_v54 = vpop.f32.mrf.mxu3 }
 0x621   : > { %v4443_v33 = vpack.c.bf16 %v4393_v34, %v4392_v31  ;;  %v4035_v5 = vadd.f32 %v4034_v54, %v3965_v38  ;;  %v8499_v31 = vld [vmem:[%s728_s20 + $0x8] sm:$0xff] }
 0x623   : > { %v5930_v46 = vunpack.c.l.b16 %v4443_v33  ;;  %v5931_v26 = vunpack.c.h.b16 %v4443_v33  ;;  %v4244_v25 = vadd.f32 %v4035_v5, %v11557_v63 }
 0x625   : > { %v4324_v2 = vadd.f32 %v11038_v22, %v4244_v25  ;;  %v5940_v1 = vpack.c.b16 %v5931_v26, %v5928_v6  ;;  %v5939_v12 = vpack.c.b16 %v5930_v46, %v5927_v58  ;;  %v4988_v32 = vpop.f32.mrf.mxu0  ;;  %v5007_v61 = vpop.f32.mrf.mxu1 }
 0x627   : > { %v4396_v57 = vmax.f32 %v4324_v2, 0.0  ;;  %6122 = vmatmul.bf16.vlgmr.msrb.gmra.mxu0 %v5940_v1  ;;  %6141 = vmatmul.bf16.vlgmr.msrb.gmra.mxu1 %v11103_v29  ;;  %v3967_v17 = vpop.f32.mrf.mxu2 }
 0x628   : > { %v4036_v53 = vpop.f32.mrf.mxu3 }
 0x629   : > { %v4445_v47 = vpack.c.bf16 %v4396_v57, %v4395_v59  ;;  %v4037_v21 = vadd.f32 %v4036_v53, %v3967_v17 }
 0x62b   : > { %v4247_v16 = vadd.f32 %v4037_v21, %v11559_v40  ;;  %v5934_v45 = vunpack.c.h.b16 %v4445_v47  ;;  %v5933_v44 = vunpack.c.l.b16 %v4445_v47 }
 0x62c   : > { %5855 = vmatmul.bf16.vlgmr.msrb.gmra.mxu2 %v11068_v4  ;;  %6103 = vmatmul.bf16.vlgmr.msrb.gmra.mxu3 %v5939_v12 }
 0x62d   : > { %v4327_v27 = vadd.f32 %v11038_v22, %v4247_v16  ;;  %v4990_v23 = vpop.f32.mrf.mxu0  ;;  %v5009_v38 = vpop.f32.mrf.mxu1 }
 0x62f   : > { %v4399_v11 = vmax.f32 %v4327_v27, 0.0  ;;  %v4731_v14 = vpop.f32.mrf.mxu2 }
 0x630   : > { %v4750_v56 = vpop.f32.mrf.mxu3 }
 0x631   : > { %v4751_v29 = vadd.f32 %v4750_v56, %v4731_v14  ;;  %v4447_v3 = vpack.c.bf16 %v4399_v11, %v4398_v42 }
 0x633   : > { %v5937_v62 = vunpack.c.h.b16 %v4447_v3  ;;  %v5936_v60 = vunpack.c.l.b16 %v4447_v3 }
 0x635   : > { %v5943_v51 = vpack.c.b16 %v5937_v62, %v5934_v45  ;;  %v5942_v35 = vpack.c.b16 %v5936_v60, %v5933_v44  ;;  %v5284_v54 = vpop.f32.mrf.mxu0 }
 0x637   : > { %6127 = vmatmul.bf16.gmra.mxu0 %v5943_v51  ;;  %6146 = vmatmul.bf16.gmra.mxu1 %v11117_v55  ;;  %v4733_v4 = vpop.f32.mrf.mxu2  ;;  %v8507_v51 = vld [vmem:[%s11345_s10 + $0x38] sm:$0xff] }
 0x638   : > { %v4752_v22 = vpop.f32.mrf.mxu3  ;;  %6346 = vmatpush.bf16.msra.mxu0 %v8507_v51 }
 0x639   : > { %v4753_v13 = vadd.f32 %v4752_v22, %v4733_v4  ;;  %v8506_v22 = vld [vmem:[%s11345_s10 + $0x30] sm:$0xff] }
 0x63c   : > { %5860 = vmatmul.bf16.gmra.mxu2 %v11088_v37  ;;  %6108 = vmatmul.bf16.gmra.mxu3 %v5942_v35  ;;  %v8498_v37 = vld [vmem:[%s728_s20] sm:$0xff] }
 0x63d   : > { %v11222_v46 = vpop.f32.mrf.mxu0  ;;  %6347 = vmatpush.bf16.msra.mxu0 %v8506_v22 }
 0x63f   : > { %v4736_v48 = vpop.f32.mrf.mxu2 }
 0x640   : > { %v4755_v19 = vpop.f32.mrf.mxu3 }
 0x641   : > { %v4756_v30 = vadd.f32 %v4755_v19, %v4736_v48 }
 0x645   : > { %v5289_v47 = vpop.f32.mrf.mxu0 }
 0x647   : > { %v4738_v55 = vpop.f32.mrf.mxu2 }
 0x648   : > { %v4757_v52 = vpop.f32.mrf.mxu3 }
 0x649   : > { %v4758_v7 = vadd.f32 %v4757_v52, %v4738_v55  ;;  %v8504_v52 = vld [vmem:[%s11345_s10 + $0x20] sm:$0xff] }
 0x64c   : > { %8091 = vmatmul.msk.bf16.vlgmr.msra.gmra.mxu2 %vm6189_vm2, %v8498_v37 }
 0x64d   : > { %v11228_v42 = vpop.f32.mrf.mxu0 }
 0x64f   : > { %v4769_v50 = vpop.f32.mrf.mxu2 }
 0x650   : > { %v4770_v39 = vadd.f32 %v4769_v50, %v4751_v29  ;;  %v4964_v9 = vpop.f32.mrf.mxu3 }
 0x652   : > { %v4965_v8 = vadd.f32 %v4964_v9, %v4770_v39 }
 0x654   : > { %v4984_v59 = vadd.f32 %v4983_v0, %v4965_v8  ;;  %v8502_v8 = vld [vmem:[%s11345_s10 + $0x10] sm:$0xff] }
 0x656   : > { %v5003_v21 = vadd.f32 %v5002_v10, %v4984_v59  ;;  %v8505_v10 = vld [vmem:[%s11345_s10 + $0x28] sm:$0xff] }
 0x657   : > { %v4771_v36 = vpop.f32.mrf.mxu2  ;;  %6348 = vmatpush.bf16.msra.mxu0 %v8505_v10 }
 0x658   : > { %v4772_v43 = vadd.f32 %v4771_v36, %v4753_v13  ;;  %v4966_v18 = vpop.f32.mrf.mxu3 }
 0x65a   : > { %v11220_v34 = vadd.f32 %v4966_v18, %v4772_v43 }
 0x65b   : > { %6349 = vmatpush.bf16.msra.mxu0 %v8504_v52 }
 0x65c   : > { %8092 = vmatmul.msk.bf16.gmra.mxu2 %vm6189_vm2, %v8499_v31 }
 0x65f   : > { %v4774_v33 = vpop.f32.mrf.mxu2 }
 0x660   : > { %v4775_v5 = vadd.f32 %v4774_v33, %v4756_v30  ;;  %v4969_v41 = vpop.f32.mrf.mxu3 }
 0x662   : > { %v4970_v49 = vadd.f32 %v4969_v41, %v4775_v5  ;;  %v8511_v5 = vld [vmem:[%s11346_s11 + $0x18] sm:$0xff] }
 0x663   : > { %6283 = vmatpush.bf16.msra.mxu3 %v8511_v5 }
 0x664   : > { %v5532_v58 = vpop.f32.mrf.mxu1  ;;  %v4989_v14 = vadd.f32 %v4988_v32, %v4970_v49  ;;  %v8503_v32 = vld [vmem:[%s11345_s10 + $0x18] sm:$0xff]  ;;  %v8510_v49 = vld [vmem:[%s11346_s11 + $0x10] sm:$0xff] }
 0x665   : > { %6350 = vmatpush.bf16.msra.mxu0 %v8503_v32 }
 0x666   : > { %v5008_v45 = vadd.f32 %v5007_v61, %v4989_v14 }
 0x667   : > { %v4776_v6 = vpop.f32.mrf.mxu2  ;;  %6284 = vmatpush.bf16.msra.mxu3 %v8510_v49 }
 0x668   : > { %v4777_v26 = vadd.f32 %v4776_v6, %v4758_v7  ;;  %v4971_v63 = vpop.f32.mrf.mxu3 }
 0x669   : > { %6351 = vmatpush.bf16.msra.mxu0 %v8502_v8 }
 0x66a   : > { %v4972_v25 = vadd.f32 %v4971_v63, %v4777_v26 }
 0x66c   : > { %v4991_v2 = vadd.f32 %v4990_v23, %v4972_v25  ;;  %v11224_v1 = vpop.f32.mrf.mxu1  ;;  %v8501_v23 = vld [vmem:[%s11345_s10 + $0x8] sm:$0xff] }
 0x66d   : > { %6352 = vmatpush.bf16.msra.mxu0 %v8501_v23  ;;  %v8509_v25 = vld [vmem:[%s11346_s11 + $0x8] sm:$0xff] }
 0x66e   : > { %v11226_v12 = vadd.f32 %v5009_v38, %v4991_v2  ;;  %v8500_v38 = vld [vmem:[%s11345_s10] sm:$0xff]  ;;  %6285 = vmatpush.bf16.msra.mxu3 %v8509_v25 }
 0x66f   : > { %v5246_v57 = vpop.f32.mrf.mxu2 }
 0x670   : > { %v5265_v17 = vpop.f32.mrf.mxu3 }
 0x671   : > { %v5266_v53 = vadd.f32 %v5265_v17, %v5246_v57  ;;  %6353 = vmatpush.bf16.msra.mxu0 %v8500_v38  ;;  %v4986_v17 = vadd.f32 %v11212_v20, %v11220_v34 }
 0x673   : > { %v5285_v28 = vadd.f32 %v5284_v54, %v5266_v53 }
 0x674   : > { %v5537_v15 = vpop.f32.mrf.mxu1 }
 0x675   : > { %v5294_v40 = vadd.f32 %v5285_v28, %v5003_v21 }
 0x677   : > { %v5248_v16 = vpop.f32.mrf.mxu2 }
 0x678   : > { %v5267_v27 = vpop.f32.mrf.mxu3 }
 0x679   : > { %v5268_v2 = vadd.f32 %v5267_v27, %v5248_v16  ;;  %v8508_v16 = vld [vmem:[%s11346_s11] sm:$0xff] }
 0x67a   : > { %6286 = vmatpush.bf16.msra.mxu3 %v8508_v16 }
 0x67c   : > { %v11230_v11 = vpop.f32.mrf.mxu1 }
 0x67f   : > { %v5251_v56 = vpop.f32.mrf.mxu2 }
 0x680   : > { %v5270_v29 = vpop.f32.mrf.mxu3 }
 0x681   : > { %v5271_v3 = vadd.f32 %v5270_v29, %v5251_v56 }
 0x683   : > { %v5290_v62 = vadd.f32 %v5289_v47, %v5271_v3 }
 0x684   : > { %v5818_v44 = vpop.f32.mrf.mxu0  ;;  %v5837_v60 = vpop.f32.mrf.mxu1 }
 0x685   : > { %v5296_v35 = vadd.f32 %v5290_v62, %v5008_v45  ;;  %v5838_v59 = vadd.f32 %v5837_v60, %v5818_v44 }
 0x687   : > { %v11235_v0 = vpop.f32.mrf.mxu2 }
 0x688   : > { %v11237_v4 = vpop.f32.mrf.mxu3 }
 0x68c   : > { %v5820_v13 = vpop.f32.mrf.mxu0  ;;  %v5839_v48 = vpop.f32.mrf.mxu1 }
 0x68d   : > { %v5840_v27 = vadd.f32 %v5839_v48, %v5820_v13  ;;  %v5273_v13 = vadd.f32 %v11237_v4, %v11235_v0 }
 0x68f   : > { %v5551_v19 = vpop.f32.mrf.mxu2  ;;  %v5292_v23 = vadd.f32 %v11228_v42, %v5273_v13 }
 0x690   : > { %v5552_v30 = vadd.f32 %v5551_v19, %v5532_v58  ;;  %v5570_v55 = vpop.f32.mrf.mxu3 }
 0x691   : > { %v5297_v4 = vadd.f32 %v5292_v23, %v11226_v12  ;;  %v8566_v12 = vld [vmem:[%s11344_s9] ss:$0 sm:$0xff] }
 0x692   : > { %v5571_v37 = vadd.f32 %v5570_v55, %v5552_v30 }
 0x694   : > { %v5580_v7 = vadd.f32 %v5571_v37, %v5294_v40  ;;  %v5823_v50 = vpop.f32.mrf.mxu0  ;;  %v5842_v9 = vpop.f32.mrf.mxu1  ;;  %v5005_v40 = vadd.f32 %v11218_v24, %v4986_v17  ;;  %v8565_v24 = vld [vmem:[%s11342_s7] ss:$0 sm:$0xff] }
 0x695   : > { %v5843_v19 = vadd.f32 %v5842_v9, %v5823_v50 }
 0x697   : > { %v5553_v39 = vpop.f32.mrf.mxu2 }
 0x698   : > { %v5572_v61 = vpop.f32.mrf.mxu3  ;;  %v5554_v53 = vadd.f32 %v5553_v39, %v11224_v1 }
 0x69a   : > { %v5573_v14 = vadd.f32 %v5572_v61, %v5554_v53 }
 0x69c   : > { %v11257_v43 = vpop.f32.mrf.mxu0  ;;  %v5844_v54 = vpop.f32.mrf.mxu1 }
 0x69d   : > { %v5845_v0 = vadd.f32 %v5844_v54, %v11257_v43 }
 0x69f   : > { %v5556_v36 = vpop.f32.mrf.mxu2 }
 0x6a0   : > { %v5557_v18 = vadd.f32 %v5556_v36, %v5537_v15  ;;  %v5575_v31 = vpop.f32.mrf.mxu3  ;;  %v5287_v15 = vadd.f32 %v11222_v46, %v5268_v2 }
 0x6a2   : > { %v5576_v33 = vadd.f32 %v5575_v31, %v5557_v18  ;;  %v5295_v45 = vadd.f32 %v5287_v15, %v5005_v40 }
 0x6a4   : > { %v5582_v41 = vadd.f32 %v5576_v33, %v5296_v35  ;;  %v6123_v26 = vpop.f32.mrf.mxu0  ;;  %v6142_v63 = vpop.f32.mrf.mxu1  ;;  %v5581_v1 = vadd.f32 %v5573_v14, %v5295_v45  ;;  %v8518_v45 = vld [vmem:[%s11348_s13 + $0x30] sm:$0xff] }
 0x6a7   : > { %v5558_v58 = vpop.f32.mrf.mxu2 }
 0x6a8   : > { %v5577_v6 = vpop.f32.mrf.mxu3  ;;  %v5559_v52 = vadd.f32 %v5558_v58, %v11230_v11 }
 0x6aa   : > { %v5578_v18 = vadd.f32 %v5577_v6, %v5559_v52 }
 0x6ac   : > { %v6125_v56 = vpop.f32.mrf.mxu0  ;;  %v6144_v20 = vpop.f32.mrf.mxu1  ;;  %v5583_v9 = vadd.f32 %v5578_v18, %v5297_v4 }
 0x6af   : > { %v5856_v57 = vpop.f32.mrf.mxu2 }
 0x6b0   : > { %v6104_v47 = vpop.f32.mrf.mxu3  ;;  %v5857_v21 = vadd.f32 %v5856_v57, %v5838_v59 }
 0x6b1   : > { %v6124_v28 = vadd.f32 %v6123_v26, %v6104_v47 }
 0x6b2   : > { %v5866_v29 = vadd.f32 %v5857_v21, %v5580_v7 }
 0x6b3   : > { %v6143_v3 = vadd.f32 %v6142_v63, %v6124_v28 }
 0x6b4   : > { %v6128_v48 = vpop.f32.mrf.mxu0  ;;  %v6147_v37 = vpop.f32.mrf.mxu1 }
 0x6b5   : > { %v6152_v60 = vadd.f32 %v6143_v3, %v5866_v29 }
 0x6b7   : > { %v5858_v34 = vpop.f32.mrf.mxu2  ;;  %v6160_v22 = vadd.f32 %v8565_v24, %v6152_v60  ;;  %v8512_v60 = vld [vmem:[%s11348_s13] sm:$0xff] }
 0x6b8   : > { %v5859_v62 = vadd.f32 %v5858_v34, %v5840_v27  ;;  %v6106_v44 = vpop.f32.mrf.mxu3  ;;  %v8519_v27 = vld [vmem:[%s11348_s13 + $0x38] sm:$0xff]  ;;  %v8516_v34 = vld [vmem:[%s11348_s13 + $0x20] sm:$0xff] }
 0x6b9   : > { %v6126_v46 = vadd.f32 %v6125_v56, %v6106_v44  ;;  %v6164_v32 = vmax.f32 %v6160_v22, 0.0  ;;  %6447 = vmatpush.bf16.msra.mxu1 %v8519_v27  ;;  %v8513_v44 = vld [vmem:[%s11348_s13 + $0x8] sm:$0xff]  ;;  %v8567_v22 = vld [vmem:[%s11347_s12] ss:$0 sm:$0xff] }
 0x6ba   : > { %v5867_v51 = vadd.f32 %v5859_v62, %v5581_v1  ;;  %v8515_v1 = vld [vmem:[%s11348_s13 + $0x18] sm:$0xff]  ;;  %v8514_v62 = vld [vmem:[%s11348_s13 + $0x10] sm:$0xff] }
 0x6bb   : > { %v6145_v35 = vadd.f32 %v6144_v20, %v6126_v46  ;;  %v8517_v20 = vld [vmem:[%s11348_s13 + $0x28] sm:$0xff] }
 0x6bc   : > { %v6130_v11 = vpop.f32.mrf.mxu0  ;;  %v6149_v26 = vpop.f32.mrf.mxu1 }
 0x6bd   : > { %v6153_v10 = vadd.f32 %v6145_v35, %v5867_v51  ;;  %6448 = vmatpush.bf16.msra.mxu1 %v8518_v45 }
 0x6bf   : > { %v6161_v30 = vadd.f32 %v8565_v24, %v6153_v10  ;;  %v5861_v55 = vpop.f32.mrf.mxu2 }
 0x6c0   : > { %v6109_v7 = vpop.f32.mrf.mxu3  ;;  %v5862_v61 = vadd.f32 %v5861_v55, %v5843_v19 }
 0x6c1   : > { %v6165_v39 = vmax.f32 %v6161_v30, 0.0  ;;  %v6129_v8 = vadd.f32 %v6128_v48, %v6109_v7  ;;  %6449 = vmatpush.bf16.msra.mxu1 %v8517_v20 }
 0x6c2   : > { %v5868_v31 = vadd.f32 %v5862_v61, %v5582_v41 }
 0x6c3   : > { %v6168_v36 = vpack.c.bf16 %v6165_v39, %v6164_v32  ;;  %v6148_v38 = vadd.f32 %v6147_v37, %v6129_v8 }
 0x6c5   : > { %6354 = vmatmul.bf16.vlgmr.msra.gmra.mxu0 %v6168_v36  ;;  %v6154_v49 = vadd.f32 %v6148_v38, %v5868_v31  ;;  %6450 = vmatpush.bf16.msra.mxu1 %v8516_v34 }
 0x6c7   : > { %v5863_v50 = vpop.f32.mrf.mxu2  ;;  %v6162_v2 = vadd.f32 %v8565_v24, %v6154_v49 }
 0x6c8   : > { %v5864_v33 = vadd.f32 %v5863_v50, %v5845_v0  ;;  %v6111_v5 = vpop.f32.mrf.mxu3  ;;  %v8568_v0 = vld [vmem:[%s11349_s14] ss:$0 sm:$0xff] }
 0x6c9   : > { %v6131_v58 = vadd.f32 %v6130_v11, %v6111_v5  ;;  %v6166_v59 = vmax.f32 %v6162_v2, 0.0  ;;  %6451 = vmatpush.bf16.msra.mxu1 %v8515_v1 }
 0x6ca   : > { %v5869_v63 = vadd.f32 %v5864_v33, %v5583_v9 }
 0x6cb   : > { %v6150_v25 = vadd.f32 %v6149_v26, %v6131_v58 }
 0x6cd   : > { %v6155_v42 = vadd.f32 %v6150_v25, %v5869_v63  ;;  %6452 = vmatpush.bf16.msra.mxu1 %v8514_v62 }
 0x6cf   : > { %v6208_v6 = vpop.f32.mrf.mxu2  ;;  %v6163_v41 = vadd.f32 %v8565_v24, %v6155_v42 }
 0x6d0   : > { %v6209_v54 = vadd.f32 %v8566_v12, %v6208_v6 }
 0x6d1   : > { %v6167_v57 = vmax.f32 %v6163_v41, 0.0  ;;  %6453 = vmatpush.bf16.msra.mxu1 %v8513_v44 }
 0x6d2   : > { %v6218_v47 = vmax.f32 %v6209_v54, 0.0 }
 0x6d3   : > { %v6169_v43 = vpack.c.bf16 %v6167_v57, %v6166_v59 }
 0x6d5   : > { %6359 = vmatmul.bf16.gmra.mxu0 %v6169_v43  ;;  %6454 = vmatpush.bf16.msra.mxu1 %v8512_v60 }
 0x6d7   : > { %v6210_v17 = vpop.f32.mrf.mxu2 }
 0x6d8   : > { %v6211_v53 = vadd.f32 %v8566_v12, %v6210_v17 }
 0x6da   : > { %v6219_v21 = vmax.f32 %v6211_v53, 0.0 }
 0x6dc   : > { %v6222_v28 = vpack.c.bf16 %v6219_v21, %v6218_v47 }
 0x6de   : > { %8109 = vmatmul.msk.bf16.vlgmr.msra.gmra.mxu3 %vm6272_vm3, %v6222_v28 }
 0x6df   : > { %v6213_v15 = vpop.f32.mrf.mxu2 }
 0x6e0   : > { %v6214_v40 = vadd.f32 %v8566_v12, %v6213_v15 }
 0x6e2   : > { %v6220_v29 = vmax.f32 %v6214_v40, 0.0 }
 0x6e7   : > { %v6215_v14 = vpop.f32.mrf.mxu2 }
 0x6e8   : > { %v6216_v56 = vadd.f32 %v8566_v12, %v6215_v14 }
 0x6ea   : > { %v6221_v3 = vmax.f32 %v6216_v56, 0.0 }
 0x6ec   : > { %v6223_v16 = vpack.c.bf16 %v6221_v3, %v6220_v29 }
 0x6ee   : > { %8110 = vmatmul.msk.bf16.gmra.mxu3 %vm6272_vm3, %v6223_v16 }
 0x742   : > { %v6355_v24 = vpop.f32.mrf.mxu0 }
 0x74a   : > { %v6357_v51 = vpop.f32.mrf.mxu0 }
 0x752   : > { %v6360_v52 = vpop.f32.mrf.mxu0 }
 0x75a   : > { %v6362_v39 = vpop.f32.mrf.mxu0 }
 0x761   : > { %v6288_v46 = vpop.f32.mrf.mxu3 }
 0x762   : > { %v6356_v35 = vadd.f32 %v6355_v24, %v6288_v46 }
 0x764   : > { %v6369_v13 = vadd.f32 %v8567_v22, %v6356_v35 }
 0x766   : > { %v6373_v30 = vmax.f32 %v6369_v13, 0.0 }
 0x769   : > { %v6290_v10 = vpop.f32.mrf.mxu3 }
 0x76a   : > { %v6358_v48 = vadd.f32 %v6357_v51, %v6290_v10 }
 0x76c   : > { %v6370_v19 = vadd.f32 %v8567_v22, %v6358_v48 }
 0x76e   : > { %v6374_v55 = vmax.f32 %v6370_v19, 0.0 }
 0x770   : > { %v6377_v37 = vpack.c.bf16 %v6374_v55, %v6373_v30 }
 0x771   : > { %v6293_v7 = vpop.f32.mrf.mxu3 }
 0x772   : > { %6455 = vmatmul.bf16.vlgmr.msra.gmra.mxu1 %v6377_v37  ;;  %v6361_v32 = vadd.f32 %v6360_v52, %v6293_v7 }
 0x774   : > { %v6371_v8 = vadd.f32 %v8567_v22, %v6361_v32 }
 0x776   : > { %v6375_v18 = vmax.f32 %v6371_v8, 0.0 }
 0x779   : > { %v6295_v61 = vpop.f32.mrf.mxu3 }
 0x77a   : > { %v6363_v23 = vadd.f32 %v6362_v39, %v6295_v61 }
 0x77c   : > { %v6372_v36 = vadd.f32 %v8567_v22, %v6363_v23 }
 0x77e   : > { %v6376_v31 = vmax.f32 %v6372_v36, 0.0 }
 0x780   : > { %v6378_v38 = vpack.c.bf16 %v6376_v31, %v6375_v18 }
 0x782   : > { %6460 = vmatmul.bf16.gmra.mxu1 %v6378_v38 }
 0x7ef   : > { %v6456_v4 = vpop.f32.mrf.mxu1 }
 0x7f0   : > { %v6457_v50 = vadd.f32 %v8568_v0, %v6456_v4 }
 0x7f2   : > { %6466 = vst [vmem:[%s734_s25] sm:$0xff] %v6457_v50 }
 0x7f7   : > { %v6458_v9 = vpop.f32.mrf.mxu1 }
 0x7f8   : > { %v6459_v11 = vadd.f32 %v8568_v0, %v6458_v9 }
 0x7fa   : > { %6467 = vst [vmem:[%s734_s25 + $0x8] sm:$0xff] %v6459_v11 }
 0x7ff   : > { %v6461_v33 = vpop.f32.mrf.mxu1 }
 0x800   : > { %v6462_v5 = vadd.f32 %v8568_v0, %v6461_v33 }
 0x802   : > { %6468 = vst [vmem:[%s734_s25 + $0x10] sm:$0xff] %v6462_v5 }
 0x807   : > { %v6463_v49 = vpop.f32.mrf.mxu1 }
 0x808   : > { %v6464_v58 = vadd.f32 %v8568_v0, %v6463_v49 }
 0x80a   : > { %6469 = vst [vmem:[%s734_s25 + $0x18] sm:$0xff] %v6464_v58 }
 0x80b PF: > { %s11561_s20 = sld [smem:[#allocation6_spill]]  ;;  %s11563_s18 = smov %s8622_s19 }
 0x80c   : > { %s11562_s30 = sld [smem:[#allocation7_spill]] }
 0x811   : > { %p23_p12 = scmp.ge.s32.totalorder %s11561_s20, 4  }
 0x812   : > { %s11564_s19 = smov %s11562_s30 }
 0x813   :  { %25 = sbr.rel (!%p23_p12) target bundleno = 4 (0x4), region = 173 }
 0x818   :  { %6492 = vsyncpa [#allocation4], 1 }
 0x819   :  { %6494 = vsyncpa [#allocation4 + $0x1], 1 }

</bundles_post_ra>
